<compile_context>
chip_gen: v6e
topology: v6e:2x2x1
jax: 0.10.0
libtpu: 0.0.40
codegen_flags: <defaults>
</compile_context>

<pallas_src>
import numpy as np
import jax
import jax.numpy as jnp
from jax import lax
from jax.experimental import pallas as pl
from jax.experimental.pallas import tpu as pltpu


_LANE = 256        # lanes per segment (multiple of 128)
_SEG_ALIGN = 32    # segment-count granularity (int8 sublane tile)


def _round_up(x, m):
    return ((x + m - 1) // m) * m


# --------------------------- kernel 1: prep --------------------------------
def _prep_kernel(probs_ref, tgt_ref, cls_ref, negerr_ref, onehot_ref):
    """Elementwise prep in (class, pixel) layout.

    probs_ref : (C, LANES) f32  class probabilities
    tgt_ref   : (1, LANES) i32  labels (-1 in padding)
    cls_ref   : (C, 1)     i32  class ids (hoisted iota, VMEM resident)
    negerr_ref: (C, LANES) f32  out: -|onehot - prob| (ascending sort key)
    onehot_ref: (C, LANES) i8   out: one-hot targets (sort payload)
    """
    onehot = tgt_ref[...] == cls_ref[...]
    onehot_f = onehot.astype(jnp.float32)
    negerr_ref[...] = -jnp.abs(onehot_f - probs_ref[...])
    onehot_ref[...] = onehot.astype(jnp.int8)


# ------------------- kernel 2: streaming Lovasz scan ------------------------
def _lovasz_scan_kernel(neg_ref, gt_ref, tri_ref, segm_ref, pos_ref, gts_ref,
                        loss_ref, cs_ref):
    """Streaming Lovasz-extension scan over the sorted pixel axis.

    Per class, with sorted errors e_j and sorted one-hot gt_j:
        cs_j = cumsum(gt)_j (inclusive, carried across chunks)
        J_j  = 1 - (gts - cs_j) / (gts + (j+1) - cs_j)
        loss = sum_j e_j * (J_j - J_{j-1}),   J_{-1} := 0
    J_{j-1} is rebuilt from the exclusive prefix sums (cs_j - gt_j), so no
    rolls/concats are needed; the only cross-chunk state is cs.

    neg_ref : (Cg, S, L) f32  -errors, sorted ascending (i.e. errors desc)
    gt_ref  : (Cg, S, L) i8   co-sorted one-hot targets
    tri_ref : (L, L)     bf16 upper-triangular ones (within-segment prefix)
    segm_ref: (Cg*S, Cg*S) bf16 block-diagonal strict-lower ones (seg offsets)
    pos_ref : (1, S, L)  f32  position index within the chunk
    gts_ref : (Cg, 1, 1) f32  per-class foreground count
    loss_ref: (Cg, 1, 1) f32  output accumulator (resident across the scan)
    cs_ref  : (Cg, 1, 1) f32  scratch carry (cumulative foreground count)
    """
    k = pl.program_id(1)

    @pl.when(k == 0)
    def _init():
        loss_ref[...] = jnp.zeros_like(loss_ref)
        cs_ref[...] = jnp.zeros_like(cs_ref)

    cg, s, lanes = neg_ref.shape
    rows = cg * s

    err = -neg_ref[...]                                     # (Cg, S, L) f32
    gt = gt_ref[...].astype(jnp.float32)                    # (Cg, S, L) f32

    # --- two-level exact prefix sum of the sorted 0/1 targets -------------
    gt2 = gt.reshape(rows, lanes)
    # within-segment inclusive prefix: one bf16 MXU matmul (exact for 0/1)
    cs_seg = jnp.dot(gt2.astype(jnp.bfloat16), tri_ref[...],
                     preferred_element_type=jnp.float32)    # (Cg*S, L)
    # per-segment totals -> exclusive prefix over segments (tiny matmul)
    seg_tot = jnp.sum(gt2, axis=-1, keepdims=True)          # (Cg*S, 1)
    seg_off = jnp.dot(segm_ref[...], seg_tot.astype(jnp.bfloat16),
                      preferred_element_type=jnp.float32)   # (Cg*S, 1)
    carry = cs_ref[...]                                      # (Cg, 1, 1)
    cs = (cs_seg + seg_off).reshape(cg, s, lanes) + carry    # global inclusive

    # --- Lovasz gradient weights straight from the prefix sums ------------
    gts = gts_ref[...]                                        # (Cg, 1, 1)
    base = (k * (s * lanes)).astype(jnp.float32)
    pos = pos_ref[...] + base                                 # (1, S, L)
    i_cur = gts - cs
    u_cur = gts + (pos + 1.0) - cs                            # always >= 1
    i_prev = i_cur + gt
    u_prev = u_cur + gt - 1.0                                 # 0 only at j == 0
    r_prev = jnp.where(u_prev > 0.5, i_prev / u_prev, 1.0)    # J_{-1} := 0
    g = r_prev - i_cur / u_cur

    contrib = jnp.sum(err * g, axis=-1, keepdims=True)        # (Cg, S, 1)
    loss_ref[...] += jnp.sum(contrib, axis=1, keepdims=True)  # (Cg, 1, 1)

    chunk_tot = jnp.sum(seg_tot.reshape(cg, s, 1), axis=1, keepdims=True)
    cs_ref[...] = carry + chunk_tot


# ------------------------------- wrapper ------------------------------------
def lovasz_softmax(inputs, targets, reduction='mean'):
    """inputs: (N, C, H, W) class probabilities; targets: (N, H, W) int labels."""
    assert inputs.ndim == 4, "only the 4-D path of the reference module is supported"
    n, c, h, w = inputs.shape
    p = n * h * w

    # Class-group parallel axis (v7x has 2 TensorCores; per-class carries make
    # the class split embarrassingly parallel, neutral on v5e/v6e).
    cgroups = 2 if (c % 2 == 0 and c >= 2) else 1
    cg = c // cgroups

    # Segments per scan step: fill the MXU sublane dim (cg*S ~ 128..256) but
    # do not over-pad tiny inputs; S stays a multiple of 32 (int8 tiling).
    nseg_raw = (p + _LANE - 1) // _LANE
    s_max = max(_SEG_ALIGN, min(128, ((256 // cg) // _SEG_ALIGN) * _SEG_ALIGN))
    s = min(s_max, _round_up(nseg_raw, _SEG_ALIGN))
    nseg = _round_up(nseg_raw, s)
    p_pad = nseg * _LANE
    num_chunks = nseg // s
    chunk_pix = s * _LANE

    # (class, pixel) layout: pixels on lanes, classes on sublanes.
    probs_t = jnp.transpose(inputs.astype(jnp.float32), (1, 0, 2, 3)).reshape(c, p)
    tgt_row = targets.reshape(1, p).astype(jnp.int32)
    if p_pad != p:
        # Padding is inert: prob=0, label=-1 -> error 0, one-hot 0.
        probs_t = jnp.pad(probs_t, ((0, 0), (0, p_pad - p)))
        tgt_row = jnp.pad(tgt_row, ((0, 0), (0, p_pad - p)), constant_values=-1)

    class_col = jnp.arange(c, dtype=jnp.int32).reshape(c, 1)

    # ---- Pallas kernel 1: sort keys + int8 one-hot (lane-dense blocks) ----
    neg_err, onehot = pl.pallas_call(
        _prep_kernel,
        out_shape=(jax.ShapeDtypeStruct((c, p_pad), jnp.float32),
                   jax.ShapeDtypeStruct((c, p_pad), jnp.int8)),
        grid_spec=pltpu.PrefetchScalarGridSpec(
            num_scalar_prefetch=0,
            grid=(num_chunks,),
            in_specs=[pl.BlockSpec((c, chunk_pix), lambda k: (0, k)),
                      pl.BlockSpec((1, chunk_pix), lambda k: (0, k)),
                      pl.BlockSpec((c, 1), lambda k: (0, 0))],
            out_specs=(pl.BlockSpec((c, chunk_pix), lambda k: (0, k)),
                       pl.BlockSpec((c, chunk_pix), lambda k: (0, k))),
        ),
        compiler_params=pltpu.CompilerParams(dimension_semantics=("parallel",)),
    )(probs_t, tgt_row, class_col)

    # TODO(synk): per-class descending sort has no clean Pallas TPU primitive;
    # one variadic stable lax.sort co-sorts the int8 one-hot with the keys.
    neg_sorted, gt_sorted = lax.sort((neg_err, onehot), dimension=1,
                                     is_stable=True, num_keys=1)
    neg_sorted = neg_sorted.reshape(c, nseg, _LANE)
    gt_sorted = gt_sorted.reshape(c, nseg, _LANE)

    # Per-class foreground counts via an O(P) label histogram (no O(C*P) pass).
    gts = jnp.zeros((c,), jnp.float32).at[targets.reshape(-1)].add(1.0)
    gts = gts.reshape(c, 1, 1)

    # Hoisted constants (VMEM-resident inside kernel 2).
    lane_idx = jnp.arange(_LANE, dtype=jnp.int32)
    tri = (lane_idx[:, None] <= lane_idx[None, :]).astype(jnp.bfloat16)
    row_idx = jnp.arange(cg * s, dtype=jnp.int32)
    same_class = (row_idx[:, None] // s) == (row_idx[None, :] // s)
    before = (row_idx[None, :] % s) < (row_idx[:, None] % s)
    segm = (same_class & before).astype(jnp.bfloat16)
    pos_local = jnp.arange(chunk_pix, dtype=jnp.float32).reshape(1, s, _LANE)

    # ---- Pallas kernel 2: segmented streaming Lovasz-grad scan ------------
    per_class = pl.pallas_call(
        _lovasz_scan_kernel,
        out_shape=jax.ShapeDtypeStruct((c, 1, 1), jnp.float32),
        grid_spec=pltpu.PrefetchScalarGridSpec(
            num_scalar_prefetch=0,
            grid=(cgroups, num_chunks),
            in_specs=[pl.BlockSpec((cg, s, _LANE), lambda g, k: (g, k, 0)),
                      pl.BlockSpec((cg, s, _LANE), lambda g, k: (g, k, 0)),
                      pl.BlockSpec((_LANE, _LANE), lambda g, k: (0, 0)),
                      pl.BlockSpec((cg * s, cg * s), lambda g, k: (0, 0)),
                      pl.BlockSpec((1, s, _LANE), lambda g, k: (0, 0, 0)),
                      pl.BlockSpec((cg, 1, 1), lambda g, k: (g, 0, 0))],
            out_specs=pl.BlockSpec((cg, 1, 1), lambda g, k: (g, 0, 0)),
            scratch_shapes=[pltpu.VMEM((cg, 1, 1), jnp.float32)],
        ),
        compiler_params=pltpu.CompilerParams(
            dimension_semantics=("parallel", "arbitrary")),
    )(neg_sorted, gt_sorted, tri, segm, pos_local, gts)

    losses = per_class[:, 0, 0]
    if reduction == 'none':
        return losses
    if reduction == 'sum':
        return jnp.sum(losses)
    return jnp.mean(losses)


# ----------------------------- pure-JAX reference ---------------------------
def _lovasz_grad_ref(gt_sorted):
    gts = jnp.sum(gt_sorted)
    intersection = gts - jnp.cumsum(gt_sorted)
    union = gts + jnp.cumsum(1.0 - gt_sorted)
    jaccard = 1.0 - intersection / union
    return jnp.concatenate([jaccard[:1], jaccard[1:] - jaccard[:-1]])


def _reference(inputs, targets, reduction='mean'):
    n, c, h, w = inputs.shape
    probs = jnp.transpose(inputs.astype(jnp.float32), (0, 2, 3, 1)).reshape(-1, c)
    tgt = targets.reshape(-1)
    losses = []
    for cls in range(c):
        fg = (tgt == cls).astype(jnp.float32)
        pred = probs[:, 0] if c == 1 else probs[:, cls]
        errs = jnp.abs(fg - pred)
        order = jnp.argsort(-errs)
        losses.append(jnp.sum(errs[order] * _lovasz_grad_ref(fg[order])))
    losses = jnp.stack(losses)
    if reduction == 'none':
        return losses
    if reduction == 'sum':
        return jnp.sum(losses)
    return jnp.mean(losses)


if __name__ == "__main__":
    key = jax.random.PRNGKey(0)
    k1, k2 = jax.random.split(key)
    N, C, H, W = 2, 4, 16, 16
    logits = jax.random.normal(k1, (N, C, H, W), dtype=jnp.float32)
    probs = jax.nn.softmax(logits, axis=1)      # module expects probabilities
    targets = jax.random.randint(k2, (N, H, W), 0, C, dtype=jnp.int32)

    loss = jax.jit(lovasz_softmax)(probs, targets)
    loss = jax.block_until_ready(loss)

    ref = jax.block_until_ready(_reference(probs, targets))
    np.testing.assert_allclose(np.asarray(loss), np.asarray(ref),
                               rtol=1e-4, atol=1e-5)
    print("KERNEL_OK")
</pallas_src>

<mosaic_0001>
module attributes {stable_mosaic.version = 11 : i64} {
  func.func private @main(%arg0: i32) attributes {dimension_semantics = [#tpu.dimension_semantics<core_parallel>], iteration_bounds = array<i64: 2>, tpu.core_type = #tpu.core_type<sc_scalar_subcore>, window_params = []} {
    return
  }
}

module attributes {stable_mosaic.version = 11 : i64} {
  func.func private @main(%arg0: i32) attributes {dimension_semantics = [#tpu.dimension_semantics<core_parallel>], iteration_bounds = array<i64: 2>, tpu.core_type = #tpu.core_type<sc_scalar_subcore>, window_params = []} {
    return
  }
}

module attributes {stable_mosaic.version = 11 : i64} {
  func.func @_prep_kernel(%arg0: i32, %arg1: memref<4x8192xf32, #tpu.memory_space<vmem>>, %arg2: memref<1x8192xi32, #tpu.memory_space<vmem>>, %arg3: memref<4x1xi32, #tpu.memory_space<vmem>>, %arg4: memref<4x8192xf32, #tpu.memory_space<vmem>>, %arg5: memref<4x8192xi8, #tpu.memory_space<vmem>>) attributes {dimension_semantics = [#tpu.dimension_semantics<parallel>], iteration_bounds = array<i64: 1>, scalar_prefetch = 0 : i64, scratch_operands = 0 : i64, tpu.core_type = #tpu.core_type<tc>, window_params = [{transform_indices = @transform_0, window_bounds = array<i64: 4, 8192>}, {transform_indices = @transform_1, window_bounds = array<i64: 1, 8192>}, {pipeline_mode = #tpu.pipeline_mode<synchronous>, transform_indices = @transform_2, window_bounds = array<i64: 4, 1>}, {transform_indices = @transform_3, window_bounds = array<i64: 4, 8192>}, {transform_indices = @transform_4, window_bounds = array<i64: 4, 8192>}]} {
    %c0 = arith.constant 0 : index
    %c0_0 = arith.constant 0 : index
    %0 = vector.load %arg2[%c0, %c0_0] : memref<1x8192xi32, #tpu.memory_space<vmem>>, vector<1x8192xi32>
    %c0_1 = arith.constant 0 : index
    %c0_2 = arith.constant 0 : index
    %1 = vector.load %arg3[%c0_1, %c0_2] : memref<4x1xi32, #tpu.memory_space<vmem>>, vector<4x1xi32>
    %2 = vector.broadcast %0 : vector<1x8192xi32> to vector<4x8192xi32>
    %3 = vector.broadcast %1 : vector<4x1xi32> to vector<4x8192xi32>
    %4 = arith.cmpi eq, %2, %3 : vector<4x8192xi32>
    %5 = arith.extui %4 : vector<4x8192xi1> to vector<4x8192xi32>
    %6 = arith.sitofp %5 : vector<4x8192xi32> to vector<4x8192xf32>
    %c0_3 = arith.constant 0 : index
    %c0_4 = arith.constant 0 : index
    %7 = vector.load %arg1[%c0_3, %c0_4] : memref<4x8192xf32, #tpu.memory_space<vmem>>, vector<4x8192xf32>
    %8 = arith.subf %6, %7 : vector<4x8192xf32>
    %9 = math.absf %8 : vector<4x8192xf32>
    %cst = arith.constant 0.000000e+00 : f32
    %10 = vector.broadcast %cst : f32 to vector<4x8192xf32>
    %11 = arith.subf %10, %9 : vector<4x8192xf32>
    %c0_5 = arith.constant 0 : index
    %c0_6 = arith.constant 0 : index
    %12 = vector.load %arg4[%c0_5, %c0_6] : memref<4x8192xf32, #tpu.memory_space<vmem>>, vector<4x8192xf32>
    tpu.vector_store %arg4[%c0_5, %c0_6], %11 {strides = array<i32>} : memref<4x8192xf32, #tpu.memory_space<vmem>>, vector<4x8192xf32>,
    %13 = arith.extui %4 : vector<4x8192xi1> to vector<4x8192xi8>
    %c0_7 = arith.constant 0 : index
    %c0_8 = arith.constant 0 : index
    %14 = vector.load %arg5[%c0_7, %c0_8] : memref<4x8192xi8, #tpu.memory_space<vmem>>, vector<4x8192xi8>
    tpu.vector_store %arg5[%c0_7, %c0_8], %13 {strides = array<i32>} : memref<4x8192xi8, #tpu.memory_space<vmem>>, vector<4x8192xi8>,
    return
  }
  func.func @transform_0(%arg0: i32) -> (i32, i32) {
    %c0_i32 = arith.constant 0 : i32
    %c0_i32_0 = arith.constant 0 : i32
    return %c0_i32, %arg0 : i32, i32
  }
  func.func @transform_1(%arg0: i32) -> (i32, i32) {
    %c0_i32 = arith.constant 0 : i32
    %c0_i32_0 = arith.constant 0 : i32
    return %c0_i32, %arg0 : i32, i32
  }
  func.func @transform_2(%arg0: i32) -> (i32, i32) {
    %c0_i32 = arith.constant 0 : i32
    %c0_i32_0 = arith.constant 0 : i32
    %c0_i32_1 = arith.constant 0 : i32
    return %c0_i32, %c0_i32_0 : i32, i32
  }
  func.func @transform_3(%arg0: i32) -> (i32, i32) {
    %c0_i32 = arith.constant 0 : i32
    %c0_i32_0 = arith.constant 0 : i32
    return %c0_i32, %arg0 : i32, i32
  }
  func.func @transform_4(%arg0: i32) -> (i32, i32) {
    %c0_i32 = arith.constant 0 : i32
    %c0_i32_0 = arith.constant 0 : i32
    return %c0_i32, %arg0 : i32, i32
  }
}

module attributes {stable_mosaic.version = 11 : i64} {
  func.func @_lovasz_scan_kernel(%arg0: i32, %arg1: i32, %arg2: memref<2x32x256xf32, #tpu.memory_space<vmem>>, %arg3: memref<2x32x256xi8, #tpu.memory_space<vmem>>, %arg4: memref<256x256xbf16, #tpu.memory_space<vmem>>, %arg5: memref<64x64xbf16, #tpu.memory_space<vmem>>, %arg6: memref<1x32x256xf32, #tpu.memory_space<vmem>>, %arg7: memref<2x1x1xf32, #tpu.memory_space<vmem>>, %arg8: memref<2x1x1xf32, #tpu.memory_space<vmem>>, %arg9: memref<2x1x1xf32, #tpu.memory_space<vmem>>) attributes {dimension_semantics = [#tpu.dimension_semantics<parallel>, #tpu.dimension_semantics<arbitrary>], iteration_bounds = array<i64: 2, 1>, scalar_prefetch = 0 : i64, scratch_operands = 1 : i64, tpu.core_type = #tpu.core_type<tc>, window_params = [{transform_indices = @transform_0, window_bounds = array<i64: 2, 32, 256>}, {transform_indices = @transform_1, window_bounds = array<i64: 2, 32, 256>}, {pipeline_mode = #tpu.pipeline_mode<synchronous>, transform_indices = @transform_2, window_bounds = array<i64: 256, 256>}, {pipeline_mode = #tpu.pipeline_mode<synchronous>, transform_indices = @transform_3, window_bounds = array<i64: 64, 64>}, {pipeline_mode = #tpu.pipeline_mode<synchronous>, transform_indices = @transform_4, window_bounds = array<i64: 1, 32, 256>}, {transform_indices = @transform_5, window_bounds = array<i64: 2, 1, 1>}, {transform_indices = @transform_6, window_bounds = array<i64: 2, 1, 1>}]} {
    %c0_i32 = arith.constant 0 : i32
    %0 = arith.cmpi eq, %arg1, %c0_i32 : i32
    %1 = arith.extui %0 : i1 to i32
    %c0_i32_0 = arith.constant 0 : i32
    %2 = arith.cmpi ne, %1, %c0_i32_0 : i32
    scf.if %2 {
      %cst_38 = arith.constant 0.000000e+00 : f32
      %61 = vector.broadcast %cst_38 : f32 to vector<2x1x1xf32>
      %c0_39 = arith.constant 0 : index
      %c0_40 = arith.constant 0 : index
      %c0_41 = arith.constant 0 : index
      %62 = vector.load %arg8[%c0_39, %c0_40, %c0_41] : memref<2x1x1xf32, #tpu.memory_space<vmem>>, vector<2x1x1xf32>
      tpu.vector_store %arg8[%c0_39, %c0_40, %c0_41], %61 {strides = array<i32>} : memref<2x1x1xf32, #tpu.memory_space<vmem>>, vector<2x1x1xf32>,
      %cst_42 = arith.constant 0.000000e+00 : f32
      %63 = vector.broadcast %cst_42 : f32 to vector<2x1x1xf32>
      %c0_43 = arith.constant 0 : index
      %c0_44 = arith.constant 0 : index
      %c0_45 = arith.constant 0 : index
      %64 = vector.load %arg9[%c0_43, %c0_44, %c0_45] : memref<2x1x1xf32, #tpu.memory_space<vmem>>, vector<2x1x1xf32>
      tpu.vector_store %arg9[%c0_43, %c0_44, %c0_45], %63 {strides = array<i32>} : memref<2x1x1xf32, #tpu.memory_space<vmem>>, vector<2x1x1xf32>,
    } else {
    }
    %c0 = arith.constant 0 : index
    %c0_1 = arith.constant 0 : index
    %c0_2 = arith.constant 0 : index
    %3 = vector.load %arg2[%c0, %c0_1, %c0_2] : memref<2x32x256xf32, #tpu.memory_space<vmem>>, vector<2x32x256xf32>
    %cst = arith.constant 0.000000e+00 : f32
    %4 = vector.broadcast %cst : f32 to vector<2x32x256xf32>
    %5 = arith.subf %4, %3 : vector<2x32x256xf32>
    %c0_3 = arith.constant 0 : index
    %c0_4 = arith.constant 0 : index
    %c0_5 = arith.constant 0 : index
    %6 = vector.load %arg3[%c0_3, %c0_4, %c0_5] : memref<2x32x256xi8, #tpu.memory_space<vmem>>, vector<2x32x256xi8>
    %7 = arith.sitofp %6 : vector<2x32x256xi8> to vector<2x32x256xf32>
    %8 = vector.shape_cast %7 : vector<2x32x256xf32> to vector<64x256xf32>
    %9 = arith.truncf %8 : vector<64x256xf32> to vector<64x256xbf16>
    %c0_6 = arith.constant 0 : index
    %c0_7 = arith.constant 0 : index
    %10 = vector.load %arg4[%c0_6, %c0_7] : memref<256x256xbf16, #tpu.memory_space<vmem>>, vector<256x256xbf16>
    %cst_8 = arith.constant dense<0.000000e+00> : vector<64x256xf32>
    %11 = tpu.matmul %9, %10, %cst_8 {dimension_numbers = #tpu.dot_dimension_numbers<[1], [0], [0], [1], [0, 0, 1, 1], [], []>} : vector<64x256xbf16>, vector<256x256xbf16>, vector<64x256xf32> -> vector<64x256xf32>
    %cst_9 = arith.constant dense<0.000000e+00> : vector<64xf32>
    %12 = vector.multi_reduction <add>, %8, %cst_9 [1] : vector<64x256xf32> to vector<64xf32>
    %13 = vector.shape_cast %12 : vector<64xf32> to vector<64x1xf32>
    %c0_10 = arith.constant 0 : index
    %c0_11 = arith.constant 0 : index
    %14 = vector.load %arg5[%c0_10, %c0_11] : memref<64x64xbf16, #tpu.memory_space<vmem>>, vector<64x64xbf16>
    %15 = arith.truncf %13 : vector<64x1xf32> to vector<64x1xbf16>
    %cst_12 = arith.constant dense<0.000000e+00> : vector<64x1xf32>
    %16 = tpu.matmul %14, %15, %cst_12 {dimension_numbers = #tpu.dot_dimension_numbers<[1], [0], [0], [1], [0, 0, 1, 1], [], []>} : vector<64x64xbf16>, vector<64x1xbf16>, vector<64x1xf32> -> vector<64x1xf32>
    %c0_13 = arith.constant 0 : index
    %c0_14 = arith.constant 0 : index
    %c0_15 = arith.constant 0 : index
    %17 = vector.load %arg9[%c0_13, %c0_14, %c0_15] : memref<2x1x1xf32, #tpu.memory_space<vmem>>, vector<2x1x1xf32>
    %18 = vector.broadcast %16 : vector<64x1xf32> to vector<64x256xf32>
    %19 = arith.addf %11, %18 : vector<64x256xf32>
    %20 = vector.shape_cast %19 : vector<64x256xf32> to vector<2x32x256xf32>
    %21 = vector.broadcast %17 : vector<2x1x1xf32> to vector<2x32x256xf32>
    %22 = arith.addf %20, %21 : vector<2x32x256xf32>
    %c0_16 = arith.constant 0 : index
    %c0_17 = arith.constant 0 : index
    %c0_18 = arith.constant 0 : index
    %23 = vector.load %arg7[%c0_16, %c0_17, %c0_18] : memref<2x1x1xf32, #tpu.memory_space<vmem>>, vector<2x1x1xf32>
    %c8192_i32 = arith.constant 8192 : i32
    %24 = arith.muli %arg1, %c8192_i32 : i32
    %25 = arith.sitofp %24 : i32 to f32
    %c0_19 = arith.constant 0 : index
    %c0_20 = arith.constant 0 : index
    %c0_21 = arith.constant 0 : index
    %26 = vector.load %arg6[%c0_19, %c0_20, %c0_21] : memref<1x32x256xf32, #tpu.memory_space<vmem>>, vector<1x32x256xf32>
    %27 = vector.broadcast %25 : f32 to vector<1x32x256xf32>
    %28 = arith.addf %26, %27 : vector<1x32x256xf32>
    %29 = vector.broadcast %23 : vector<2x1x1xf32> to vector<2x32x256xf32>
    %30 = arith.subf %29, %22 : vector<2x32x256xf32>
    %cst_22 = arith.constant 1.000000e+00 : f32
    %31 = vector.broadcast %cst_22 : f32 to vector<1x32x256xf32>
    %32 = arith.addf %28, %31 : vector<1x32x256xf32>
    %33 = vector.broadcast %23 : vector<2x1x1xf32> to vector<2x32x256xf32>
    %34 = vector.broadcast %32 : vector<1x32x256xf32> to vector<2x32x256xf32>
    %35 = arith.addf %33, %34 : vector<2x32x256xf32>
    %36 = arith.subf %35, %22 : vector<2x32x256xf32>
    %37 = arith.addf %30, %7 : vector<2x32x256xf32>
    %38 = arith.addf %36, %7 : vector<2x32x256xf32>
    %cst_23 = arith.constant 1.000000e+00 : f32
    %39 = vector.broadcast %cst_23 : f32 to vector<2x32x256xf32>
    %40 = arith.subf %38, %39 : vector<2x32x256xf32>
    %cst_24 = arith.constant 5.000000e-01 : f32
    %41 = vector.broadcast %cst_24 : f32 to vector<2x32x256xf32>
    %42 = arith.cmpf ogt, %40, %41 : vector<2x32x256xf32>
    %43 = arith.divf %37, %40 : vector<2x32x256xf32>
    %cst_25 = arith.constant 1.000000e+00 : f32
    %44 = vector.broadcast %cst_25 : f32 to vector<2x32x256xf32>
    %45 = arith.select %42, %43, %44 : vector<2x32x256xi1>, vector<2x32x256xf32>
    %46 = arith.divf %30, %36 : vector<2x32x256xf32>
    %47 = arith.subf %45, %46 : vector<2x32x256xf32>
    %48 = arith.mulf %5, %47 : vector<2x32x256xf32>
    %cst_26 = arith.constant dense<0.000000e+00> : vector<2x32xf32>
    %49 = vector.multi_reduction <add>, %48, %cst_26 [2] : vector<2x32x256xf32> to vector<2x32xf32>
    %50 = vector.shape_cast %49 : vector<2x32xf32> to vector<2x32x1xf32>
    %c0_27 = arith.constant 0 : index
    %c0_28 = arith.constant 0 : index
    %c0_29 = arith.constant 0 : index
    %51 = vector.load %arg8[%c0_27, %c0_28, %c0_29] : memref<2x1x1xf32, #tpu.memory_space<vmem>>, vector<2x1x1xf32>
    %cst_30 = arith.constant dense<0.000000e+00> : vector<2x1xf32>
    %52 = vector.multi_reduction <add>, %50, %cst_30 [1] : vector<2x32x1xf32> to vector<2x1xf32>
    %53 = vector.shape_cast %52 : vector<2x1xf32> to vector<2x1x1xf32>
    %54 = arith.addf %51, %53 : vector<2x1x1xf32>
    %c0_31 = arith.constant 0 : index
    %c0_32 = arith.constant 0 : index
    %c0_33 = arith.constant 0 : index
    %55 = vector.load %arg8[%c0_31, %c0_32, %c0_33] : memref<2x1x1xf32, #tpu.memory_space<vmem>>, vector<2x1x1xf32>
    tpu.vector_store %arg8[%c0_31, %c0_32, %c0_33], %54 {strides = array<i32>} : memref<2x1x1xf32, #tpu.memory_space<vmem>>, vector<2x1x1xf32>,
    %56 = vector.shape_cast %13 : vector<64x1xf32> to vector<2x32x1xf32>
    %cst_34 = arith.constant dense<0.000000e+00> : vector<2x1xf32>
    %57 = vector.multi_reduction <add>, %56, %cst_34 [1] : vector<2x32x1xf32> to vector<2x1xf32>
    %58 = vector.shape_cast %57 : vector<2x1xf32> to vector<2x1x1xf32>
    %59 = arith.addf %17, %58 : vector<2x1x1xf32>
    %c0_35 = arith.constant 0 : index
    %c0_36 = arith.constant 0 : index
    %c0_37 = arith.constant 0 : index
    %60 = vector.load %arg9[%c0_35, %c0_36, %c0_37] : memref<2x1x1xf32, #tpu.memory_space<vmem>>, vector<2x1x1xf32>
    tpu.vector_store %arg9[%c0_35, %c0_36, %c0_37], %59 {strides = array<i32>} : memref<2x1x1xf32, #tpu.memory_space<vmem>>, vector<2x1x1xf32>,
    return
  }
  func.func @transform_0(%arg0: i32, %arg1: i32) -> (i32, i32, i32) {
    %c0_i32 = arith.constant 0 : i32
    %c0_i32_0 = arith.constant 0 : i32
    return %arg0, %arg1, %c0_i32 : i32, i32, i32
  }
  func.func @transform_1(%arg0: i32, %arg1: i32) -> (i32, i32, i32) {
    %c0_i32 = arith.constant 0 : i32
    %c0_i32_0 = arith.constant 0 : i32
    return %arg0, %arg1, %c0_i32 : i32, i32, i32
  }
  func.func @transform_2(%arg0: i32, %arg1: i32) -> (i32, i32) {
    %c0_i32 = arith.constant 0 : i32
    %c0_i32_0 = arith.constant 0 : i32
    %c0_i32_1 = arith.constant 0 : i32
    return %c0_i32, %c0_i32_0 : i32, i32
  }
  func.func @transform_3(%arg0: i32, %arg1: i32) -> (i32, i32) {
    %c0_i32 = arith.constant 0 : i32
    %c0_i32_0 = arith.constant 0 : i32
    %c0_i32_1 = arith.constant 0 : i32
    return %c0_i32, %c0_i32_0 : i32, i32
  }
  func.func @transform_4(%arg0: i32, %arg1: i32) -> (i32, i32, i32) {
    %c0_i32 = arith.constant 0 : i32
    %c0_i32_0 = arith.constant 0 : i32
    %c0_i32_1 = arith.constant 0 : i32
    %c0_i32_2 = arith.constant 0 : i32
    return %c0_i32, %c0_i32_0, %c0_i32_1 : i32, i32, i32
  }
  func.func @transform_5(%arg0: i32, %arg1: i32) -> (i32, i32, i32) {
    %c0_i32 = arith.constant 0 : i32
    %c0_i32_0 = arith.constant 0 : i32
    %c0_i32_1 = arith.constant 0 : i32
    return %arg0, %c0_i32, %c0_i32_0 : i32, i32, i32
  }
  func.func @transform_6(%arg0: i32, %arg1: i32) -> (i32, i32, i32) {
    %c0_i32 = arith.constant 0 : i32
    %c0_i32_0 = arith.constant 0 : i32
    %c0_i32_1 = arith.constant 0 : i32
    return %arg0, %c0_i32, %c0_i32_0 : i32, i32, i32
  }
}

</mosaic_0001>

<bundles_post_ra>
// kernel: lovasz_softmax.2
= control target key start
LH: loop header
LB: loop body
LE: loop exit
PB: predicated region body
PF: predicated region fallthrough
CT: control target
= control target key end

     0   :  { %v4738_v0 = vmov 0   ;;  %v27_v2 = vlaneseq  ;;  %v5070_v27 = vmov 0  ;;  %v5073_v23 = vmov 0  ;;  %s4733_s2 = inlined_call_operand.vmem [shape: s32[4,1], index: 2, kind: input, shape index: {}]   ;;  %s4734_s1 = inlined_call_operand.vmem [shape: s32[1,8192], index: 1, kind: input, shape index: {}]   ;;  %s4735_s0 = inlined_call_operand.vmem [shape: f32[4,8192], index: 0, kind: input, shape index: {}]   ;;  %s4736_s3 = inlined_call_operand.vmem [shape: f32[4,8192], index: 3, kind: output, shape index: {0}]   ;;  %s4737_s4 = inlined_call_operand.vmem [shape: s8[4,8192], index: 4, kind: output, shape index: {1}]  }
   0x1   :  { %1625 = vset.pattern.permute.xlu0 %v4738_v0  ;;  %v26_v1 = vld [vmem:[%s4733_s2] sm:$0xf]  ;;  %v1724_v13 = vld [vmem:[%s4734_s1 + $0x8] sm:$0xff]  ;;  %v1733_v16 = vld [vmem:[%s4734_s1 + $0x10] sm:$0xff]  ;;  %v5076_v30 = vmov 0  ;;  %v5093_v24 = vmov 0 }
   0x2   :  { %284 = vperm.xlu0 %1625, %v26_v1   ;;  %v1690_v3 = vshrl.u32 %v27_v2, 7  ;;  %v1701_v6 = vld [vmem:[%s4734_s1] sm:$0xff]  ;;  %v1754_v25 = vld [vmem:[%s4734_s1 + $0x18] sm:$0xff]  ;;  %v1796_v43 = vld [vmem:[%s4734_s1 + $0x28] sm:$0xff]  ;;  %v5097_v22 = vmov 0  ;;  %v5101_v41 = vmov 0 }
   0x3   :  { %v1775_v34 = vld [vmem:[%s4734_s1 + $0x20] sm:$0xff]  ;;  %v1817_v52 = vld [vmem:[%s4734_s1 + $0x30] sm:$0xff]  ;;  %v1838_v61 = vld [vmem:[%s4734_s1 + $0x38] sm:$0xff] }
   0x4   :  { %5037 = vst [vmem:[#allocation2_spill] sm:$0xff] %v1690_v3  ;;  %v1693_v4 = vsub.s32 0, %v1690_v3  ;;  %v1696_v5 = vsub.s32 1, %v1690_v3  ;;  %v1704_v7 = vsub.s32 2, %v1690_v3  ;;  %v1707_v8 = vsub.s32 3, %v1690_v3  ;;  %v1851_v0 = vld [vmem:[%s4735_s0] sm:$0xff] }
   0x5   :  { %v1710_v9 = vsub.s32 4, %v1690_v3  ;;  %v1713_v10 = vsub.s32 5, %v1690_v3  ;;  %v1716_v11 = vsub.s32 6, %v1690_v3  ;;  %v1719_v12 = vsub.s32 7, %v1690_v3  ;;  %5038 = vst [vmem:[#allocation3_spill] sm:$0xff] %v1851_v0  ;;  %v1864_v2 = vld [vmem:[%s4735_s0 + $0x8] sm:$0xff] }
   0x6   :  { %v30_v14 = vrot.slane %v1701_v6, %v1693_v4  ;;  %v34_v15 = vrot.slane %v1701_v6, %v1696_v5  ;;  %v38_v17 = vrot.slane %v1701_v6, %v1704_v7  ;;  %v42_v18 = vrot.slane %v1701_v6, %v1707_v8  ;;  %5039 = vst [vmem:[#allocation4_spill] sm:$0xff] %v1864_v2  ;;  %v1869_v59 = vld [vmem:[%s4735_s0 + $0x10] sm:$0xff]  ;;  %v1874_v62 = vld [vmem:[%s4735_s0 + $0x18] sm:$0xff]  ;;  %v1879_v63 = vld [vmem:[%s4735_s0 + $0x20] sm:$0xff] }
   0x7   :  { %v46_v19 = vrot.slane %v1701_v6, %v1710_v9  ;;  %v50_v20 = vrot.slane %v1701_v6, %v1713_v10  ;;  %v54_v21 = vrot.slane %v1701_v6, %v1716_v11  ;;  %5040 = vst [vmem:[#allocation5_spill] sm:$0xff] %v1869_v59  ;;  %5041 = vst [vmem:[#allocation6_spill] sm:$0xff] %v1874_v62  ;;  %v1892_v56 = vld [vmem:[%s4735_s0 + $0x28] sm:$0xff]  ;;  %v1897_v55 = vld [vmem:[%s4735_s0 + $0x30] sm:$0xff]  ;;  %v5109_v3 = vmov 0 }
   0x8   :  { %5042 = vst [vmem:[#allocation7_spill] sm:$0xff] %v1879_v63  ;;  %5043 = vst [vmem:[#allocation8_spill] sm:$0xff] %v1892_v56  ;;  %v1902_v60 = vld [vmem:[%s4735_s0 + $0x38] sm:$0xff]  ;;  %v1915_v53 = vld [vmem:[%s4735_s0 + $0x40] sm:$0xff]  ;;  %v5237_v56 = vmov 0  ;;  %v5241_v63 = vmov 0 }
   0x9   :  { %5044 = vst [vmem:[#allocation9_spill] sm:$0xff] %v1897_v55  ;;  %5045 = vst [vmem:[#allocation10_spill] sm:$0xff] %v1902_v60  ;;  %v1920_v51 = vld [vmem:[%s4735_s0 + $0x48] sm:$0xff]  ;;  %v1925_v57 = vld [vmem:[%s4735_s0 + $0x50] sm:$0xff]  ;;  %v5225_v60 = vmov 0  ;;  %v5229_v55 = vmov 0 }
   0xa   :  { %5046 = vst [vmem:[#allocation11_spill] sm:$0xff] %v1915_v53  ;;  %5047 = vst [vmem:[#allocation12_spill] sm:$0xff] %v1920_v51  ;;  %v1938_v49 = vld [vmem:[%s4735_s0 + $0x58] sm:$0xff]  ;;  %v1943_v48 = vld [vmem:[%s4735_s0 + $0x60] sm:$0xff]  ;;  %v5217_v51 = vmov 0  ;;  %v5221_v53 = vmov 0 }
   0xb   :  { %5048 = vst [vmem:[#allocation13_spill] sm:$0xff] %v1925_v57  ;;  %5049 = vst [vmem:[#allocation14_spill] sm:$0xff] %v1938_v49  ;;  %v1948_v54 = vld [vmem:[%s4735_s0 + $0x68] sm:$0xff]  ;;  %v1957_v1 = vld [vmem:[%s4735_s0 + $0x70] sm:$0xff]  ;;  %v5209_v49 = vmov 0  ;;  %v5213_v57 = vmov 0 }
   0xc   :  { %5050 = vst [vmem:[#allocation15_spill] sm:$0xff] %v1943_v48  ;;  %5051 = vst [vmem:[#allocation16_spill] sm:$0xff] %v1948_v54  ;;  %v1962_v47 = vld [vmem:[%s4735_s0 + $0x78] sm:$0xff]  ;;  %v1967_v46 = vld [vmem:[%s4735_s0 + $0x80] sm:$0xff]  ;;  %v5197_v54 = vmov 0  ;;  %v5205_v48 = vmov 0 }
   0xd   :  { %5052 = vst [vmem:[#allocation17_spill] sm:$0xff] %v1957_v1  ;;  %5053 = vst [vmem:[#allocation18_spill] sm:$0xff] %v1962_v47  ;;  %v1974_v50 = vld [vmem:[%s4735_s0 + $0x88] sm:$0xff]  ;;  %v1979_v45 = vld [vmem:[%s4735_s0 + $0x90] sm:$0xff]  ;;  %v5189_v47 = vmov 0  ;;  %v5193_v1 = vmov 0 }
   0xe   :  { %5054 = vst [vmem:[#allocation19_spill] sm:$0xff] %v1967_v46  ;;  %5055 = vst [vmem:[#allocation20_spill] sm:$0xff] %v1974_v50  ;;  %v1984_v44 = vld [vmem:[%s4735_s0 + $0x98] sm:$0xff]  ;;  %v1997_v39 = vld [vmem:[%s4735_s0 + $0xa0] sm:$0xff]  ;;  %v5181_v50 = vmov 0  ;;  %v5185_v46 = vmov 0 }
   0xf   :  { %5056 = vst [vmem:[#allocation21_spill] sm:$0xff] %v1979_v45  ;;  %5057 = vst [vmem:[#allocation22_spill] sm:$0xff] %v1984_v44  ;;  %v2002_v38 = vld [vmem:[%s4735_s0 + $0xa8] sm:$0xff]  ;;  %v2007_v58 = vld [vmem:[%s4735_s0 + $0xb0] sm:$0xff]  ;;  %v5173_v44 = vmov 0  ;;  %v5177_v45 = vmov 0 }
  0x10   :  { %5058 = vst [vmem:[#allocation23_spill] sm:$0xff] %v1997_v39  ;;  %5059 = vst [vmem:[#allocation24_spill] sm:$0xff] %v2002_v38  ;;  %v2020_v36 = vld [vmem:[%s4735_s0 + $0xb8] sm:$0xff]  ;;  %v2025_v35 = vld [vmem:[%s4735_s0 + $0xc0] sm:$0xff]  ;;  %v5161_v38 = vmov 0  ;;  %v5165_v39 = vmov 0 }
  0x11   :  { %5060 = vst [vmem:[#allocation25_spill] sm:$0xff] %v2007_v58  ;;  %5061 = vst [vmem:[#allocation26_spill] sm:$0xff] %v2020_v36  ;;  %v2030_v40 = vld [vmem:[%s4735_s0 + $0xc8] sm:$0xff]  ;;  %v2043_v32 = vld [vmem:[%s4735_s0 + $0xd0] sm:$0xff]  ;;  %v5153_v36 = vmov 0  ;;  %v5157_v58 = vmov 0 }
  0x12   :  { %5062 = vst [vmem:[#allocation27_spill] sm:$0xff] %v2025_v35  ;;  %5063 = vst [vmem:[#allocation28_spill] sm:$0xff] %v2030_v40  ;;  %v2048_v31 = vld [vmem:[%s4735_s0 + $0xd8] sm:$0xff]  ;;  %v2053_v37 = vld [vmem:[%s4735_s0 + $0xe0] sm:$0xff]  ;;  %v5145_v40 = vmov 0  ;;  %v5149_v35 = vmov 0 }
  0x13   :  { %5064 = vst [vmem:[#allocation29_spill] sm:$0xff] %v2043_v32  ;;  %5065 = vst [vmem:[#allocation30_spill] sm:$0xff] %v2048_v31  ;;  %v2066_v29 = vld [vmem:[%s4735_s0 + $0xe8] sm:$0xff]  ;;  %v2071_v28 = vld [vmem:[%s4735_s0 + $0xf0] sm:$0xff]  ;;  %v5133_v31 = vmov 0  ;;  %v5141_v32 = vmov 0 }
  0x14   :  { %5066 = vst [vmem:[#allocation31_spill] sm:$0xff] %v2053_v37  ;;  %5067 = vst [vmem:[#allocation32_spill] sm:$0xff] %v2066_v29  ;;  %v2076_v33 = vld [vmem:[%s4735_s0 + $0xf8] sm:$0xff]  ;;  %v5125_v29 = vmov 0  ;;  %v5129_v37 = vmov 0  ;;  %v5245_v62 = vmov 0 }
  0x15   :  { %5068 = vst [vmem:[#allocation33_spill] sm:$0xff] %v2071_v28  ;;  %5069 = vst [vmem:[#allocation34_spill] sm:$0xff] %v2076_v33  ;;  %v5117_v33 = vmov 0  ;;  %v5121_v28 = vmov 0  ;;  %v5249_v59 = vmov 0 }
  0x7d   :  { %v2086_v26 = vpop.permute.xlu0 %284 }
  0x7e   :  { %vm2114_vm0 = vcmp.eq.s32.totalorder %v30_v14, %v2086_v26  ;;  %vm2122_vm1 = vcmp.eq.s32.totalorder %v34_v15, %v2086_v26  ;;  %vm2130_vm2 = vcmp.eq.s32.totalorder %v38_v17, %v2086_v26  ;;  %v1659_v14 = vmov 1966171168  }
  0x7f   :  { %v5071_v27 = vsel %vm2114_vm0, 4294967295, %v5070_v27  ;;  %v5074_v23 = vsel %vm2122_vm1, 4294967295, %v5073_v23  ;;  %v5077_v30 = vsel %vm2130_vm2, 4294967295, %v5076_v30  ;;  %v2134_v42 = vunpack.c.l.s4 %v1659_v14 }
  0x80   :  { %5072 = vst [vmem:[#allocation35_spill] sm:$0xff] %v5071_v27  ;;  %5075 = vst [vmem:[#allocation36_spill] sm:$0xff] %v5074_v23  ;;  %vm2140_vm3 = vcmp.eq.s32.totalorder %v42_v18, %v2086_v26  ;;  %v5080_v15 = vmov 0  ;;  %vm2148_vm4 = vcmp.eq.s32.totalorder %v46_v19, %v2086_v26  ;;  %v5083_v17 = vmov 0 }
  0x81   :  { %5078 = vst [vmem:[#allocation37_spill] sm:$0xff] %v5077_v30  ;;  %5079 = vst [vmem:[#allocation38_spill] sm:$0xff] %v2134_v42  ;;  %v5081_v15 = vsel %vm2140_vm3, 4294967295, %v5080_v15  ;;  %v5084_v17 = vsel %vm2148_vm4, 4294967295, %v5083_v17  ;;  %vm2156_vm5 = vcmp.eq.s32.totalorder %v50_v20, %v2086_v26  ;;  %v5086_v14 = vmov 0 }
  0x82   :  { %5082 = vst [vmem:[#allocation39_spill] sm:$0xff] %v5081_v15  ;;  %5085 = vst [vmem:[#allocation40_spill] sm:$0xff] %v5084_v17  ;;  %v5087_v14 = vsel %vm2156_vm5, 4294967295, %v5086_v14  ;;  %vm2164_vm6 = vcmp.eq.s32.totalorder %v54_v21, %v2086_v26  ;;  %v5089_v18 = vmov 0  ;;  %v5092_v19 = vrot.slane %v1701_v6, %v1719_v12 }
  0x83   :  { %5088 = vst [vmem:[#allocation41_spill] sm:$0xff] %v5087_v14  ;;  %v5090_v18 = vsel %vm2164_vm6, 4294967295, %v5089_v18  ;;  %v5096_v20 = vrot.slane %v1724_v13, %v1693_v4  ;;  %v5100_v21 = vrot.slane %v1724_v13, %v1696_v5  ;;  %v5104_v6 = vrot.slane %v1724_v13, %v1704_v7 }
  0x84   :  { %5091 = vst [vmem:[#allocation42_spill] sm:$0xff] %v5090_v18  ;;  %vm2172_vm7 = vcmp.eq.s32.totalorder %v5092_v19, %v2086_v26  ;;  %v5105_v19 = vmov 0  ;;  %v5113_v42 = vmov 0  ;;  %v5258_v27 = vrot.slane %v1817_v52, %v1693_v4 }
  0x85   :  { %v5094_v24 = vsel %vm2172_vm7, 4294967295, %v5093_v24  ;;  %vm2180_vm8 = vcmp.eq.s32.totalorder %v5096_v20, %v2086_v26  ;;  %vm2188_vm9 = vcmp.eq.s32.totalorder %v5100_v21, %v2086_v26  ;;  %vm2196_vm10 = vcmp.eq.s32.totalorder %v5104_v6, %v2086_v26 }
  0x86   :  { %5095 = vst [vmem:[#allocation43_spill] sm:$0xff] %v5094_v24  ;;  %v5098_v22 = vsel %vm2180_vm8, 4294967295, %v5097_v22  ;;  %v5102_v41 = vsel %vm2188_vm9, 4294967295, %v5101_v41  ;;  %v5106_v19 = vsel %vm2196_vm10, 4294967295, %v5105_v19  ;;  %v5108_v20 = vrot.slane %v1724_v13, %v1707_v8 }
  0x87   :  { %5099 = vst [vmem:[#allocation44_spill] sm:$0xff] %v5098_v22  ;;  %5103 = vst [vmem:[#allocation45_spill] sm:$0xff] %v5102_v41  ;;  %v5112_v21 = vrot.slane %v1724_v13, %v1710_v9  ;;  %v5116_v6 = vrot.slane %v1724_v13, %v1713_v10  ;;  %v5259_v23 = vmov 0  ;;  %v5263_v30 = vmov 0 }
  0x88   :  { %5107 = vst [vmem:[#allocation46_spill] sm:$0xff] %v5106_v19  ;;  %vm2204_vm11 = vcmp.eq.s32.totalorder %v5108_v20, %v2086_v26  ;;  %v5120_v20 = vrot.slane %v1724_v13, %v1716_v11  ;;  %v5275_v15 = vrot.slane %v1817_v52, %v1707_v8  ;;  %v5279_v17 = vrot.slane %v1817_v52, %v1710_v9 }
  0x89   :  { %v5110_v3 = vsel %vm2204_vm11, 4294967295, %v5109_v3  ;;  %vm2212_vm12 = vcmp.eq.s32.totalorder %v5112_v21, %v2086_v26  ;;  %vm2220_vm13 = vcmp.eq.s32.totalorder %v5116_v6, %v2086_v26  ;;  %v5124_v21 = vrot.slane %v1724_v13, %v1719_v12 }
  0x8a   :  { %5111 = vst [vmem:[#allocation47_spill] sm:$0xff] %v5110_v3  ;;  %v5114_v42 = vsel %vm2212_vm12, 4294967295, %v5113_v42  ;;  %v5118_v33 = vsel %vm2220_vm13, 4294967295, %v5117_v33  ;;  %vm2228_vm14 = vcmp.eq.s32.totalorder %v5120_v20, %v2086_v26  ;;  %v5128_v6 = vrot.slane %v1733_v16, %v1693_v4 }
  0x8b   :  { %5115 = vst [vmem:[#allocation48_spill] sm:$0xff] %v5114_v42  ;;  %5119 = vst [vmem:[#allocation49_spill] sm:$0xff] %v5118_v33  ;;  %v5122_v28 = vsel %vm2228_vm14, 4294967295, %v5121_v28  ;;  %vm2236_vm15 = vcmp.eq.s32.totalorder %v5124_v21, %v2086_v26  ;;  %v5132_v20 = vrot.slane %v1733_v16, %v1696_v5  ;;  %v5136_v13 = vrot.slane %v1733_v16, %v1704_v7 }
  0x8c   :  { %5123 = vst [vmem:[#allocation50_spill] sm:$0xff] %v5122_v28  ;;  %v5126_v29 = vsel %vm2236_vm15, 4294967295, %v5125_v29  ;;  %vm2244_vm13 = vcmp.eq.s32.totalorder %v5128_v6, %v2086_v26  ;;  %v5137_v21 = vmov 0  ;;  %v5140_v6 = vrot.slane %v1733_v16, %v1707_v8 }
  0x8d   :  { %5127 = vst [vmem:[#allocation51_spill] sm:$0xff] %v5126_v29  ;;  %v5130_v37 = vsel %vm2244_vm13, 4294967295, %v5129_v37  ;;  %vm2252_vm14 = vcmp.eq.s32.totalorder %v5132_v20, %v2086_v26  ;;  %vm2260_vm15 = vcmp.eq.s32.totalorder %v5136_v13, %v2086_v26  ;;  %v5144_v20 = vrot.slane %v1733_v16, %v1710_v9 }
  0x8e   :  { %5131 = vst [vmem:[#allocation52_spill] sm:$0xff] %v5130_v37  ;;  %v5134_v31 = vsel %vm2252_vm14, 4294967295, %v5133_v31  ;;  %v5138_v21 = vsel %vm2260_vm15, 4294967295, %v5137_v21  ;;  %vm2268_vm13 = vcmp.eq.s32.totalorder %v5140_v6, %v2086_v26  ;;  %v5148_v13 = vrot.slane %v1733_v16, %v1713_v10 }
  0x8f   :  { %5135 = vst [vmem:[#allocation53_spill] sm:$0xff] %v5134_v31  ;;  %5139 = vst [vmem:[#allocation54_spill] sm:$0xff] %v5138_v21  ;;  %v5142_v32 = vsel %vm2268_vm13, 4294967295, %v5141_v32  ;;  %vm2276_vm14 = vcmp.eq.s32.totalorder %v5144_v20, %v2086_v26  ;;  %v5152_v6 = vrot.slane %v1733_v16, %v1716_v11  ;;  %v5156_v20 = vrot.slane %v1733_v16, %v1719_v12 }
  0x90   :  { %5143 = vst [vmem:[#allocation55_spill] sm:$0xff] %v5142_v32  ;;  %v5146_v40 = vsel %vm2276_vm14, 4294967295, %v5145_v40  ;;  %vm2284_vm15 = vcmp.eq.s32.totalorder %v5148_v13, %v2086_v26  ;;  %v5160_v13 = vrot.slane %v1754_v25, %v1693_v4  ;;  %v5168_v16 = vrot.slane %v1754_v25, %v1704_v7 }
  0x91   :  { %5147 = vst [vmem:[#allocation56_spill] sm:$0xff] %v5146_v40  ;;  %v5150_v35 = vsel %vm2284_vm15, 4294967295, %v5149_v35  ;;  %vm2292_vm13 = vcmp.eq.s32.totalorder %v5152_v6, %v2086_v26  ;;  %vm2300_vm14 = vcmp.eq.s32.totalorder %v5156_v20, %v2086_v26  ;;  %v5164_v6 = vrot.slane %v1754_v25, %v1696_v5 }
  0x92   :  { %5151 = vst [vmem:[#allocation57_spill] sm:$0xff] %v5150_v35  ;;  %v5154_v36 = vsel %vm2292_vm13, 4294967295, %v5153_v36  ;;  %v5158_v58 = vsel %vm2300_vm14, 4294967295, %v5157_v58  ;;  %vm2308_vm15 = vcmp.eq.s32.totalorder %v5160_v13, %v2086_v26  ;;  %vm2324_vm14 = vcmp.eq.s32.totalorder %v5168_v16, %v2086_v26 }
  0x93   :  { %5155 = vst [vmem:[#allocation58_spill] sm:$0xff] %v5154_v36  ;;  %5159 = vst [vmem:[#allocation59_spill] sm:$0xff] %v5158_v58  ;;  %v5162_v38 = vsel %vm2308_vm15, 4294967295, %v5161_v38  ;;  %vm2316_vm13 = vcmp.eq.s32.totalorder %v5164_v6, %v2086_v26  ;;  %v5169_v20 = vmov 0  ;;  %v5172_v13 = vrot.slane %v1754_v25, %v1707_v8 }
  0x94   :  { %5163 = vst [vmem:[#allocation60_spill] sm:$0xff] %v5162_v38  ;;  %v5166_v39 = vsel %vm2316_vm13, 4294967295, %v5165_v39  ;;  %v5170_v20 = vsel %vm2324_vm14, 4294967295, %v5169_v20  ;;  %v5176_v6 = vrot.slane %v1754_v25, %v1710_v9  ;;  %v5180_v16 = vrot.slane %v1754_v25, %v1713_v10 }
  0x95   :  { %5167 = vst [vmem:[#allocation61_spill] sm:$0xff] %v5166_v39  ;;  %5171 = vst [vmem:[#allocation62_spill] sm:$0xff] %v5170_v20  ;;  %vm2332_vm15 = vcmp.eq.s32.totalorder %v5172_v13, %v2086_v26  ;;  %v5184_v13 = vrot.slane %v1754_v25, %v1716_v11  ;;  %v5280_v14 = vmov 0  ;;  %v5283_v18 = vrot.slane %v1817_v52, %v1713_v10 }
  0x96   :  { %v5174_v44 = vsel %vm2332_vm15, 4294967295, %v5173_v44  ;;  %vm2340_vm13 = vcmp.eq.s32.totalorder %v5176_v6, %v2086_v26  ;;  %vm2348_vm14 = vcmp.eq.s32.totalorder %v5180_v16, %v2086_v26  ;;  %v5188_v6 = vrot.slane %v1754_v25, %v1719_v12 }
  0x97   :  { %5175 = vst [vmem:[#allocation63_spill] sm:$0xff] %v5174_v44  ;;  %v5178_v45 = vsel %vm2340_vm13, 4294967295, %v5177_v45  ;;  %v5182_v50 = vsel %vm2348_vm14, 4294967295, %v5181_v50  ;;  %vm2356_vm15 = vcmp.eq.s32.totalorder %v5184_v13, %v2086_v26  ;;  %v5192_v16 = vrot.slane %v1775_v34, %v1693_v4 }
  0x98   :  { %5179 = vst [vmem:[#allocation64_spill] sm:$0xff] %v5178_v45  ;;  %5183 = vst [vmem:[#allocation65_spill] sm:$0xff] %v5182_v50  ;;  %v5186_v46 = vsel %vm2356_vm15, 4294967295, %v5185_v46  ;;  %vm2364_vm13 = vcmp.eq.s32.totalorder %v5188_v6, %v2086_v26  ;;  %v5196_v13 = vrot.slane %v1775_v34, %v1696_v5  ;;  %v5200_v25 = vrot.slane %v1775_v34, %v1704_v7 }
  0x99   :  { %5187 = vst [vmem:[#allocation66_spill] sm:$0xff] %v5186_v46  ;;  %v5190_v47 = vsel %vm2364_vm13, 4294967295, %v5189_v47  ;;  %vm2372_vm14 = vcmp.eq.s32.totalorder %v5192_v16, %v2086_v26  ;;  %v5201_v6 = vmov 0  ;;  %v5204_v16 = vrot.slane %v1775_v34, %v1707_v8 }
  0x9a   :  { %5191 = vst [vmem:[#allocation67_spill] sm:$0xff] %v5190_v47  ;;  %v5194_v1 = vsel %vm2372_vm14, 4294967295, %v5193_v1  ;;  %vm2380_vm15 = vcmp.eq.s32.totalorder %v5196_v13, %v2086_v26  ;;  %vm2388_vm13 = vcmp.eq.s32.totalorder %v5200_v25, %v2086_v26  ;;  %v5208_v13 = vrot.slane %v1775_v34, %v1710_v9 }
  0x9b   :  { %5195 = vst [vmem:[#allocation68_spill] sm:$0xff] %v5194_v1  ;;  %v5198_v54 = vsel %vm2380_vm15, 4294967295, %v5197_v54  ;;  %v5202_v6 = vsel %vm2388_vm13, 4294967295, %v5201_v6  ;;  %vm2396_vm14 = vcmp.eq.s32.totalorder %v5204_v16, %v2086_v26  ;;  %v5212_v25 = vrot.slane %v1775_v34, %v1713_v10 }
  0x9c   :  { %5199 = vst [vmem:[#allocation69_spill] sm:$0xff] %v5198_v54  ;;  %5203 = vst [vmem:[#allocation70_spill] sm:$0xff] %v5202_v6  ;;  %v5206_v48 = vsel %vm2396_vm14, 4294967295, %v5205_v48  ;;  %vm2404_vm15 = vcmp.eq.s32.totalorder %v5208_v13, %v2086_v26  ;;  %v5216_v16 = vrot.slane %v1775_v34, %v1716_v11  ;;  %v5220_v13 = vrot.slane %v1775_v34, %v1719_v12 }
  0x9d   :  { %5207 = vst [vmem:[#allocation71_spill] sm:$0xff] %v5206_v48  ;;  %v5210_v49 = vsel %vm2404_vm15, 4294967295, %v5209_v49  ;;  %vm2412_vm13 = vcmp.eq.s32.totalorder %v5212_v25, %v2086_v26  ;;  %v5224_v25 = vrot.slane %v1796_v43, %v1693_v4  ;;  %v5232_v34 = vrot.slane %v1796_v43, %v1704_v7 }
  0x9e   :  { %5211 = vst [vmem:[#allocation72_spill] sm:$0xff] %v5210_v49  ;;  %v5214_v57 = vsel %vm2412_vm13, 4294967295, %v5213_v57  ;;  %vm2420_vm14 = vcmp.eq.s32.totalorder %v5216_v16, %v2086_v26  ;;  %vm2428_vm15 = vcmp.eq.s32.totalorder %v5220_v13, %v2086_v26  ;;  %v5228_v16 = vrot.slane %v1796_v43, %v1696_v5 }
  0x9f   :  { %5215 = vst [vmem:[#allocation73_spill] sm:$0xff] %v5214_v57  ;;  %v5218_v51 = vsel %vm2420_vm14, 4294967295, %v5217_v51  ;;  %v5222_v53 = vsel %vm2428_vm15, 4294967295, %v5221_v53  ;;  %vm2436_vm13 = vcmp.eq.s32.totalorder %v5224_v25, %v2086_v26  ;;  %vm2452_vm15 = vcmp.eq.s32.totalorder %v5232_v34, %v2086_v26 }
  0xa0   :  { %5219 = vst [vmem:[#allocation74_spill] sm:$0xff] %v5218_v51  ;;  %5223 = vst [vmem:[#allocation75_spill] sm:$0xff] %v5222_v53  ;;  %v5226_v60 = vsel %vm2436_vm13, 4294967295, %v5225_v60  ;;  %vm2444_vm14 = vcmp.eq.s32.totalorder %v5228_v16, %v2086_v26  ;;  %v5233_v13 = vmov 0  ;;  %v5236_v25 = vrot.slane %v1796_v43, %v1707_v8 }
  0xa1   :  { %5227 = vst [vmem:[#allocation76_spill] sm:$0xff] %v5226_v60  ;;  %v5230_v55 = vsel %vm2444_vm14, 4294967295, %v5229_v55  ;;  %v5234_v13 = vsel %vm2452_vm15, 4294967295, %v5233_v13  ;;  %v5240_v16 = vrot.slane %v1796_v43, %v1710_v9  ;;  %v5244_v34 = vrot.slane %v1796_v43, %v1713_v10 }
  0xa2   :  { %5231 = vst [vmem:[#allocation77_spill] sm:$0xff] %v5230_v55  ;;  %5235 = vst [vmem:[#allocation78_spill] sm:$0xff] %v5234_v13  ;;  %vm2460_vm13 = vcmp.eq.s32.totalorder %v5236_v25, %v2086_v26  ;;  %v5248_v25 = vrot.slane %v1796_v43, %v1716_v11  ;;  %v5293_v24 = vrot.slane %v1817_v52, %v1719_v12  ;;  %v5298_v41 = vmov 0 }
  0xa3   :  { %v5238_v56 = vsel %vm2460_vm13, 4294967295, %v5237_v56  ;;  %vm2468_vm14 = vcmp.eq.s32.totalorder %v5240_v16, %v2086_v26  ;;  %vm2476_vm15 = vcmp.eq.s32.totalorder %v5244_v34, %v2086_v26  ;;  %v4845_v16 = vmov 0.0  }
  0xa4   :  { %5239 = vst [vmem:[#allocation79_spill] sm:$0xff] %v5238_v56  ;;  %v5242_v63 = vsel %vm2468_vm14, 4294967295, %v5241_v63  ;;  %v5246_v62 = vsel %vm2476_vm15, 4294967295, %v5245_v62  ;;  %vm2484_vm13 = vcmp.eq.s32.totalorder %v5248_v25, %v2086_v26  ;;  %v2491_v2 = vsel %vm2114_vm0, 1.0, %v4845_v16 }
  0xa5   :  { %5243 = vst [vmem:[#allocation80_spill] sm:$0xff] %v5242_v63  ;;  %5247 = vst [vmem:[#allocation81_spill] sm:$0xff] %v5246_v62  ;;  %v5250_v59 = vsel %vm2484_vm13, 4294967295, %v5249_v59  ;;  %v2496_v34 = vsel %vm2122_vm1, 1.0, %v4845_v16  ;;  %v2501_v0 = vsel %vm2130_vm2, 1.0, %v4845_v16  ;;  %v5254_v25 = vrot.slane %v1796_v43, %v1719_v12 }
  0xa6   :  { %5251 = vst [vmem:[#allocation82_spill] sm:$0xff] %v5250_v59  ;;  %5252 = vst [vmem:[#allocation83_spill] sm:$0xff] %v2496_v34  ;;  %v5255_v59 = vmov 0  ;;  %vm2515_vm0 = vcmp.eq.s32.totalorder %v5258_v27, %v2086_v26  ;;  %v5262_v16 = vrot.slane %v1817_v52, %v1696_v5  ;;  %v5266_v43 = vrot.slane %v1817_v52, %v1704_v7 }
  0xa7   :  { %5253 = vst [vmem:[#allocation84_spill] sm:$0xff] %v2501_v0  ;;  %vm2507_vm13 = vcmp.eq.s32.totalorder %v5254_v25, %v2086_v26  ;;  %v5260_v23 = vsel %vm2515_vm0, 4294967295, %v5259_v23  ;;  %v5267_v25 = vmov 0  ;;  %v5270_v27 = vmov 0.0  }
  0xa8   :  { %v5256_v59 = vsel %vm2507_vm13, 4294967295, %v5255_v59  ;;  %5261 = vst [vmem:[#allocation86_spill] sm:$0xff] %v5260_v23  ;;  %vm2523_vm2 = vcmp.eq.s32.totalorder %v5262_v16, %v2086_v26  ;;  %vm2531_vm1 = vcmp.eq.s32.totalorder %v5266_v43, %v2086_v26  ;;  %v2538_v0 = vsel %vm2140_vm3, 1.0, %v5270_v27 }
  0xa9   :  { %5257 = vst [vmem:[#allocation85_spill] sm:$0xff] %v5256_v59  ;;  %v5264_v30 = vsel %vm2523_vm2, 4294967295, %v5263_v30  ;;  %v5268_v25 = vsel %vm2531_vm1, 4294967295, %v5267_v25  ;;  %5271 = vst [vmem:[#allocation89_spill] sm:$0xff] %v2538_v0  ;;  %v2543_v16 = vsel %vm2148_vm4, 1.0, %v5270_v27  ;;  %v2548_v34 = vsel %vm2156_vm5, 1.0, %v5270_v27 }
  0xaa   :  { %5265 = vst [vmem:[#allocation87_spill] sm:$0xff] %v5264_v30  ;;  %5269 = vst [vmem:[#allocation88_spill] sm:$0xff] %v5268_v25  ;;  %v2553_v43 = vsel %vm2164_vm6, 1.0, %v5270_v27  ;;  %vm2559_vm3 = vcmp.eq.s32.totalorder %v5275_v15, %v2086_v26  ;;  %v5276_v0 = vmov 0  ;;  %vm2567_vm4 = vcmp.eq.s32.totalorder %v5279_v17, %v2086_v26 }
  0xab   :  { %5272 = vst [vmem:[#allocation90_spill] sm:$0xff] %v2543_v16  ;;  %5273 = vst [vmem:[#allocation91_spill] sm:$0xff] %v2548_v34  ;;  %v5277_v0 = vsel %vm2559_vm3, 4294967295, %v5276_v0  ;;  %v5281_v14 = vsel %vm2567_vm4, 4294967295, %v5280_v14  ;;  %vm2575_vm6 = vcmp.eq.s32.totalorder %v5283_v18, %v2086_v26  ;;  %v5287_v15 = vrot.slane %v1817_v52, %v1716_v11 }
  0xac   :  { %5274 = vst [vmem:[#allocation92_spill] sm:$0xff] %v2553_v43  ;;  %5278 = vst [vmem:[#allocation93_spill] sm:$0xff] %v5277_v0  ;;  %v5284_v43 = vmov 0  ;;  %v5288_v34 = vmov 0  ;;  %v2590_v17 = vsel %vm2172_vm7, 1.0, %v5270_v27  ;;  %v2595_v18 = vsel %vm2180_vm8, 1.0, %v5270_v27 }
  0xad   :  { %5282 = vst [vmem:[#allocation94_spill] sm:$0xff] %v5281_v14  ;;  %v5285_v43 = vsel %vm2575_vm6, 4294967295, %v5284_v43  ;;  %vm2583_vm5 = vcmp.eq.s32.totalorder %v5287_v15, %v2086_v26  ;;  %5291 = vst [vmem:[#allocation97_spill] sm:$0xff] %v2590_v17  ;;  %v2600_v16 = vsel %vm2188_vm9, 1.0, %v5270_v27  ;;  %v2605_v15 = vsel %vm2196_vm10, 1.0, %v5270_v27 }
  0xae   :  { %5286 = vst [vmem:[#allocation95_spill] sm:$0xff] %v5285_v43  ;;  %v5289_v34 = vsel %vm2583_vm5, 4294967295, %v5288_v34  ;;  %5292 = vst [vmem:[#allocation98_spill] sm:$0xff] %v2605_v15  ;;  %vm2611_vm7 = vcmp.eq.s32.totalorder %v5293_v24, %v2086_v26  ;;  %v5294_v17 = vmov 0  ;;  %v5297_v22 = vrot.slane %v1838_v61, %v1693_v4 }
  0xaf   :  { %5290 = vst [vmem:[#allocation96_spill] sm:$0xff] %v5289_v34  ;;  %v5295_v17 = vsel %vm2611_vm7, 4294967295, %v5294_v17  ;;  %v5301_v19 = vrot.slane %v1838_v61, %v1696_v5  ;;  %v5302_v15 = vmov 0  ;;  %v5305_v24 = vrot.slane %v1838_v61, %v1704_v7 }
  0xb0   :  { %5296 = vst [vmem:[#allocation99_spill] sm:$0xff] %v5295_v17  ;;  %vm2619_vm8 = vcmp.eq.s32.totalorder %v5297_v22, %v2086_v26  ;;  %v5306_v52 = vmov 0  ;;  %v2642_v4 = vsel %vm2204_vm11, 1.0, %v5270_v27  ;;  %v2647_v5 = vsel %vm2212_vm12, 1.0, %v5270_v27 }
  0xb1   :  { %v5299_v41 = vsel %vm2619_vm8, 4294967295, %v5298_v41  ;;  %vm2627_vm10 = vcmp.eq.s32.totalorder %v5301_v19, %v2086_v26  ;;  %vm2635_vm9 = vcmp.eq.s32.totalorder %v5305_v24, %v2086_v26  ;;  %vm5310_vm8 = vnez %v5122_v28 }
  0xb2   :  { %5300 = vst [vmem:[#allocation100_spill] sm:$0xff] %v5299_v41  ;;  %v5303_v15 = vsel %vm2627_vm10, 4294967295, %v5302_v15  ;;  %v5307_v52 = vsel %vm2635_vm9, 4294967295, %v5306_v52  ;;  %vm5309_vm10 = vnez %v5118_v33  ;;  %v2657_v7 = vsel %vm5310_vm8, 1.0, %v5270_v27 }
  0xb3   :  { %5304 = vst [vmem:[#allocation101_spill] sm:$0xff] %v5303_v15  ;;  %5308 = vst [vmem:[#allocation102_spill] sm:$0xff] %v5307_v52  ;;  %v2652_v22 = vsel %vm5309_vm10, 1.0, %v5270_v27  ;;  %v5311_v19 = vrot.slane %v1838_v61, %v1707_v8  ;;  %v5312_v24 = vmov 0  ;;  %v5315_v42 = vrot.slane %v1838_v61, %v1710_v9 }
  0xb4   :  { %v5316_v33 = vmov 0  ;;  %v5319_v28 = vrot.slane %v1838_v61, %v1713_v10  ;;  %v5320_v3 = vmov 0  ;;  %v5323_v8 = vrot.slane %v1838_v61, %v1716_v11 }
  0xb5   :  { %vm2663_vm11 = vcmp.eq.s32.totalorder %v5311_v19, %v2086_v26  ;;  %vm2671_vm12 = vcmp.eq.s32.totalorder %v5315_v42, %v2086_v26  ;;  %v5324_v19 = vmov 0  ;;  %vm5330_vm9 = vnez %v5138_v21 }
  0xb6   :  { %v5313_v24 = vsel %vm2663_vm11, 4294967295, %v5312_v24  ;;  %v5317_v33 = vsel %vm2671_vm12, 4294967295, %v5316_v33  ;;  %vm2679_vm8 = vcmp.eq.s32.totalorder %v5319_v28, %v2086_v26  ;;  %vm2687_vm10 = vcmp.eq.s32.totalorder %v5323_v8, %v2086_v26 }
  0xb7   :  { %5314 = vst [vmem:[#allocation103_spill] sm:$0xff] %v5313_v24  ;;  %5318 = vst [vmem:[#allocation104_spill] sm:$0xff] %v5317_v33  ;;  %v5321_v3 = vsel %vm2679_vm8, 4294967295, %v5320_v3  ;;  %v5325_v19 = vsel %vm2687_vm10, 4294967295, %v5324_v19  ;;  %vm5327_vm11 = vnez %v5126_v29  ;;  %vm5328_vm12 = vnez %v5130_v37  ;;  %v5382_v29 = vld [vmem:[#allocation83_spill] sm:$0xff] }
  0xb8   :  { %5322 = vst [vmem:[#allocation105_spill] sm:$0xff] %v5321_v3  ;;  %5326 = vst [vmem:[#allocation106_spill] sm:$0xff] %v5325_v19  ;;  %v2694_v9 = vsel %vm5327_vm11, 1.0, %v5270_v27  ;;  %v2699_v10 = vsel %vm5328_vm12, 1.0, %v5270_v27  ;;  %vm5329_vm8 = vnez %v5134_v31  ;;  %v2709_v11 = vsel %vm5330_vm9, 1.0, %v5270_v27 }
  0xb9   :  { %v2704_v28 = vsel %vm5329_vm8, 1.0, %v5270_v27  ;;  %v5331_v42 = vrot.slane %v1838_v61, %v1719_v12  ;;  %v5332_v8 = vmov 0  ;;  %vm5335_vm12 = vnez %v5142_v32 }
  0xba   :  { %v2722_v37 = vsel %vm5335_vm12, 1.0, %v5270_v27  ;;  %vm5336_vm8 = vnez %v5146_v40  ;;  %vm5337_vm9 = vnez %v5150_v35  ;;  %vm5338_vm10 = vnez %v5154_v36  ;;  %v5360_v35 = vld [vmem:[#allocation82_spill] sm:$0xff]  ;;  %v5380_v40 = vld [vmem:[#allocation3_spill] sm:$0xff] }
  0xbb   :  { %vm2715_vm11 = vcmp.eq.s32.totalorder %v5331_v42, %v2086_v26  ;;  %v2727_v31 = vsel %vm5336_vm8, 1.0, %v5270_v27  ;;  %v2732_v21 = vsel %vm5337_vm9, 1.0, %v5270_v27  ;;  %v2737_v12 = vsel %vm5338_vm10, 1.0, %v5270_v27 }
  0xbc   :  { %v5333_v8 = vsel %vm2715_vm11, 4294967295, %v5332_v8  ;;  %vm5339_vm11 = vnez %v5158_v58  ;;  %vm5340_vm12 = vnez %v5162_v38  ;;  %vm5341_vm8 = vnez %v5166_v39 }
  0xbd   :  { %5334 = vst [vmem:[#allocation107_spill] sm:$0xff] %v5333_v8  ;;  %v2742_v26 = vsel %vm5339_vm11, 1.0, %v5270_v27  ;;  %v2747_v61 = vsel %vm5340_vm12, 1.0, %v5270_v27  ;;  %v2752_v42 = vsel %vm5341_vm8, 1.0, %v5270_v27  ;;  %vm5342_vm9 = vnez %v5170_v20 }
  0xbe   :  { %v2757_v36 = vsel %vm5342_vm9, 1.0, %v5270_v27  ;;  %vm5343_vm10 = vnez %v5174_v44  ;;  %vm5344_vm11 = vnez %v5178_v45  ;;  %vm5345_vm12 = vnez %v5182_v50 }
  0xbf   :  { %v2762_v58 = vsel %vm5343_vm10, 1.0, %v5270_v27  ;;  %v2767_v38 = vsel %vm5344_vm11, 1.0, %v5270_v27  ;;  %v2772_v39 = vsel %vm5345_vm12, 1.0, %v5270_v27  ;;  %vm5346_vm8 = vnez %v5186_v46 }
  0xc0   :  { %v2777_v20 = vsel %vm5346_vm8, 1.0, %v5270_v27  ;;  %vm5347_vm9 = vnez %v5190_v47  ;;  %vm5348_vm10 = vnez %v5194_v1  ;;  %vm5349_vm11 = vnez %v5198_v54 }
  0xc1   :  { %v2782_v44 = vsel %vm5347_vm9, 1.0, %v5270_v27  ;;  %v2787_v45 = vsel %vm5348_vm10, 1.0, %v5270_v27  ;;  %v2792_v50 = vsel %vm5349_vm11, 1.0, %v5270_v27  ;;  %vm5350_vm12 = vnez %v5202_v6 }
  0xc2   :  { %v2797_v46 = vsel %vm5350_vm12, 1.0, %v5270_v27  ;;  %vm5351_vm8 = vnez %v5206_v48  ;;  %vm5352_vm9 = vnez %v5210_v49  ;;  %vm5353_vm10 = vnez %v5214_v57 }
  0xc3   :  { %v2802_v47 = vsel %vm5351_vm8, 1.0, %v5270_v27  ;;  %v2807_v1 = vsel %vm5352_vm9, 1.0, %v5270_v27  ;;  %v2812_v54 = vsel %vm5353_vm10, 1.0, %v5270_v27  ;;  %vm5354_vm11 = vnez %v5218_v51 }
  0xc4   :  { %v2817_v6 = vsel %vm5354_vm11, 1.0, %v5270_v27  ;;  %vm5355_vm12 = vnez %v5222_v53  ;;  %vm5356_vm8 = vnez %v5226_v60  ;;  %vm5357_vm9 = vnez %v5230_v55 }
  0xc5   :  { %v2822_v48 = vsel %vm5355_vm12, 1.0, %v5270_v27  ;;  %v2827_v49 = vsel %vm5356_vm8, 1.0, %v5270_v27  ;;  %v2832_v57 = vsel %vm5357_vm9, 1.0, %v5270_v27  ;;  %vm5358_vm10 = vnez %v5234_v13 }
  0xc6   :  { %v2837_v51 = vsel %vm5358_vm10, 1.0, %v5270_v27  ;;  %vm5359_vm11 = vnez %v5238_v56  ;;  %v2847_v60 = vsel %vm2468_vm14, 1.0, %v5270_v27  ;;  %v2852_v55 = vsel %vm2476_vm15, 1.0, %v5270_v27 }
  0xc7   :  { %v2842_v53 = vsel %vm5359_vm11, 1.0, %v5270_v27  ;;  %vm5361_vm9 = vnez %v5360_v35  ;;  %v2862_v56 = vsel %vm2507_vm13, 1.0, %v5270_v27  ;;  %v2867_v63 = vsel %vm2515_vm0, 1.0, %v5270_v27 }
  0xc8   :  { %v2857_v13 = vsel %vm5361_vm9, 1.0, %v5270_v27  ;;  %v2872_v62 = vsel %vm2523_vm2, 1.0, %v5270_v27  ;;  %v2877_v35 = vsel %vm2531_vm1, 1.0, %v5270_v27  ;;  %v2882_v59 = vsel %vm2559_vm3, 1.0, %v5270_v27 }
  0xc9   :  { %v2887_v23 = vsel %vm2567_vm4, 1.0, %v5270_v27  ;;  %v2892_v30 = vsel %vm2575_vm6, 1.0, %v5270_v27  ;;  %v2897_v25 = vsel %vm2583_vm5, 1.0, %v5270_v27  ;;  %v2902_v0 = vsel %vm2611_vm7, 1.0, %v5270_v27 }
  0xca   :  { %5362 = vst [vmem:[#allocation108_spill] sm:$0xff] %v2897_v25  ;;  %5363 = vst [vmem:[#allocation109_spill] sm:$0xff] %v2902_v0  ;;  %vm5364_vm3 = vnez %v5299_v41  ;;  %vm5366_vm4 = vnez %v5303_v15  ;;  %vm5368_vm6 = vnez %v5307_v52  ;;  %vm5370_vm5 = vnez %v5313_v24  ;;  %v5394_v0 = vld [vmem:[#allocation97_spill] sm:$0xff] }
  0xcb   :  { %v2907_v14 = vsel %vm5364_vm3, 1.0, %v5270_v27  ;;  %v2912_v43 = vsel %vm5366_vm4, 1.0, %v5270_v27  ;;  %v2917_v34 = vsel %vm5368_vm6, 1.0, %v5270_v27  ;;  %v2922_v17 = vsel %vm5370_vm5, 1.0, %v5270_v27 }
  0xcc   :  { %5365 = vst [vmem:[#allocation110_spill] sm:$0xff] %v2907_v14  ;;  %5367 = vst [vmem:[#allocation111_spill] sm:$0xff] %v2912_v43  ;;  %vm5372_vm7 = vnez %v5317_v33  ;;  %vm5374_vm3 = vnez %v5321_v3  ;;  %vm5376_vm4 = vnez %v5325_v19  ;;  %vm5378_vm6 = vnez %v5333_v8  ;;  %v5388_v8 = vld [vmem:[#allocation90_spill] sm:$0xff]  ;;  %v5390_v43 = vld [vmem:[#allocation91_spill] sm:$0xff] }
  0xcd   :  { %5369 = vst [vmem:[#allocation112_spill] sm:$0xff] %v2917_v34  ;;  %5371 = vst [vmem:[#allocation113_spill] sm:$0xff] %v2922_v17  ;;  %v2927_v41 = vsel %vm5372_vm7, 1.0, %v5270_v27  ;;  %v2932_v15 = vsel %vm5374_vm3, 1.0, %v5270_v27  ;;  %v2937_v52 = vsel %vm5376_vm4, 1.0, %v5270_v27  ;;  %v2942_v24 = vsel %vm5378_vm6, 1.0, %v5270_v27 }
  0xce   :  { %5373 = vst [vmem:[#allocation114_spill] sm:$0xff] %v2927_v41  ;;  %5375 = vst [vmem:[#allocation115_spill] sm:$0xff] %v2932_v15  ;;  %v606_v33 = vsub.f32 %v2491_v2, %v5380_v40  ;;  %v5381_v32 = vcombine.high %v5380_v40, %v5380_v40  ;;  %v5383_v15 = vld [vmem:[#allocation4_spill] sm:$0xff]  ;;  %v5387_v27 = vld [vmem:[#allocation5_spill] sm:$0xff] }
  0xcf   :  { %5377 = vst [vmem:[#allocation116_spill] sm:$0xff] %v2937_v52  ;;  %5379 = vst [vmem:[#allocation117_spill] sm:$0xff] %v2942_v24  ;;  %v5384_v41 = vld [vmem:[#allocation84_spill] sm:$0xff]  ;;  %v5385_v19 = vcombine.high %v5383_v15, %v5383_v15  ;;  %v5386_v52 = vld [vmem:[#allocation89_spill] sm:$0xff]  ;;  %v610_v24 = vsub.f32 %v5388_v8, %v5387_v27  ;;  %v5389_v2 = vcombine.high %v5387_v27, %v5387_v27 }
  0xd0   :  { %v2950_v3 = vsub.f32 %v5382_v29, %v5381_v32  ;;  %v608_v17 = vsub.f32 %v5384_v41, %v5383_v15  ;;  %v5391_v29 = vld [vmem:[#allocation6_spill] sm:$0xff]  ;;  %v5392_v32 = vld [vmem:[#allocation92_spill] sm:$0xff] }
  0xd1   :  { %v2958_v34 = vsub.f32 %v5386_v52, %v5385_v19  ;;  %v2966_v40 = vsub.f32 %v5390_v43, %v5389_v2  ;;  %v612_v14 = vsub.f32 %v5392_v32, %v5391_v29  ;;  %v5393_v41 = vcombine.high %v5391_v29, %v5391_v29  ;;  %v5395_v52 = vld [vmem:[#allocation7_spill] sm:$0xff]  ;;  %v5397_v43 = vld [vmem:[#allocation8_spill] sm:$0xff]  ;;  %v5398_v2 = vld [vmem:[#allocation98_spill] sm:$0xff] }
  0xd2   :  { %v614_v19 = vsub.f32 %v2595_v18, %v5395_v52  ;;  %v5396_v8 = vcombine.high %v5395_v52, %v5395_v52  ;;  %v616_v25 = vsub.f32 %v5398_v2, %v5397_v43  ;;  %v5399_v32 = vcombine.high %v5397_v43, %v5397_v43 }
  0xd3   :  { %v2974_v15 = vsub.f32 %v5394_v0, %v5393_v41  ;;  %v5400_v0 = vld [vmem:[#allocation9_spill] sm:$0xff] }
  0xd4   :  { %v2982_v27 = vsub.f32 %v2600_v16, %v5396_v8  ;;  %v2990_v29 = vsub.f32 %v2642_v4, %v5399_v32  ;;  %v618_v41 = vsub.f32 %v2647_v5, %v5400_v0  ;;  %v5401_v18 = vcombine.high %v5400_v0, %v5400_v0  ;;  %v5402_v16 = vld [vmem:[#allocation10_spill] sm:$0xff]  ;;  %v5404_v4 = vld [vmem:[#allocation11_spill] sm:$0xff] }
  0xd5   :  { %v620_v8 = vsub.f32 %v2657_v7, %v5402_v16  ;;  %v5403_v2 = vcombine.high %v5402_v16, %v5402_v16  ;;  %v622_v32 = vsub.f32 %v2699_v10, %v5404_v4  ;;  %v5405_v5 = vcombine.high %v5404_v4, %v5404_v4 }
  0xd6   :  { %v2998_v52 = vsub.f32 %v2652_v22, %v5401_v18  ;;  %v5406_v22 = vld [vmem:[#allocation12_spill] sm:$0xff] }
  0xd7   :  { %v3006_v43 = vsub.f32 %v2694_v9, %v5403_v2  ;;  %v3014_v0 = vsub.f32 %v2704_v28, %v5405_v5  ;;  %v624_v18 = vsub.f32 %v2709_v11, %v5406_v22  ;;  %v5407_v7 = vcombine.high %v5406_v22, %v5406_v22  ;;  %v5409_v9 = vld [vmem:[#allocation13_spill] sm:$0xff]  ;;  %v5411_v28 = vld [vmem:[#allocation14_spill] sm:$0xff] }
  0xd8   :  { %v626_v2 = vsub.f32 %v2727_v31, %v5409_v9  ;;  %v5410_v10 = vcombine.high %v5409_v9, %v5409_v9  ;;  %v628_v5 = vsub.f32 %v2737_v12, %v5411_v28  ;;  %v5412_v11 = vcombine.high %v5411_v28, %v5411_v28 }
  0xd9   :  { %v3022_v16 = vsub.f32 %v2722_v37, %v5407_v7  ;;  %v5413_v37 = vld [vmem:[#allocation15_spill] sm:$0xff] }
  0xda   :  { %v3030_v4 = vsub.f32 %v2732_v21, %v5410_v10  ;;  %v3038_v22 = vsub.f32 %v2742_v26, %v5412_v11  ;;  %v630_v7 = vsub.f32 %v2747_v61, %v5413_v37  ;;  %v5414_v31 = vcombine.high %v5413_v37, %v5413_v37  ;;  %v5416_v21 = vld [vmem:[#allocation16_spill] sm:$0xff]  ;;  %v5418_v26 = vld [vmem:[#allocation17_spill] sm:$0xff] }
  0xdb   :  { %5408 = vst [vmem:[#allocation3_spill] sm:$0xff] %v3022_v16  ;;  %v632_v10 = vsub.f32 %v2757_v36, %v5416_v21  ;;  %v5417_v12 = vcombine.high %v5416_v21, %v5416_v21  ;;  %v634_v11 = vsub.f32 %v2767_v38, %v5418_v26  ;;  %v5419_v61 = vcombine.high %v5418_v26, %v5418_v26 }
  0xdc   :  { %v3046_v9 = vsub.f32 %v2752_v42, %v5414_v31  ;;  %v5420_v42 = vld [vmem:[#allocation18_spill] sm:$0xff] }
  0xdd   :  { %v3054_v28 = vsub.f32 %v2762_v58, %v5417_v12  ;;  %v3062_v37 = vsub.f32 %v2772_v39, %v5419_v61  ;;  %v636_v31 = vsub.f32 %v2777_v20, %v5420_v42  ;;  %v5421_v36 = vcombine.high %v5420_v42, %v5420_v42  ;;  %v5423_v58 = vld [vmem:[#allocation19_spill] sm:$0xff]  ;;  %v5425_v39 = vld [vmem:[#allocation20_spill] sm:$0xff] }
  0xde   :  { %5415 = vst [vmem:[#allocation83_spill] sm:$0xff] %v3046_v9  ;;  %v638_v12 = vsub.f32 %v2787_v45, %v5423_v58  ;;  %v5424_v38 = vcombine.high %v5423_v58, %v5423_v58  ;;  %v640_v61 = vsub.f32 %v2797_v46, %v5425_v39  ;;  %v5426_v20 = vcombine.high %v5425_v39, %v5425_v39 }
  0xdf   :  { %v3070_v21 = vsub.f32 %v2782_v44, %v5421_v36  ;;  %v5427_v44 = vld [vmem:[#allocation21_spill] sm:$0xff] }
  0xe0   :  { %v3078_v26 = vsub.f32 %v2792_v50, %v5424_v38  ;;  %v3086_v42 = vsub.f32 %v2802_v47, %v5426_v20  ;;  %v642_v36 = vsub.f32 %v2807_v1, %v5427_v44  ;;  %v5428_v45 = vcombine.high %v5427_v44, %v5427_v44  ;;  %v5430_v50 = vld [vmem:[#allocation22_spill] sm:$0xff]  ;;  %v5432_v47 = vld [vmem:[#allocation23_spill] sm:$0xff] }
  0xe1   :  { %5422 = vst [vmem:[#allocation4_spill] sm:$0xff] %v3070_v21  ;;  %v644_v38 = vsub.f32 %v2817_v6, %v5430_v50  ;;  %v5431_v46 = vcombine.high %v5430_v50, %v5430_v50  ;;  %v646_v20 = vsub.f32 %v2827_v49, %v5432_v47  ;;  %v5433_v1 = vcombine.high %v5432_v47, %v5432_v47 }
  0xe2   :  { %v3094_v58 = vsub.f32 %v2812_v54, %v5428_v45  ;;  %v5435_v54 = vld [vmem:[#allocation24_spill] sm:$0xff] }
  0xe3   :  { %v3102_v39 = vsub.f32 %v2822_v48, %v5431_v46  ;;  %v3110_v44 = vsub.f32 %v2832_v57, %v5433_v1  ;;  %v648_v45 = vsub.f32 %v2837_v51, %v5435_v54  ;;  %v5436_v6 = vcombine.high %v5435_v54, %v5435_v54  ;;  %v5438_v48 = vld [vmem:[#allocation25_spill] sm:$0xff]  ;;  %v5440_v57 = vld [vmem:[#allocation26_spill] sm:$0xff] }
  0xe4   :  { %5429 = vst [vmem:[#allocation84_spill] sm:$0xff] %v3094_v58  ;;  %v650_v46 = vsub.f32 %v2847_v60, %v5438_v48  ;;  %v5439_v49 = vcombine.high %v5438_v48, %v5438_v48  ;;  %v652_v1 = vsub.f32 %v2857_v13, %v5440_v57  ;;  %v5441_v51 = vcombine.high %v5440_v57, %v5440_v57  ;;  %v5483_v58 = vld [vmem:[#allocation34_spill] sm:$0xff] }
  0xe5   :  { %5434 = vst [vmem:[#allocation89_spill] sm:$0xff] %v3110_v44  ;;  %v3118_v50 = vsub.f32 %v2842_v53, %v5436_v6  ;;  %v3136_v53 = vand.u32 2147483647, %v606_v33  ;;  %v3139_v60 = vand.u32 2147483647, %v608_v17  ;;  %v5445_v6 = vld [vmem:[#allocation28_spill] sm:$0xff] }
  0xe6   :  { %v3126_v47 = vsub.f32 %v2852_v55, %v5439_v49  ;;  %v3134_v54 = vsub.f32 %v2862_v56, %v5441_v51  ;;  %v3144_v49 = vand.u32 2147483647, %v610_v24  ;;  %v3153_v33 = vand.u32 2147483647, %v612_v14  ;;  %v5450_v17 = vld [vmem:[#allocation29_spill] sm:$0xff] }
  0xe7   :  { %5437 = vst [vmem:[#allocation5_spill] sm:$0xff] %v3118_v50  ;;  %v5442_v50 = vld [vmem:[#allocation27_spill] sm:$0xff]  ;;  %v3156_v51 = vand.u32 2147483647, %v614_v19  ;;  %v3161_v55 = vand.u32 2147483647, %v616_v25 }
  0xe8   :  { %v654_v48 = vsub.f32 %v2867_v63, %v5442_v50  ;;  %v5443_v57 = vcombine.high %v5442_v50, %v5442_v50  ;;  %v656_v63 = vsub.f32 %v2877_v35, %v5445_v6  ;;  %v5447_v50 = vcombine.high %v5445_v6, %v5445_v6  ;;  %v5455_v19 = vld [vmem:[#allocation30_spill] sm:$0xff] }
  0xe9   :  { %5444 = vst [vmem:[#allocation90_spill] sm:$0xff] %v3156_v51  ;;  %5446 = vst [vmem:[#allocation91_spill] sm:$0xff] %v3161_v55  ;;  %v3170_v14 = vand.u32 2147483647, %v618_v41  ;;  %v658_v35 = vsub.f32 %v2887_v23, %v5450_v17  ;;  %v3178_v24 = vand.u32 2147483647, %v622_v32  ;;  %v5452_v6 = vcombine.high %v5450_v17, %v5450_v17 }
  0xea   :  { %v3151_v56 = vsub.f32 %v2872_v62, %v5443_v57  ;;  %v3168_v62 = vsub.f32 %v2882_v59, %v5447_v50  ;;  %v3173_v57 = vand.u32 2147483647, %v620_v8  ;;  %v3187_v41 = vand.u32 2147483647, %v624_v18  ;;  %v5456_v23 = vld [vmem:[#allocation108_spill] sm:$0xff]  ;;  %v5510_v55 = vld [vmem:[#allocation41_spill] sm:$0xff] }
  0xeb   :  { %5448 = vst [vmem:[#allocation6_spill] sm:$0xff] %v3170_v14  ;;  %5451 = vst [vmem:[#allocation97_spill] sm:$0xff] %v3178_v24  ;;  %v3185_v59 = vsub.f32 %v2892_v30, %v5452_v6  ;;  %v3190_v50 = vand.u32 2147483647, %v626_v2  ;;  %v3195_v25 = vand.u32 2147483647, %v628_v5  ;;  %v5458_v17 = vcombine.high %v5455_v19, %v5455_v19 }
  0xec   :  { %5449 = vst [vmem:[#allocation92_spill] sm:$0xff] %v3173_v57  ;;  %5453 = vst [vmem:[#allocation7_spill] sm:$0xff] %v3187_v41  ;;  %v660_v57 = vsub.f32 %v5456_v23, %v5455_v19  ;;  %v5459_v30 = vld [vmem:[#allocation109_spill] sm:$0xff]  ;;  %v3204_v18 = vand.u32 2147483647, %v630_v7  ;;  %v5463_v23 = vld [vmem:[#allocation110_spill] sm:$0xff]  ;;  %vm5511_vm0 = vnez %v5510_v55 }
  0xed   :  { %5454 = vst [vmem:[#allocation8_spill] sm:$0xff] %v3190_v50  ;;  %5457 = vst [vmem:[#allocation98_spill] sm:$0xff] %v3195_v25  ;;  %v3202_v6 = vsub.f32 %v5459_v30, %v5458_v17  ;;  %v3207_v8 = vand.u32 2147483647, %v632_v10  ;;  %v5462_v50 = vld [vmem:[#allocation31_spill] sm:$0xff]  ;;  %v5544_v51 = vld [vmem:[#allocation50_spill] sm:$0xff] }
  0xee   :  { %5460 = vst [vmem:[#allocation9_spill] sm:$0xff] %v3204_v18  ;;  %v662_v16 = vsub.f32 %v5463_v23, %v5462_v50  ;;  %v3212_v32 = vand.u32 2147483647, %v634_v11  ;;  %v5465_v19 = vcombine.high %v5462_v50, %v5462_v50  ;;  %v5466_v17 = vld [vmem:[#allocation111_spill] sm:$0xff]  ;;  %v3221_v7 = vand.u32 2147483647, %v636_v31 }
  0xef   :  { %5461 = vst [vmem:[#allocation10_spill] sm:$0xff] %v3207_v8  ;;  %v3224_v2 = vand.u32 2147483647, %v638_v12  ;;  %v5469_v8 = vld [vmem:[#allocation32_spill] sm:$0xff]  ;;  %v3229_v5 = vand.u32 2147483647, %v640_v61 }
  0xf0   :  { %5464 = vst [vmem:[#allocation11_spill] sm:$0xff] %v3212_v32  ;;  %v3219_v30 = vsub.f32 %v5466_v17, %v5465_v19  ;;  %5467 = vst [vmem:[#allocation12_spill] sm:$0xff] %v3221_v7  ;;  %v5470_v23 = vld [vmem:[#allocation112_spill] sm:$0xff]  ;;  %v5472_v50 = vcombine.high %v5469_v8, %v5469_v8  ;;  %v5473_v19 = vld [vmem:[#allocation113_spill] sm:$0xff]  ;;  %v3238_v31 = vand.u32 2147483647, %v642_v36 }
  0xf1   :  { %5468 = vst [vmem:[#allocation13_spill] sm:$0xff] %v3224_v2  ;;  %v664_v9 = vsub.f32 %v5470_v23, %v5469_v8  ;;  %5471 = vst [vmem:[#allocation14_spill] sm:$0xff] %v3229_v5  ;;  %v3241_v10 = vand.u32 2147483647, %v644_v38  ;;  %v5476_v2 = vld [vmem:[#allocation33_spill] sm:$0xff]  ;;  %v5477_v23 = vld [vmem:[#allocation114_spill] sm:$0xff] }
  0xf2   :  { %v3236_v17 = vsub.f32 %v5473_v19, %v5472_v50  ;;  %5474 = vst [vmem:[#allocation15_spill] sm:$0xff] %v3238_v31  ;;  %v666_v21 = vsub.f32 %v5477_v23, %v5476_v2  ;;  %v3246_v11 = vand.u32 2147483647, %v646_v20  ;;  %v5478_v8 = vcombine.high %v5476_v2, %v5476_v2  ;;  %v5479_v50 = vld [vmem:[#allocation115_spill] sm:$0xff]  ;;  %v5481_v12 = vld [vmem:[#allocation5_spill] sm:$0xff]  ;;  %v5484_v23 = vld [vmem:[#allocation116_spill] sm:$0xff] }
  0xf3   :  { %5475 = vst [vmem:[#allocation16_spill] sm:$0xff] %v3241_v10  ;;  %v3255_v36 = vand.u32 2147483647, %v648_v45  ;;  %v3258_v10 = vand.u32 2147483647, %v650_v46  ;;  %v668_v31 = vsub.f32 %v5484_v23, %v5483_v58  ;;  %v5485_v45 = vld [vmem:[#allocation38_spill] sm:$0xff]  ;;  %v5486_v46 = vcombine.high %v5483_v58, %v5483_v58 }
  0xf4   :  { %v3253_v19 = vsub.f32 %v5479_v50, %v5478_v8  ;;  %v3263_v61 = vand.u32 2147483647, %v652_v1  ;;  %v3266_v44 = vand.u32 2147483647, %v654_v48  ;;  %v3269_v8 = vand.u32 2147483647, %v656_v63 }
  0xf5   :  { %5480 = vst [vmem:[#allocation17_spill] sm:$0xff] %v3255_v36  ;;  %5482 = vst [vmem:[#allocation18_spill] sm:$0xff] %v3258_v10  ;;  %v1156_v50 = vunpack.c.0.s8 %v5485_v45  ;;  %v5487_v38 = vld [vmem:[#allocation117_spill] sm:$0xff]  ;;  %v3279_v1 = vand.u32 2147483647, %v658_v35  ;;  %v5488_v23 = vld [vmem:[#allocation2_spill] sm:$0xff] }
  0xf6   :  { %v3276_v10 = vsub.f32 %v5487_v38, %v5486_v46  ;;  %v3282_v48 = vand.u32 2147483647, %v660_v57  ;;  %v3285_v63 = vand.u32 2147483647, %v662_v16  ;;  %v3288_v20 = vand.u32 2147483647, %v664_v9 }
  0xf7   :  { %v3291_v38 = vand.u32 2147483647, %v666_v21  ;;  %v3294_v35 = vand.u32 2147483647, %v668_v31  ;;  %v3297_v13 = vsub.s32 %v1156_v50, %v5488_v23  ;;  %v5490_v2 = vand.u32 2147483647, %v2950_v3 }
  0xf8   :  { %v5491_v21 = vand.u32 2147483647, %v2958_v34  ;;  %v5492_v46 = vand.u32 2147483647, %v2966_v40  ;;  %v5493_v16 = vand.u32 2147483647, %v2974_v15 }
  0xf9   :  { %5489 = vst [vmem:[#allocation19_spill] sm:$0xff] %v3297_v13  ;;  %v3303_v45 = vsub.f32 0.0, %v5490_v2  ;;  %v5494_v2 = vand.u32 2147483647, %v2982_v27  ;;  %v5497_v40 = vld [vmem:[#allocation36_spill] sm:$0xff]  ;;  %v5506_v31 = vld [vmem:[#allocation39_spill] sm:$0xff] }
  0xfa   :  { %v3308_v58 = vsub.f32 0.0, %v5491_v21  ;;  %v3313_v50 = vsub.f32 0.0, %v5492_v46  ;;  %v3318_v57 = vsub.f32 0.0, %v5493_v16  ;;  %v5495_v21 = vld [vmem:[#allocation35_spill] sm:$0xff]  ;;  %vm5498_vm3 = vnez %v5497_v40  ;;  %v5499_v46 = vld [vmem:[#allocation37_spill] sm:$0xff]  ;;  %v5508_v13 = vld [vmem:[#allocation40_spill] sm:$0xff] }
  0xfb   :  { %v3323_v9 = vsub.f32 0.0, %v5494_v2  ;;  %vm5496_vm6 = vnez %v5495_v21  ;;  %vm5500_vm5 = vnez %v5499_v46  ;;  %v5501_v15 = vand.u32 2147483647, %v2990_v29  ;;  %v5516_v3 = vld [vmem:[#allocation42_spill] sm:$0xff]  ;;  %v5518_v14 = vld [vmem:[#allocation43_spill] sm:$0xff]  ;;  %v5552_v18 = vld [vmem:[#allocation52_spill] sm:$0xff] }
  0xfc   :  { %v5503_v2 = vand.u32 2147483647, %v2998_v52  ;;  %vm5507_vm4 = vnez %v5506_v31  ;;  %vm5509_vm2 = vnez %v5508_v13  ;;  %v5512_v29 = vand.u32 2147483647, %v3006_v43  ;;  %v5522_v43 = vld [vmem:[#allocation3_spill] sm:$0xff]  ;;  %v5599_v36 = vld [vmem:[#allocation66_spill] sm:$0xff]  ;;  %vm5607_vm13 = vmpackc.low %vm5496_vm6, %vm5496_vm6 }
  0xfd   :  { %v3337_v16 = vsub.f32 0.0, %v5501_v15  ;;  %vm5517_vm7 = vnez %v5516_v3  ;;  %vm5519_vm9 = vnez %v5518_v14  ;;  %v5526_v27 = vand.u32 2147483647, %v3030_v4  ;;  %v5550_v25 = vld [vmem:[#allocation51_spill] sm:$0xff]  ;;  %vm3541_vm11 = vmpackc.even %vm5607_vm13, %vm5607_vm13  ;;  %v5618_v21 = vld [vmem:[#allocation69_spill] sm:$0xff] }
  0xfe   :  { %v3342_v34 = vsub.f32 0.0, %v5503_v2  ;;  %v3356_v15 = vsub.f32 0.0, %v5512_v29  ;;  %v5514_v2 = vand.u32 2147483647, %v3014_v0  ;;  %v5523_v29 = vand.u32 2147483647, %v5522_v43  ;;  %vm5610_vm14 = vmpackc.low %vm5498_vm3, %vm5498_vm3 }
  0xff   :  { %5502 = vst [vmem:[#allocation20_spill] sm:$0xff] %v3337_v16  ;;  %v3380_v41 = vsub.f32 0.0, %v5526_v27  ;;  %v5532_v16 = vld [vmem:[#allocation47_spill] sm:$0xff]  ;;  %v5534_v43 = vand.u32 2147483647, %v3038_v22  ;;  %vm5600_vm8 = vnez %v5599_v36  ;;  %vm3551_vm10 = vmpackc.even %vm5610_vm14, %vm5610_vm14  ;;  %v5620_v40 = vld [vmem:[#allocation70_spill] sm:$0xff] }
 0x100   :  { %5504 = vst [vmem:[#allocation21_spill] sm:$0xff] %v3342_v34  ;;  %5513 = vst [vmem:[#allocation22_spill] sm:$0xff] %v3356_v15  ;;  %v3361_v23 = vsub.f32 0.0, %v5514_v2  ;;  %v5520_v34 = vld [vmem:[#allocation44_spill] sm:$0xff]  ;;  %v3375_v52 = vsub.f32 0.0, %v5523_v29  ;;  %v5530_v15 = vld [vmem:[#allocation46_spill] sm:$0xff]  ;;  %vm5621_vm3 = vnez %v5620_v40 }
 0x101   :  { %vm5521_vm15 = vnez %v5520_v34  ;;  %5527 = vst [vmem:[#allocation25_spill] sm:$0xff] %v3380_v41  ;;  %v3394_v29 = vsub.f32 0.0, %v5534_v43  ;;  %v5536_v27 = vld [vmem:[#allocation83_spill] sm:$0xff]  ;;  %v5540_v41 = vld [vmem:[#allocation48_spill] sm:$0xff]  ;;  %v5546_v22 = vand.u32 2147483647, %v3054_v28  ;;  %vm5614_vm6 = vmpackc.low %vm5500_vm5, %vm5500_vm5 }
 0x102   :  { %5515 = vst [vmem:[#allocation23_spill] sm:$0xff] %v3361_v23  ;;  %5524 = vst [vmem:[#allocation24_spill] sm:$0xff] %v3375_v52  ;;  %v5528_v23 = vld [vmem:[#allocation45_spill] sm:$0xff]  ;;  %v5537_v24 = vand.u32 2147483647, %v5536_v27  ;;  %v5556_v28 = vld [vmem:[#allocation4_spill] sm:$0xff] }
 0x103   :  { %vm5529_vm1 = vnez %v5528_v23  ;;  %5535 = vst [vmem:[#allocation26_spill] sm:$0xff] %v3394_v29  ;;  %v5542_v52 = vld [vmem:[#allocation49_spill] sm:$0xff]  ;;  %v3413_v43 = vsub.f32 0.0, %v5546_v22  ;;  %v5548_v27 = vand.u32 2147483647, %v3062_v37  ;;  %v5608_v29 = vmov 0  ;;  %vm3561_vm13 = vmpackc.even %vm5614_vm6, %vm5614_vm6 }
 0x104   :  { %v3399_v2 = vsub.f32 0.0, %v5537_v24  ;;  %v5557_v22 = vand.u32 2147483647, %v5556_v28  ;;  %v5560_v4 = vand.u32 2147483647, %v3078_v26  ;;  %v5569_v26 = vld [vmem:[#allocation15_spill] sm:$0xff]  ;;  %vm5624_vm5 = vmpackc.low %vm5507_vm4, %vm5507_vm4 }
 0x105   :  { %5547 = vst [vmem:[#allocation28_spill] sm:$0xff] %v3413_v43  ;;  %v3418_v0 = vsub.f32 0.0, %v5548_v27  ;;  %v5568_v28 = vand.u32 2147483647, %v3086_v42  ;;  %v5570_v27 = vld [vmem:[#allocation84_spill] sm:$0xff]  ;;  %v5601_v43 = vld [vmem:[#allocation67_spill] sm:$0xff]  ;;  %vm3587_vm6 = vmpackc.even %vm5624_vm5, %vm5624_vm5 }
 0x106   :  { %5538 = vst [vmem:[#allocation27_spill] sm:$0xff] %v3399_v2  ;;  %v5554_v2 = vld [vmem:[#allocation53_spill] sm:$0xff]  ;;  %v3432_v24 = vsub.f32 0.0, %v5557_v22  ;;  %v3437_v7 = vsub.f32 0.0, %v5560_v4  ;;  %v5571_v32 = vand.u32 2147483647, %v5570_v27  ;;  %vm5627_vm14 = vmpackc.low %vm5509_vm2, %vm5509_vm2 }
 0x107   :  { %5549 = vst [vmem:[#allocation29_spill] sm:$0xff] %v3418_v0  ;;  %v5562_v0 = vld [vmem:[#allocation54_spill] sm:$0xff]  ;;  %v3451_v22 = vsub.f32 0.0, %v5568_v28  ;;  %v5579_v42 = vand.u32 2147483647, %v3102_v39  ;;  %v5580_v27 = vld [vmem:[#allocation89_spill] sm:$0xff]  ;;  %vm3597_vm12 = vmpackc.even %vm5627_vm14, %vm5627_vm14 }
 0x108   :  { %5558 = vst [vmem:[#allocation30_spill] sm:$0xff] %v3432_v24  ;;  %5561 = vst [vmem:[#allocation108_spill] sm:$0xff] %v3437_v7  ;;  %v3456_v5 = vsub.f32 0.0, %v5571_v32  ;;  %v5581_v7 = vand.u32 2147483647, %v5580_v27  ;;  %v5609_v29 = vsel %vm3541_vm11, 4294967295, %v5608_v29  ;;  %vm5619_vm11 = vnez %v5618_v21 }
 0x109   :  { %v3470_v28 = vsub.f32 0.0, %v5579_v42  ;;  %v5588_v39 = vand.u32 2147483647, %v5481_v12  ;;  %v5590_v37 = vand.u32 2147483647, %v3126_v47  ;;  %vm5631_vm4 = vmpackc.low %vm5511_vm0, %vm5511_vm0  ;;  %v5635_v31 = vld [vmem:[#allocation71_spill] sm:$0xff] }
 0x10a   :  { %v3475_v4 = vsub.f32 0.0, %v5581_v7  ;;  %v5589_v7 = vld [vmem:[#allocation18_spill] sm:$0xff]  ;;  %v5597_v12 = vand.u32 2147483647, %v3134_v54  ;;  %v5605_v54 = vand.u32 2147483647, %v3168_v62  ;;  %vm3607_vm5 = vmpackc.even %vm5631_vm4, %vm5631_vm4 }
 0x10b   :  { %v3489_v42 = vsub.f32 0.0, %v5588_v39  ;;  %v3494_v32 = vsub.f32 0.0, %v5590_v37  ;;  %v5598_v37 = vand.u32 2147483647, %v3151_v56  ;;  %v5611_v62 = vmov 0  ;;  %vm5639_vm0 = vmpackc.low %vm5517_vm7, %vm5517_vm7  ;;  %v5651_v3 = vld [vmem:[#allocation72_spill] sm:$0xff] }
 0x10c   :  { %v3508_v39 = vsub.f32 0.0, %v5597_v12  ;;  %v3527_v12 = vsub.f32 0.0, %v5605_v54  ;;  %v5612_v62 = vsel %vm3551_vm10, 4294967295, %v5611_v62  ;;  %v5622_v54 = vand.u32 2147483647, %v3202_v6  ;;  %vm3630_vm2 = vmpackc.even %vm5639_vm0, %vm5639_vm0 }
 0x10d   :  { %v3513_v24 = vsub.f32 0.0, %v5598_v37  ;;  %v5606_v37 = vand.u32 2147483647, %v3185_v59  ;;  %5613 = vst [vmem:[#allocation109_spill] sm:$0xff] %v5612_v62  ;;  %v5615_v59 = vmov 0  ;;  %v5625_v62 = vmov 0  ;;  %vm5643_vm14 = vmpackc.low %vm5519_vm9, %vm5519_vm9 }
 0x10e   :  { %v5616_v59 = vsel %vm3561_vm13, 4294967295, %v5615_v59  ;;  %v5623_v47 = vand.u32 2147483647, %v3219_v30  ;;  %v5626_v62 = vsel %vm3587_vm6, 4294967295, %v5625_v62  ;;  %v5628_v6 = vmov 0  ;;  %vm3640_vm4 = vmpackc.even %vm5643_vm14, %vm5643_vm14 }
 0x10f   :  { %v3532_v27 = vsub.f32 0.0, %v5606_v37  ;;  %5617 = vst [vmem:[#allocation31_spill] sm:$0xff] %v5616_v59  ;;  %v3573_v37 = vsub.f32 0.0, %v5622_v54  ;;  %v5629_v6 = vsel %vm3597_vm12, 4294967295, %v5628_v6  ;;  %v5632_v30 = vmov 0  ;;  %vm5647_vm7 = vmpackc.low %vm5521_vm15, %vm5521_vm15 }
 0x110   :  { %v3578_v56 = vsub.f32 0.0, %v5623_v47  ;;  %5630 = vst [vmem:[#allocation110_spill] sm:$0xff] %v5629_v6  ;;  %v5633_v30 = vsel %vm3607_vm5, 4294967295, %v5632_v30  ;;  %vm5636_vm6 = vnez %v5635_v31  ;;  %v5637_v13 = vand.u32 2147483647, %v3236_v17  ;;  %vm3650_vm0 = vmpackc.even %vm5647_vm7, %vm5647_vm7 }
 0x111   :  { %5634 = vst [vmem:[#allocation111_spill] sm:$0xff] %v5633_v30  ;;  %v5638_v59 = vand.u32 2147483647, %v3253_v19  ;;  %v5640_v30 = vmov 0  ;;  %v5644_v17 = vmov 0  ;;  %v5648_v19 = vmov 0  ;;  %vm5657_vm9 = vmpackc.low %vm5529_vm1, %vm5529_vm1 }
 0x112   :  { %v3616_v47 = vsub.f32 0.0, %v5637_v13  ;;  %v5641_v30 = vsel %vm3630_vm2, 4294967295, %v5640_v30  ;;  %v5645_v17 = vsel %vm3640_vm4, 4294967295, %v5644_v17  ;;  %v5649_v19 = vsel %vm3650_vm0, 4294967295, %v5648_v19  ;;  %vm3676_vm15 = vmpackc.even %vm5657_vm9, %vm5657_vm9 }
 0x113   :  { %v3621_v46 = vsub.f32 0.0, %v5638_v59  ;;  %5642 = vst [vmem:[#allocation32_spill] sm:$0xff] %v5641_v30  ;;  %5646 = vst [vmem:[#allocation112_spill] sm:$0xff] %v5645_v17  ;;  %vm5652_vm13 = vnez %v5651_v3  ;;  %v5653_v14 = vand.u32 2147483647, %v3276_v10  ;;  %v5654_v13 = vsub.f32 0.0, %v3136_v53 }
 0x114   :  { %5650 = vst [vmem:[#allocation113_spill] sm:$0xff] %v5649_v19  ;;  %v5655_v34 = vsub.f32 0.0, %v3139_v60  ;;  %v5656_v17 = vsub.f32 0.0, %v3144_v49  ;;  %v5658_v10 = vmov 0  ;;  %vm5661_vm14 = vnez %v5530_v15  ;;  %v5671_v49 = vld [vmem:[#allocation73_spill] sm:$0xff]  ;;  %v5709_v30 = vld [vmem:[#allocation8_spill] sm:$0xff] }
 0x115   :  { %v3659_v59 = vsub.f32 0.0, %v5653_v14  ;;  %v862_v55 = vcombine.low %v5654_v13, %v3303_v45  ;;  %v5659_v10 = vsel %vm3676_vm15, 4294967295, %v5658_v10  ;;  %vm5662_vm7 = vmpackc.low %vm5661_vm14, %vm5661_vm14  ;;  %v5663_v53 = vmov 0 }
 0x116   :  { %v863_v54 = vcombine.low %v5655_v34, %v3308_v58  ;;  %v864_v19 = vcombine.low %v5656_v17, %v3313_v50  ;;  %5660 = vst [vmem:[#allocation33_spill] sm:$0xff] %v5659_v10  ;;  %vm3686_vm2 = vmpackc.even %vm5662_vm7, %vm5662_vm7  ;;  %vm5666_vm0 = vnez %v5532_v16  ;;  %v5668_v60 = vmov 0  ;;  %v5674_v50 = vld [vmem:[#allocation90_spill] sm:$0xff]  ;;  %v5676_v17 = vld [vmem:[#allocation20_spill] sm:$0xff] }
 0x117   :  { %v5664_v53 = vsel %vm3686_vm2, 4294967295, %v5663_v53  ;;  %vm5667_vm1 = vmpackc.low %vm5666_vm0, %vm5666_vm0  ;;  %vm5672_vm15 = vnez %v5671_v49  ;;  %v5673_v45 = vsub.f32 0.0, %v3153_v33  ;;  %v5675_v23 = vsub.f32 0.0, %v5674_v50  ;;  %v5677_v16 = vld [vmem:[#allocation91_spill] sm:$0xff]  ;;  %v5679_v34 = vld [vmem:[#allocation21_spill] sm:$0xff]  ;;  %926 = vst [vmem:[%s4736_s3] sm:$0xff] %v862_v55 }
 0x118   :  { %5665 = vst [vmem:[#allocation114_spill] sm:$0xff] %v5664_v53  ;;  %vm3696_vm9 = vmpackc.even %vm5667_vm1, %vm5667_vm1  ;;  %v5678_v14 = vsub.f32 0.0, %v5677_v16  ;;  %v5680_v53 = vld [vmem:[#allocation6_spill] sm:$0xff]  ;;  %vm5682_vm0 = vnez %v5540_v41  ;;  %v5684_v33 = vmov 0  ;;  %vm5687_vm1 = vnez %v5542_v52  ;;  %v5702_v50 = vld [vmem:[#allocation23_spill] sm:$0xff] }
 0x119   :  { %v5669_v60 = vsel %vm3696_vm9, 4294967295, %v5668_v60  ;;  %v865_v58 = vcombine.low %v5673_v45, %v3318_v57  ;;  %v866_v15 = vcombine.low %v5675_v23, %v3323_v9  ;;  %v5681_v10 = vsub.f32 0.0, %v5680_v53  ;;  %vm5683_vm14 = vmpackc.low %vm5682_vm0, %vm5682_vm0  ;;  %v5697_v9 = vld [vmem:[#allocation74_spill] sm:$0xff]  ;;  %v5703_v23 = vld [vmem:[#allocation97_spill] sm:$0xff]  ;;  %927 = vst [vmem:[%s4736_s3 + $0x8] sm:$0xff] %v863_v54 }
 0x11a   :  { %5670 = vst [vmem:[#allocation115_spill] sm:$0xff] %v5669_v60  ;;  %v867_v13 = vcombine.low %v5678_v14, %v5676_v17  ;;  %vm3721_vm7 = vmpackc.even %vm5683_vm14, %vm5683_vm14  ;;  %v5689_v57 = vmov 0  ;;  %vm5692_vm2 = vnez %v5544_v51  ;;  %v5694_v41 = vmov 0  ;;  %v5699_v52 = vld [vmem:[#allocation22_spill] sm:$0xff]  ;;  %v5705_v14 = vld [vmem:[#allocation24_spill] sm:$0xff] }
 0x11b   :  { %v868_v60 = vcombine.low %v5681_v10, %v5679_v34  ;;  %v5685_v33 = vsel %vm3721_vm7, 4294967295, %v5684_v33  ;;  %vm5688_vm4 = vmpackc.low %vm5687_vm1, %vm5687_vm1  ;;  %vm5698_vm7 = vnez %v5697_v9  ;;  %v5700_v10 = vld [vmem:[#allocation92_spill] sm:$0xff]  ;;  %v5704_v17 = vsub.f32 0.0, %v5703_v23  ;;  %v5706_v51 = vld [vmem:[#allocation7_spill] sm:$0xff]  ;;  %928 = vst [vmem:[%s4736_s3 + $0x10] sm:$0xff] %v864_v19 }
 0x11c   :  { %5686 = vst [vmem:[#allocation5_spill] sm:$0xff] %v5685_v33  ;;  %vm3731_vm9 = vmpackc.even %vm5688_vm4, %vm5688_vm4  ;;  %v5701_v53 = vsub.f32 0.0, %v5700_v10  ;;  %v5707_v34 = vsub.f32 0.0, %v5706_v51  ;;  %v5708_v33 = vld [vmem:[#allocation25_spill] sm:$0xff]  ;;  %v5710_v6 = vsub.f32 0.0, %v5709_v30  ;;  %v5717_v30 = vmov 0 }
 0x11d   :  { %v5690_v57 = vsel %vm3731_vm9, 4294967295, %v5689_v57  ;;  %vm5693_vm0 = vmpackc.low %vm5692_vm2, %vm5692_vm2  ;;  %v870_v16 = vcombine.low %v5704_v17, %v5702_v50  ;;  %vm5711_vm2 = vnez %v5550_v25  ;;  %vm5720_vm9 = vnez %v5554_v2  ;;  %v5725_v54 = vld [vmem:[#allocation75_spill] sm:$0xff]  ;;  %v5728_v55 = vld [vmem:[#allocation98_spill] sm:$0xff]  ;;  %929 = vst [vmem:[%s4736_s3 + $0x18] sm:$0xff] %v865_v58 }
 0x11e   :  { %5691 = vst [vmem:[#allocation34_spill] sm:$0xff] %v5690_v57  ;;  %vm3741_vm14 = vmpackc.even %vm5693_vm0, %vm5693_vm0  ;;  %v869_v45 = vcombine.low %v5701_v53, %v5699_v52  ;;  %v871_v57 = vcombine.low %v5707_v34, %v5705_v14  ;;  %vm5715_vm0 = vnez %v5552_v18  ;;  %v5722_v25 = vmov 0  ;;  %v5727_v18 = vld [vmem:[#allocation26_spill] sm:$0xff]  ;;  %v5730_v52 = vld [vmem:[#allocation27_spill] sm:$0xff] }
 0x11f   :  { %v5695_v41 = vsel %vm3741_vm14, 4294967295, %v5694_v41  ;;  %vm5712_vm4 = vmpackc.low %vm5711_vm2, %vm5711_vm2  ;;  %v5729_v19 = vsub.f32 0.0, %v5728_v55  ;;  %v5731_v10 = vld [vmem:[#allocation9_spill] sm:$0xff]  ;;  %v5733_v23 = vld [vmem:[#allocation28_spill] sm:$0xff]  ;;  %930 = vst [vmem:[%s4736_s3 + $0x20] sm:$0xff] %v866_v15  ;;  %v5741_v58 = vmov 0 }
 0x120   :  { %5696 = vst [vmem:[#allocation116_spill] sm:$0xff] %v5695_v41  ;;  %v872_v41 = vcombine.low %v5710_v6, %v5708_v33  ;;  %vm3775_vm1 = vmpackc.even %vm5712_vm4, %vm5712_vm4  ;;  %v5713_v6 = vmov 0  ;;  %v5732_v53 = vsub.f32 0.0, %v5731_v10  ;;  %v5734_v2 = vld [vmem:[#allocation10_spill] sm:$0xff]  ;;  %v5736_v51 = vld [vmem:[#allocation29_spill] sm:$0xff]  ;;  %v5746_v15 = vmov 0 }
 0x121   :  { %v5714_v6 = vsel %vm3775_vm1, 4294967295, %v5713_v6  ;;  %vm5716_vm5 = vmpackc.low %vm5715_vm0, %vm5715_vm0  ;;  %v873_v33 = vcombine.low %v5729_v19, %v5727_v18  ;;  %v5735_v17 = vsub.f32 0.0, %v5734_v2  ;;  %v5737_v34 = vld [vmem:[#allocation11_spill] sm:$0xff]  ;;  %931 = vst [vmem:[%s4736_s3 + $0x28] sm:$0xff] %v867_v13  ;;  %v5753_v13 = vld [vmem:[#allocation76_spill] sm:$0xff]  ;;  %v5855_v40 = vmov 0  }
 0x122   :  { %vm3785_vm14 = vmpackc.even %vm5716_vm5, %vm5716_vm5  ;;  %v874_v50 = vcombine.low %v5732_v53, %v5730_v52  ;;  %932 = vst [vmem:[%s4736_s3 + $0x30] sm:$0xff] %v868_v60  ;;  %vm5739_vm5 = vnez %v5562_v0  ;;  %v5748_v60 = vld [vmem:[#allocation56_spill] sm:$0xff]  ;;  %v5751_v0 = vmov 0  ;;  %v5755_v18 = vld [vmem:[#allocation30_spill] sm:$0xff]  ;;  %v5867_v3 = vmov 0 }
 0x123   :  { %v5718_v30 = vsel %vm3785_vm14, 4294967295, %v5717_v30  ;;  %vm5721_vm2 = vmpackc.low %vm5720_vm9, %vm5720_vm9  ;;  %v875_v14 = vcombine.low %v5735_v17, %v5733_v23  ;;  %vm5749_vm14 = vnez %v5748_v60  ;;  %v5756_v55 = vld [vmem:[#allocation12_spill] sm:$0xff]  ;;  %v5759_v53 = vld [vmem:[#allocation13_spill] sm:$0xff]  ;;  %933 = vst [vmem:[%s4736_s3 + $0x38] sm:$0xff] %v869_v45  ;;  %v5777_v45 = vmov 0 }
 0x124   :  { %5719 = vst [vmem:[#allocation38_spill] sm:$0xff] %v5718_v30  ;;  %vm3795_vm4 = vmpackc.even %vm5721_vm2, %vm5721_vm2  ;;  %v5738_v30 = vsub.f32 0.0, %v5737_v34  ;;  %v5757_v19 = vsub.f32 0.0, %v5756_v55  ;;  %v5758_v10 = vld [vmem:[#allocation108_spill] sm:$0xff]  ;;  %v5760_v23 = vsub.f32 0.0, %v5759_v53  ;;  %v5761_v17 = vld [vmem:[#allocation14_spill] sm:$0xff] }
 0x125   :  { %v5723_v25 = vsel %vm3795_vm4, 4294967295, %v5722_v25  ;;  %vm5740_vm9 = vmpackc.low %vm5739_vm5, %vm5739_vm5  ;;  %934 = vst [vmem:[%s4736_s3 + $0x40] sm:$0xff] %v870_v16  ;;  %v5779_v16 = vld [vmem:[#allocation77_spill] sm:$0xff]  ;;  %v5858_v31 = vld [vmem:[#allocation31_spill] sm:$0xff] }
 0x126   :  { %5724 = vst [vmem:[#allocation117_spill] sm:$0xff] %v5723_v25  ;;  %v876_v25 = vcombine.low %v5738_v30, %v5736_v51  ;;  %vm3832_vm0 = vmpackc.even %vm5740_vm9, %vm5740_vm9  ;;  %v5743_v30 = vld [vmem:[#allocation55_spill] sm:$0xff]  ;;  %v877_v52 = vcombine.low %v5757_v19, %v5755_v18  ;;  %v878_v2 = vcombine.low %v5760_v23, %v5758_v10  ;;  %v5762_v51 = vsub.f32 0.0, %v5761_v17  ;;  %v5781_v18 = vld [vmem:[#allocation16_spill] sm:$0xff] }
 0x127   :  { %v5742_v58 = vsel %vm3832_vm0, 4294967295, %v5741_v58  ;;  %vm5744_vm2 = vnez %v5743_v30  ;;  %vm5750_vm5 = vmpackc.low %vm5749_vm14, %vm5749_vm14  ;;  %v5763_v30 = vsub.f32 0.0, %v5569_v26  ;;  %935 = vst [vmem:[%s4736_s3 + $0x48] sm:$0xff] %v871_v57  ;;  %v5769_v26 = vld [vmem:[#allocation58_spill] sm:$0xff]  ;;  %v5772_v57 = vmov 0  ;;  %v5784_v23 = vld [vmem:[#allocation17_spill] sm:$0xff] }
 0x128   :  { %vm5745_vm12 = vmpackc.low %vm5744_vm2, %vm5744_vm2  ;;  %v879_v34 = vcombine.low %v5762_v51, %v3451_v22  ;;  %936 = vst [vmem:[%s4736_s3 + $0x50] sm:$0xff] %v872_v41  ;;  %v5764_v22 = vld [vmem:[#allocation57_spill] sm:$0xff]  ;;  %v5774_v41 = vld [vmem:[#allocation59_spill] sm:$0xff]  ;;  %v5782_v55 = vsub.f32 0.0, %v5781_v18  ;;  %v5783_v10 = vsub.f32 0.0, %v3246_v11  ;;  %v5785_v17 = vsub.f32 0.0, %v5784_v23 }
 0x129   :  { %vm3842_vm4 = vmpackc.even %vm5745_vm12, %vm5745_vm12  ;;  %v880_v60 = vcombine.low %v5763_v30, %v3456_v5  ;;  %vm5765_vm12 = vnez %v5764_v22  ;;  %v5767_v5 = vmov 0  ;;  %v5786_v30 = vsub.f32 0.0, %v5589_v7  ;;  %937 = vst [vmem:[%s4736_s3 + $0x58] sm:$0xff] %v873_v33  ;;  %v5787_v11 = vld [vmem:[#allocation60_spill] sm:$0xff]  ;;  %v5874_v9 = vld [vmem:[#allocation111_spill] sm:$0xff] }
 0x12a   :  { %v5747_v15 = vsel %vm3842_vm4, 4294967295, %v5746_v15  ;;  %vm3852_vm9 = vmpackc.even %vm5750_vm5, %vm5750_vm5  ;;  %vm5770_vm5 = vnez %v5769_v26  ;;  %vm5775_vm4 = vnez %v5774_v41  ;;  %v881_v19 = vcombine.low %v5782_v55, %v3470_v28  ;;  %938 = vst [vmem:[%s4736_s3 + $0x60] sm:$0xff] %v874_v50  ;;  %v5792_v28 = vld [vmem:[#allocation61_spill] sm:$0xff] }
 0x12b   :  { %v5752_v0 = vsel %vm3852_vm9, 4294967295, %v5751_v0  ;;  %vm5766_vm14 = vmpackc.low %vm5765_vm12, %vm5765_vm12  ;;  %v882_v53 = vcombine.low %v5783_v10, %v3475_v4  ;;  %v883_v51 = vcombine.low %v5785_v17, %v3489_v42  ;;  %v884_v22 = vcombine.low %v5786_v30, %v3494_v32  ;;  %939 = vst [vmem:[%s4736_s3 + $0x68] sm:$0xff] %v875_v14  ;;  %v5797_v42 = vld [vmem:[#allocation62_spill] sm:$0xff] }
 0x12c   :  { %vm3889_vm2 = vmpackc.even %vm5766_vm14, %vm5766_vm14  ;;  %940 = vst [vmem:[%s4736_s3 + $0x70] sm:$0xff] %v876_v25  ;;  %v5790_v4 = vmov 0  ;;  %v5795_v32 = vmov 0  ;;  %v5800_v7 = vmov 0  ;;  %v5802_v25 = vld [vmem:[#allocation78_spill] sm:$0xff]  ;;  %v5804_v33 = vsub.f32 0.0, %v3263_v61 }
 0x12d   :  { %v5768_v5 = vsel %vm3889_vm2, 4294967295, %v5767_v5  ;;  %vm5771_vm1 = vmpackc.low %vm5770_vm5, %vm5770_vm5  ;;  %v5805_v14 = vsub.f32 0.0, %v3266_v44  ;;  %v5806_v41 = vsub.f32 0.0, %v3269_v8  ;;  %v5807_v55 = vsub.f32 0.0, %v3279_v1  ;;  %941 = vst [vmem:[%s4736_s3 + $0x78] sm:$0xff] %v877_v52  ;;  %v5808_v44 = vld [vmem:[#allocation63_spill] sm:$0xff] }
 0x12e   :  { %vm3899_vm9 = vmpackc.even %vm5771_vm1, %vm5771_vm1  ;;  %vm5788_vm1 = vnez %v5787_v11  ;;  %v885_v50 = vcombine.low %v5804_v33, %v3508_v39  ;;  %942 = vst [vmem:[%s4736_s3 + $0x80] sm:$0xff] %v878_v2  ;;  %v5811_v61 = vmov 0  ;;  %v5813_v8 = vld [vmem:[#allocation64_spill] sm:$0xff]  ;;  %v5816_v1 = vmov 0  ;;  %v5823_v39 = vld [vmem:[#allocation79_spill] sm:$0xff] }
 0x12f   :  { %v5773_v57 = vsel %vm3899_vm9, 4294967295, %v5772_v57  ;;  %vm5776_vm12 = vmpackc.low %vm5775_vm4, %vm5775_vm4  ;;  %vm5798_vm9 = vnez %v5797_v42  ;;  %v886_v26 = vcombine.low %v5805_v14, %v3513_v24  ;;  %v887_v18 = vcombine.low %v5806_v41, %v3527_v12  ;;  %943 = vst [vmem:[%s4736_s3 + $0x88] sm:$0xff] %v879_v34  ;;  %v5818_v24 = vld [vmem:[#allocation65_spill] sm:$0xff]  ;;  %v5872_v11 = vld [vmem:[#allocation110_spill] sm:$0xff] }
 0x130   :  { %vm3909_vm14 = vmpackc.even %vm5776_vm12, %vm5776_vm12  ;;  %vm5793_vm12 = vnez %v5792_v28  ;;  %v888_v10 = vcombine.low %v5807_v55, %v3532_v27  ;;  %944 = vst [vmem:[%s4736_s3 + $0x90] sm:$0xff] %v880_v60  ;;  %v5821_v27 = vmov 0  ;;  %v5825_v12 = vsub.f32 0.0, %v3282_v48  ;;  %v5888_v14 = vld [vmem:[#allocation85_spill] sm:$0xff]  ;;  %v5892_v41 = vld [vmem:[#allocation112_spill] sm:$0xff] }
 0x131   :  { %v5778_v45 = vsel %vm3909_vm14, 4294967295, %v5777_v45  ;;  %vm5789_vm4 = vmpackc.low %vm5788_vm1, %vm5788_vm1  ;;  %v5826_v2 = vsub.f32 0.0, %v3285_v63  ;;  %v5827_v60 = vsub.f32 0.0, %v3288_v20  ;;  %v5828_v17 = vsub.f32 0.0, %v3291_v38  ;;  %945 = vst [vmem:[%s4736_s3 + $0x98] sm:$0xff] %v881_v19  ;;  %v5836_v63 = vld [vmem:[#allocation68_spill] sm:$0xff] }
 0x132   :  { %vm3946_vm5 = vmpackc.even %vm5789_vm4, %vm5789_vm4  ;;  %v889_v52 = vcombine.low %v5825_v12, %v3573_v37  ;;  %946 = vst [vmem:[%s4736_s3 + $0xa0] sm:$0xff] %v882_v53  ;;  %v5830_v20 = vmov 0  ;;  %v5841_v38 = vld [vmem:[#allocation80_spill] sm:$0xff]  ;;  %v1087_v19 = vsel %vm3551_vm10, 16843009, %v5855_v40  ;;  %v5908_v12 = vld [vmem:[#allocation114_spill] sm:$0xff] }
 0x133   :  { %v5791_v4 = vsel %vm3946_vm5, 4294967295, %v5790_v4  ;;  %vm5794_vm0 = vmpackc.low %vm5793_vm12, %vm5793_vm12  ;;  %v890_v34 = vcombine.low %v5826_v2, %v3578_v56  ;;  %v891_v23 = vcombine.low %v5827_v60, %v3616_v47  ;;  %v892_v30 = vcombine.low %v5828_v17, %v3621_v46  ;;  %947 = vst [vmem:[%s4736_s3 + $0xa8] sm:$0xff] %v883_v51  ;;  %v5853_v46 = vld [vmem:[#allocation81_spill] sm:$0xff]  ;;  %v5910_v2 = vld [vmem:[#allocation115_spill] sm:$0xff] }
 0x134   :  { %vm3956_vm14 = vmpackc.even %vm5794_vm0, %vm5794_vm0  ;;  %vm5809_vm0 = vnez %v5808_v44  ;;  %948 = vst [vmem:[%s4736_s3 + $0xb0] sm:$0xff] %v884_v22  ;;  %v5864_v51 = vmov 0  ;;  %v5869_v22 = vld [vmem:[#allocation82_spill] sm:$0xff] }
 0x135   :  { %v5796_v32 = vsel %vm3956_vm14, 4294967295, %v5795_v32  ;;  %vm5799_vm1 = vmpackc.low %vm5798_vm9, %vm5798_vm9  ;;  %vm5819_vm14 = vnez %v5818_v24  ;;  %949 = vst [vmem:[%s4736_s3 + $0xb8] sm:$0xff] %v885_v50  ;;  %v5906_v24 = vld [vmem:[#allocation33_spill] sm:$0xff] }
 0x136   :  { %vm3966_vm4 = vmpackc.even %vm5799_vm1, %vm5799_vm1  ;;  %vm5814_vm1 = vnez %v5813_v8  ;;  %950 = vst [vmem:[%s4736_s3 + $0xc0] sm:$0xff] %v886_v26 }
 0x137   :  { %v5801_v7 = vsel %vm3966_vm4, 4294967295, %v5800_v7  ;;  %vm5810_vm9 = vmpackc.low %vm5809_vm0, %vm5809_vm0  ;;  %951 = vst [vmem:[%s4736_s3 + $0xc8] sm:$0xff] %v887_v18 }
 0x138   :  { %vm4003_vm12 = vmpackc.even %vm5810_vm9, %vm5810_vm9  ;;  %952 = vst [vmem:[%s4736_s3 + $0xd0] sm:$0xff] %v888_v10 }
 0x139   :  { %v5812_v61 = vsel %vm4003_vm12, 4294967295, %v5811_v61  ;;  %vm5815_vm2 = vmpackc.low %vm5814_vm1, %vm5814_vm1  ;;  %vm5824_vm12 = vnez %v5823_v39  ;;  %vm5832_vm1 = vnez %v5601_v43  ;;  %v5843_v43 = vsub.f32 0.0, %v3294_v35  ;;  %953 = vst [vmem:[%s4736_s3 + $0xd8] sm:$0xff] %v889_v52 }
 0x13a   :  { %vm4013_vm4 = vmpackc.even %vm5815_vm2, %vm5815_vm2  ;;  %v5845_v35 = vmov 0  ;;  %954 = vst [vmem:[%s4736_s3 + $0xe0] sm:$0xff] %v890_v34 }
 0x13b   :  { %v5817_v1 = vsel %vm4013_vm4, 4294967295, %v5816_v1  ;;  %vm5820_vm0 = vmpackc.low %vm5819_vm14, %vm5819_vm14  ;;  %v893_v56 = vcombine.low %v5843_v43, %v3659_v59  ;;  %vm5854_vm4 = vnez %v5853_v46  ;;  %955 = vst [vmem:[%s4736_s3 + $0xe8] sm:$0xff] %v891_v23  ;;  %v5913_v23 = vmov 0 }
 0x13c   :  { %vm4023_vm9 = vmpackc.even %vm5820_vm0, %vm5820_vm0  ;;  %956 = vst [vmem:[%s4736_s3 + $0xf0] sm:$0xff] %v892_v30 }
 0x13d   :  { %v5822_v27 = vsel %vm4023_vm9, 4294967295, %v5821_v27  ;;  %vm5829_vm2 = vmpackc.low %vm5600_vm8, %vm5600_vm8  ;;  %vm5837_vm9 = vnez %v5836_v63  ;;  %957 = vst [vmem:[%s4736_s3 + $0xf8] sm:$0xff] %v893_v56  ;;  %v5920_v63 = vld [vmem:[#allocation86_spill] sm:$0xff] }
 0x13e   :  { %vm4060_vm14 = vmpackc.even %vm5829_vm2, %vm5829_vm2  ;;  %v5924_v56 = vld [vmem:[#allocation34_spill] sm:$0xff] }
 0x13f   :  { %v5831_v20 = vsel %vm4060_vm14, 4294967295, %v5830_v20  ;;  %vm5833_vm0 = vmpackc.low %vm5832_vm1, %vm5832_vm1  ;;  %vm5842_vm14 = vnez %v5841_v38  ;;  %v5922_v38 = vld [vmem:[#allocation5_spill] sm:$0xff] }
 0x140   :  { %vm4070_vm5 = vmpackc.even %vm5833_vm0, %vm5833_vm0 }
 0x141   :  { %vm5838_vm8 = vmpackc.low %vm5837_vm9, %vm5837_vm9 }
 0x142   :  { %vm4080_vm2 = vmpackc.even %vm5838_vm8, %vm5838_vm8 }
 0x143   :  { %vm5844_vm9 = vmpackc.low %vm5619_vm11, %vm5619_vm11 }
 0x144   :  { %vm4108_vm1 = vmpackc.even %vm5844_vm9, %vm5844_vm9 }
 0x145   :  { %v5846_v35 = vsel %vm4108_vm1, 4294967295, %v5845_v35  ;;  %vm5847_vm0 = vmpackc.low %vm5621_vm3, %vm5621_vm3  ;;  %vm5856_vm3 = vnez %v5609_v29  ;;  %v5861_v29 = vmov 0 }
 0x146   :  { %vm4118_vm8 = vmpackc.even %vm5847_vm0, %vm5847_vm0  ;;  %v1086_v47 = vsel %vm5856_vm3, 16843009, %v5855_v40 }
 0x147   :  { %vm5850_vm11 = vmpackc.low %vm5636_vm6, %vm5636_vm6  ;;  %vm5859_vm6 = vnez %v5858_v31  ;;  %v1150_v33 = vcombine.low %v1086_v47, %v1087_v19  ;;  %v5926_v47 = vld [vmem:[#allocation116_spill] sm:$0xff]  ;;  %v5928_v31 = vmov 0  ;;  %v4459_v48 = vsel %vm4118_vm8, 16843009, %v5855_v40 }
 0x148   :  { %vm4128_vm9 = vmpackc.even %vm5850_vm11, %vm5850_vm11  ;;  %v1088_v53 = vsel %vm5859_vm6, 16843009, %v5855_v40 }
 0x149   :  { %vm5860_vm10 = vmpackc.low %vm5652_vm13, %vm5652_vm13  ;;  %v4464_v36 = vsel %vm4128_vm9, 16843009, %v5855_v40 }
 0x14a   :  { %vm4162_vm0 = vmpackc.even %vm5860_vm10, %vm5860_vm10  ;;  %vm5870_vm10 = vnez %v5869_v22  ;;  %v5931_v22 = vld [vmem:[#allocation38_spill] sm:$0xff] }
 0x14b   :  { %v5862_v29 = vsel %vm4162_vm0, 4294967295, %v5861_v29  ;;  %vm5863_vm11 = vmpackc.low %vm5672_vm15, %vm5672_vm15  ;;  %vm5871_vm15 = vnez %v5626_v62  ;;  %v5878_v62 = vmov 0 }
 0x14c   :  { %vm4172_vm3 = vmpackc.even %vm5863_vm11, %vm5863_vm11  ;;  %v1089_v49 = vsel %vm5871_vm15, 16843009, %v5855_v40  ;;  %vm5873_vm11 = vnez %v5872_v11  ;;  %v5933_v11 = vld [vmem:[#allocation117_spill] sm:$0xff] }
 0x14d   :  { %v5865_v51 = vsel %vm4172_vm3, 4294967295, %v5864_v51  ;;  %vm5866_vm13 = vmpackc.low %vm5698_vm7, %vm5698_vm7  ;;  %v1090_v28 = vsel %vm5873_vm11, 16843009, %v5855_v40  ;;  %vm5875_vm7 = vnez %v5874_v9  ;;  %vm5880_vm11 = vnez %v5753_v13  ;;  %v5890_v13 = vld [vmem:[#allocation32_spill] sm:$0xff]  ;;  %v5935_v9 = vld [vmem:[#allocation19_spill] sm:$0xff] }
 0x14e   :  { %vm4182_vm6 = vmpackc.even %vm5866_vm13, %vm5866_vm13  ;;  %v1091_v42 = vsel %vm5875_vm7, 16843009, %v5855_v40  ;;  %vm5876_vm13 = vnez %v5725_v54  ;;  %vm5884_vm3 = vnez %v5779_v16  ;;  %v5886_v54 = vmov 0  ;;  %v5894_v16 = vld [vmem:[#allocation113_spill] sm:$0xff] }
 0x14f   :  { %v5868_v3 = vsel %vm4182_vm6, 4294967295, %v5867_v3  ;;  %vm5877_vm1 = vmpackc.low %vm5876_vm13, %vm5876_vm13  ;;  %v1151_v10 = vcombine.low %v1088_v53, %v1089_v49  ;;  %v1152_v60 = vcombine.low %v1090_v28, %v1091_v42  ;;  %v1160_v42 = vrot.slane %v1150_v33, %v5935_v9 }
 0x150   :  { %vm4207_vm15 = vmpackc.even %vm5877_vm1, %vm5877_vm1  ;;  %vm5965_vm8 = vnez %v5865_v51  ;;  %vm5966_vm9 = vnez %v5868_v3 }
 0x151   :  { %v5879_v62 = vsel %vm4207_vm15, 4294967295, %v5878_v62  ;;  %vm5881_vm7 = vmpackc.low %vm5880_vm11, %vm5880_vm11  ;;  %vm5889_vm15 = vnez %v5888_v14  ;;  %vm5891_vm11 = vnez %v5890_v13  ;;  %v5936_v14 = vld [vmem:[#allocation87_spill] sm:$0xff]  ;;  %v1167_v33 = vrot.slane %v1151_v10, %v5935_v9 }
 0x152   :  { %vm4217_vm6 = vmpackc.even %vm5881_vm7, %vm5881_vm7  ;;  %v1092_v26 = vsel %vm5891_vm11, 16843009, %v5855_v40  ;;  %vm5893_vm7 = vnez %v5892_v41  ;;  %v5941_v41 = vmov 0  ;;  %v4478_v37 = vsel %vm5965_vm8, 16843009, %v5855_v40 }
 0x153   :  { %vm5885_vm13 = vmpackc.low %vm5884_vm3, %vm5884_vm3  ;;  %v1093_v18 = vsel %vm5893_vm7, 16843009, %v5855_v40  ;;  %vm5895_vm3 = vnez %v5894_v16  ;;  %v5946_v16 = vld [vmem:[#allocation88_spill] sm:$0xff]  ;;  %v4483_v21 = vsel %vm5966_vm9, 16843009, %v5855_v40 }
 0x154   :  { %vm4227_vm1 = vmpackc.even %vm5885_vm13, %vm5885_vm13  ;;  %v4243_v55 = vsel %vm5895_vm3, 16843009, %v5855_v40  ;;  %vm5896_vm13 = vnez %v5802_v25  ;;  %v1153_v19 = vcombine.low %v1092_v26, %v1093_v18  ;;  %v1174_v18 = vrot.slane %v1152_v60, %v5935_v9 }
 0x155   :  { %v5887_v54 = vsel %vm4227_vm1, 4294967295, %v5886_v54  ;;  %vm1052_vm0 = vmpackc.low %vm5889_vm15, %vm5889_vm15  ;;  %v4498_v51 = vsel %vm4217_vm6, 16843009, %v5855_v40 }
 0x156   :  { %vm5897_vm1 = vmpackc.low %vm5896_vm13, %vm5896_vm13  ;;  %vm5907_vm13 = vnez %v5906_v24  ;;  %v1181_v10 = vrot.slane %v1153_v19, %v5935_v9  ;;  %v5951_v24 = vmov 0 }
 0x157   :  { %vm4251_vm15 = vmpackc.even %vm5897_vm1, %vm5897_vm1  ;;  %v4278_v39 = vsel %vm5907_vm13, 16843009, %v5855_v40 }
 0x158   :  { %vm5900_vm11 = vmpackc.low %vm5824_vm12, %vm5824_vm12  ;;  %vm5909_vm12 = vnez %v5908_v12  ;;  %v1182_v12 = vcombine.low %v1160_v42, %v1167_v33  ;;  %v1183_v60 = vcombine.low %v1174_v18, %v1181_v10  ;;  %v5974_v42 = vld [vmem:[#allocation96_spill] sm:$0xff] }
 0x159   :  { %vm4261_vm7 = vmpackc.even %vm5900_vm11, %vm5900_vm11  ;;  %v4283_v52 = vsel %vm5909_vm12, 16843009, %v5855_v40  ;;  %vm5911_vm11 = vnez %v5910_v2  ;;  %v5956_v2 = vld [vmem:[#allocation93_spill] sm:$0xff] }
 0x15a   :  { %vm5903_vm3 = vmpackc.low %vm5842_vm14, %vm5842_vm14  ;;  %v4288_v34 = vsel %vm5911_vm11, 16843009, %v5855_v40  ;;  %v4518_v50 = vsel %vm4261_vm7, 16843009, %v5855_v40 }
 0x15b   :  { %vm4271_vm1 = vmpackc.even %vm5903_vm3, %vm5903_vm3  ;;  %v1200_v25 = vcombine.low %v4283_v52, %v4288_v34 }
 0x15c   :  { %vm5912_vm14 = vmpackc.low %vm5854_vm4, %vm5854_vm4  ;;  %vm5921_vm4 = vnez %v5920_v63 }
 0x15d   :  { %vm4296_vm3 = vmpackc.even %vm5912_vm14, %vm5912_vm14  ;;  %v1216_v18 = vrot.slane %v1200_v25, %v5935_v9 }
 0x15e   :  { %v5914_v23 = vsel %vm4296_vm3, 4294967295, %v5913_v23  ;;  %vm5915_vm13 = vmpackc.low %vm5870_vm10, %vm5870_vm10  ;;  %vm5923_vm3 = vnez %v5922_v38  ;;  %vm5925_vm10 = vnez %v5924_v56  ;;  %v1190_v38 = vrot.slane %v1182_v12, %v5935_v9  ;;  %v5962_v56 = vld [vmem:[#allocation94_spill] sm:$0xff]  ;;  %v5981_v12 = vld [vmem:[#allocation100_spill] sm:$0xff] }
 0x15f   :  { %vm4306_vm12 = vmpackc.even %vm5915_vm13, %vm5915_vm13  ;;  %v4320_v43 = vsel %vm5923_vm3, 16843009, %v5855_v40  ;;  %v4325_v46 = vsel %vm5925_vm10, 16843009, %v5855_v40  ;;  %vm5932_vm3 = vnez %v5931_v22  ;;  %vm5934_vm10 = vnez %v5933_v11  ;;  %v5971_v11 = vld [vmem:[#allocation95_spill] sm:$0xff] }
 0x160   :  { %vm4310_vm11 = vmpackc.even %vm1052_vm0, %vm1052_vm0  ;;  %vm5927_vm0 = vnez %v5926_v47  ;;  %v4344_v49 = vsel %vm5932_vm3, 16843009, %v5855_v40  ;;  %v4349_v28 = vsel %vm5934_vm10, 16843009, %v5855_v40  ;;  %vm5939_vm3 = vnez %v5747_v15 }
 0x161   :  { %vm1054_vm14 = vmpackc.low %vm5921_vm4, %vm5921_vm4  ;;  %v4330_v59 = vsel %vm5927_vm0, 16843009, %v5855_v40  ;;  %vm5930_vm4 = vnez %v5714_v6  ;;  %v4363_v13 = vsel %vm5939_vm3, 16843009, %v5855_v40  ;;  %vm5940_vm10 = vnez %v5752_v0 }
 0x162   :  { %vm4332_vm13 = vmpackc.even %vm1054_vm14, %vm1054_vm14  ;;  %v4339_v53 = vsel %vm5930_vm4, 16843009, %v5855_v40  ;;  %vm5937_vm14 = vnez %v5936_v14  ;;  %vm5938_vm4 = vnez %v5742_v58  ;;  %v4368_v26 = vsel %vm5940_vm10, 16843009, %v5855_v40 }
 0x163   :  { %v5929_v31 = vsel %vm4332_vm13, 4294967295, %v5928_v31  ;;  %vm1056_vm0 = vmpackc.low %vm5937_vm14, %vm5937_vm14  ;;  %v4358_v6 = vsel %vm5938_vm4, 16843009, %v5855_v40  ;;  %vm5943_vm14 = vnez %v5768_v5  ;;  %vm5944_vm4 = vnez %v5773_v57 }
 0x164   :  { %vm4371_vm13 = vmpackc.even %vm1056_vm0, %vm1056_vm0  ;;  %v4378_v58 = vsel %vm5943_vm14, 16843009, %v5855_v40  ;;  %v4383_v15 = vsel %vm5944_vm4, 16843009, %v5855_v40  ;;  %vm5945_vm3 = vnez %v5778_v45  ;;  %vm5947_vm0 = vnez %v5946_v16 }
 0x165   :  { %v5942_v41 = vsel %vm4371_vm13, 4294967295, %v5941_v41  ;;  %v4388_v0 = vsel %vm5945_vm3, 16843009, %v5855_v40  ;;  %vm1058_vm10 = vmpackc.low %vm5947_vm0, %vm5947_vm0  ;;  %vm5948_vm14 = vnez %v5791_v4  ;;  %vm5949_vm4 = vnez %v5796_v32 }
 0x166   :  { %v4397_v5 = vsel %vm5948_vm14, 16843009, %v5855_v40  ;;  %v4402_v57 = vsel %vm5949_vm4, 16843009, %v5855_v40  ;;  %vm5950_vm3 = vnez %v5801_v7  ;;  %vm4410_vm13 = vmpackc.even %vm1058_vm10, %vm1058_vm10  ;;  %vm5953_vm0 = vnez %v5812_v61 }
 0x167   :  { %v4407_v45 = vsel %vm5950_vm3, 16843009, %v5855_v40  ;;  %v5952_v24 = vsel %vm4410_vm13, 4294967295, %v5951_v24  ;;  %v4417_v4 = vsel %vm5953_vm0, 16843009, %v5855_v40  ;;  %vm5954_vm14 = vnez %v5817_v1 }
 0x168   :  { %v4422_v32 = vsel %vm5954_vm14, 16843009, %v5855_v40  ;;  %vm5955_vm4 = vnez %v5822_v27  ;;  %vm5957_vm10 = vnez %v5956_v2  ;;  %vm5958_vm13 = vnez %v5831_v20 }
 0x169   :  { %v4427_v7 = vsel %vm5955_vm4, 16843009, %v5855_v40  ;;  %vm1060_vm3 = vmpackc.low %vm5957_vm10, %vm5957_vm10  ;;  %v4435_v61 = vsel %vm5958_vm13, 16843009, %v5855_v40  ;;  %v4440_v1 = vsel %vm4070_vm5, 16843009, %v5855_v40  ;;  %vm5961_vm14 = vnez %v5846_v35 }
 0x16a   :  { %v4445_v27 = vsel %vm4080_vm2, 16843009, %v5855_v40  ;;  %vm4447_vm0 = vmpackc.even %vm1060_vm3, %vm1060_vm3  ;;  %v4454_v20 = vsel %vm5961_vm14, 16843009, %v5855_v40  ;;  %vm5963_vm5 = vnez %v5962_v56  ;;  %vm5964_vm13 = vnez %v5862_v29 }
 0x16b   :  { %vm1062_vm2 = vmpackc.low %vm5963_vm5, %vm5963_vm5  ;;  %v4473_v35 = vsel %vm5964_vm13, 16843009, %v5855_v40  ;;  %v1197_v47 = vrot.slane %v1183_v60, %v5935_v9  ;;  %vm5969_vm10 = vnez %v5879_v62  ;;  %vm5970_vm3 = vnez %v5887_v54 }
 0x16c   :  { %vm4486_vm4 = vmpackc.even %vm1062_vm2, %vm1062_vm2  ;;  %v4493_v29 = vsel %vm5969_vm10, 16843009, %v5855_v40  ;;  %v4503_v3 = vsel %vm5970_vm3, 16843009, %v5855_v40  ;;  %v1199_v22 = vcombine.low %v4243_v55, %v4278_v39  ;;  %vm5972_vm14 = vnez %v5971_v11 }
 0x16d   :  { %vm1064_vm5 = vmpackc.low %vm5972_vm14, %vm5972_vm14  ;;  %v4513_v62 = vsel %vm4251_vm15, 16843009, %v5855_v40  ;;  %v4523_v54 = vsel %vm4271_vm1, 16843009, %v5855_v40  ;;  %v1198_v55 = vcombine.low %v1190_v38, %v1197_v47  ;;  %vm5973_vm2 = vnez %v5914_v23 }
 0x16e   :  { %vm1065_vm6 = vmpackc.even %vm1064_vm5, %vm1064_vm5  ;;  %v4528_v39 = vsel %vm5973_vm2, 16843009, %v5855_v40  ;;  %v4533_v44 = vsel %vm4306_vm12, 16843009, %v5855_v40  ;;  %v4538_v8 = vsel %vm4310_vm11, 16843009, %v5855_v40  ;;  %vm5975_vm15 = vnez %v5974_v42 }
 0x16f   :  { %vm1066_vm7 = vmpackc.low %vm5975_vm15, %vm5975_vm15  ;;  %vm5976_vm1 = vnez %v5929_v31  ;;  %vm5977_vm12 = vnez %v5942_v41  ;;  %vm5978_vm11 = vnez %v5952_v24  ;;  %v1201_v52 = vcombine.low %v4320_v43, %v4325_v46  ;;  %1542 = vst [vmem:[%s4737_s4] sm:$0xff] %v1198_v55  ;;  %v5979_v46 = vld [vmem:[#allocation99_spill] sm:$0xff] }
 0x170   :  { %v4548_v23 = vsel %vm5976_vm1, 16843009, %v5855_v40  ;;  %v4553_v17 = vsel %vm5977_vm12, 16843009, %v5855_v40  ;;  %v4558_v30 = vsel %vm5978_vm11, 16843009, %v5855_v40  ;;  %vm1067_vm13 = vmpackc.even %vm1066_vm7, %vm1066_vm7  ;;  %v1202_v43 = vcombine.low %v4330_v59, %v4339_v53 }
 0x171   :  { %v4568_v34 = vsel %vm4447_vm0, 16843009, %v5855_v40  ;;  %v4573_v31 = vsel %vm4486_vm4, 16843009, %v5855_v40  ;;  %v4576_v14 = vsel %vm1065_vm6, 16843009, %v5855_v40  ;;  %vm5980_vm8 = vnez %v5979_v46 }
 0x172   :  { %vm1068_vm9 = vmpackc.low %vm5980_vm8, %vm5980_vm8  ;;  %v4584_v33 = vsel %vm1067_vm13, 16843009, %v5855_v40  ;;  %v1209_v41 = vrot.slane %v1199_v22, %v5935_v9  ;;  %v1223_v16 = vrot.slane %v1201_v52, %v5935_v9  ;;  %v1230_v10 = vrot.slane %v1202_v43, %v5935_v9  ;;  %v5985_v22 = vld [vmem:[#allocation102_spill] sm:$0xff] }
 0x173   :  { %vm1069_vm0 = vmpackc.even %vm1068_vm9, %vm1068_vm9  ;;  %v1248_v24 = vcombine.low %v4344_v49, %v4349_v28  ;;  %v1249_v59 = vcombine.low %v4358_v6, %v4363_v13  ;;  %v1250_v53 = vcombine.low %v4368_v26, %v4378_v58  ;;  %vm5982_vm4 = vnez %v5981_v12  ;;  %v5983_v58 = vld [vmem:[#allocation101_spill] sm:$0xff] }
 0x174   :  { %vm1070_vm10 = vmpackc.low %vm5982_vm4, %vm5982_vm4  ;;  %v4600_v2 = vsel %vm1069_vm0, 16843009, %v5855_v40  ;;  %v1231_v60 = vcombine.low %v1209_v41, %v1216_v18  ;;  %v1251_v63 = vcombine.low %v4383_v15, %v4388_v0  ;;  %v1297_v49 = vcombine.low %v4397_v5, %v4402_v57 }
 0x175   :  { %vm1071_vm3 = vmpackc.even %vm1070_vm10, %vm1070_vm10  ;;  %v1232_v28 = vcombine.low %v1223_v16, %v1230_v10  ;;  %v1258_v6 = vrot.slane %v1248_v24, %v5935_v9  ;;  %v1265_v13 = vrot.slane %v1249_v59, %v5935_v9  ;;  %v1272_v26 = vrot.slane %v1250_v53, %v5935_v9  ;;  %v5989_v24 = vld [vmem:[#allocation104_spill] sm:$0xff] }
 0x176   :  { %vm5984_vm14 = vnez %v5983_v58  ;;  %v4613_v38 = vsel %vm1071_vm3, 16843009, %v5855_v40  ;;  %v1239_v15 = vrot.slane %v1231_v60, %v5935_v9  ;;  %v1279_v0 = vrot.slane %v1251_v63, %v5935_v9 }
 0x177   :  { %vm1072_vm5 = vmpackc.low %vm5984_vm14, %vm5984_vm14  ;;  %v1298_v5 = vcombine.low %v4407_v45, %v4417_v4  ;;  %v1246_v57 = vrot.slane %v1232_v28, %v5935_v9  ;;  %v1280_v56 = vcombine.low %v1258_v6, %v1265_v13  ;;  %v1299_v47 = vcombine.low %v4422_v32, %v4427_v7 }
 0x178   :  { %vm1073_vm6 = vmpackc.even %vm1072_vm5, %vm1072_vm5  ;;  %v1300_v19 = vcombine.low %v4435_v61, %v4440_v1  ;;  %vm5986_vm2 = vnez %v5985_v22  ;;  %v1281_v55 = vcombine.low %v1272_v26, %v1279_v0  ;;  %v1307_v45 = vrot.slane %v1297_v49, %v5935_v9  ;;  %v5987_v61 = vld [vmem:[#allocation103_spill] sm:$0xff]  ;;  %v5993_v26 = vld [vmem:[#allocation106_spill] sm:$0xff] }
 0x179   :  { %vm1074_vm15 = vmpackc.low %vm5986_vm2, %vm5986_vm2  ;;  %v4628_v11 = vsel %vm1073_vm6, 16843009, %v5855_v40  ;;  %v1314_v4 = vrot.slane %v1298_v5, %v5935_v9  ;;  %v1247_v25 = vcombine.low %v1239_v15, %v1246_v57  ;;  %v1288_v42 = vrot.slane %v1280_v56, %v5935_v9 }
 0x17a   :  { %vm1075_vm7 = vmpackc.even %vm1074_vm15, %vm1074_vm15  ;;  %v1321_v32 = vrot.slane %v1299_v47, %v5935_v9  ;;  %v1328_v7 = vrot.slane %v1300_v19, %v5935_v9  ;;  %vm5988_vm1 = vnez %v5987_v61  ;;  %v1295_v52 = vrot.slane %v1281_v55, %v5935_v9 }
 0x17b   :  { %vm1076_vm12 = vmpackc.low %vm5988_vm1, %vm5988_vm1  ;;  %v4639_v1 = vsel %vm1075_vm7, 16843009, %v5855_v40  ;;  %v1329_v43 = vcombine.low %v1307_v45, %v1314_v4  ;;  %v1346_v46 = vcombine.low %v4445_v27, %v4454_v20  ;;  %v1347_v18 = vcombine.low %v4459_v48, %v4464_v36  ;;  %1543 = vst [vmem:[%s4737_s4 + $0x8] sm:$0xff] %v1247_v25 }
 0x17c   :  { %vm1077_vm11 = vmpackc.even %vm1076_vm12, %vm1076_vm12  ;;  %v1330_v41 = vcombine.low %v1321_v32, %v1328_v7  ;;  %v1348_v16 = vcombine.low %v4473_v35, %v4478_v37  ;;  %v1349_v10 = vcombine.low %v4483_v21, %v4493_v29  ;;  %vm5990_vm13 = vnez %v5989_v24  ;;  %v5991_v29 = vld [vmem:[#allocation105_spill] sm:$0xff] }
 0x17d   :  { %vm1078_vm8 = vmpackc.low %vm5990_vm13, %vm5990_vm13  ;;  %v1145_v27 = vsel %vm1077_vm11, 16843009, %v5855_v40  ;;  %v1296_v20 = vcombine.low %v1288_v42, %v1295_v52  ;;  %v1337_v59 = vrot.slane %v1329_v43, %v5935_v9  ;;  %v1356_v48 = vrot.slane %v1346_v46, %v5935_v9 }
 0x17e   :  { %vm1079_vm9 = vmpackc.even %vm1078_vm8, %vm1078_vm8  ;;  %v1344_v36 = vrot.slane %v1330_v41, %v5935_v9  ;;  %v1363_v35 = vrot.slane %v1347_v18, %v5935_v9  ;;  %v1370_v37 = vrot.slane %v1348_v16, %v5935_v9  ;;  %v1377_v21 = vrot.slane %v1349_v10, %v5935_v9 }
 0x17f   :  { %vm5992_vm0 = vnez %v5991_v29  ;;  %v1146_v53 = vsel %vm1079_vm9, 16843009, %v5855_v40  ;;  %v1395_v12 = vcombine.low %v4498_v51, %v4503_v3  ;;  %v1396_v60 = vcombine.low %v4513_v62, %v4518_v50  ;;  %1544 = vst [vmem:[%s4737_s4 + $0x10] sm:$0xff] %v1296_v20 }
 0x180   :  { %vm1080_vm4 = vmpackc.low %vm5992_vm0, %vm5992_vm0  ;;  %v1397_v63 = vcombine.low %v4523_v54, %v4528_v39  ;;  %v1345_v49 = vcombine.low %v1337_v59, %v1344_v36  ;;  %v1378_v28 = vcombine.low %v1356_v48, %v1363_v35  ;;  %v1379_v6 = vcombine.low %v1370_v37, %v1377_v21 }
 0x181   :  { %vm1081_vm10 = vmpackc.even %vm1080_vm4, %vm1080_vm4  ;;  %v1398_v13 = vcombine.low %v4533_v44, %v4538_v8  ;;  %vm5994_vm3 = vnez %v5993_v26  ;;  %v1405_v3 = vrot.slane %v1395_v12, %v5935_v9  ;;  %v1412_v62 = vrot.slane %v1396_v60, %v5935_v9  ;;  %v5995_v8 = vld [vmem:[#allocation107_spill] sm:$0xff] }
 0x182   :  { %vm1082_vm14 = vmpackc.low %vm5994_vm3, %vm5994_vm3  ;;  %v1147_v51 = vsel %vm1081_vm10, 16843009, %v5855_v40  ;;  %v1419_v50 = vrot.slane %v1397_v63, %v5935_v9  ;;  %v1386_v54 = vrot.slane %v1378_v28, %v5935_v9  ;;  %v1393_v39 = vrot.slane %v1379_v6, %v5935_v9  ;;  %1545 = vst [vmem:[%s4737_s4 + $0x18] sm:$0xff] %v1345_v49 }
 0x183   :  { %vm1083_vm5 = vmpackc.even %vm1082_vm14, %vm1082_vm14  ;;  %v1426_v58 = vrot.slane %v1398_v13, %v5935_v9  ;;  %v1444_v44 = vcombine.low %v4548_v23, %v4553_v17  ;;  %vm5996_vm6 = vnez %v5995_v8  ;;  %v1427_v0 = vcombine.low %v1405_v3, %v1412_v62 }
 0x184   :  { %vm1084_vm2 = vmpackc.low %vm5996_vm6, %vm5996_vm6  ;;  %v1148_v15 = vsel %vm1083_vm5, 16843009, %v5855_v40  ;;  %v1445_v5 = vcombine.low %v4558_v30, %v4568_v34  ;;  %v1446_v57 = vcombine.low %v4573_v31, %v4576_v14  ;;  %v1394_v56 = vcombine.low %v1386_v54, %v1393_v39 }
 0x185   :  { %vm1085_vm15 = vmpackc.even %vm1084_vm2, %vm1084_vm2  ;;  %v1428_v23 = vcombine.low %v1419_v50, %v1426_v58  ;;  %v1447_v17 = vcombine.low %v4584_v33, %v4600_v2  ;;  %v1454_v47 = vrot.slane %v1444_v44, %v5935_v9  ;;  %v1435_v22 = vrot.slane %v1427_v0, %v5935_v9 }
 0x186   :  { %v1149_v19 = vsel %vm1085_vm15, 16843009, %v5855_v40  ;;  %v1461_v55 = vrot.slane %v1445_v5, %v5935_v9  ;;  %v1468_v45 = vrot.slane %v1446_v57, %v5935_v9  ;;  %v1493_v31 = vcombine.low %v4613_v38, %v4628_v11  ;;  %1546 = vst [vmem:[%s4737_s4 + $0x20] sm:$0xff] %v1394_v56 }
 0x187   :  { %v1442_v30 = vrot.slane %v1428_v23, %v5935_v9  ;;  %v1475_v34 = vrot.slane %v1447_v17, %v5935_v9  ;;  %v1494_v14 = vcombine.low %v4639_v1, %v1145_v27  ;;  %v1495_v33 = vcombine.low %v1146_v53, %v1147_v51 }
 0x188   :  { %v1476_v40 = vcombine.low %v1454_v47, %v1461_v55  ;;  %v1496_v2 = vcombine.low %v1148_v15, %v1149_v19  ;;  %v1503_v42 = vrot.slane %v1493_v31, %v5935_v9 }
 0x189   :  { %v1443_v4 = vcombine.low %v1435_v22, %v1442_v30  ;;  %v1477_v25 = vcombine.low %v1468_v45, %v1475_v34  ;;  %v1510_v32 = vrot.slane %v1494_v14, %v5935_v9  ;;  %v1517_v61 = vrot.slane %v1495_v33, %v5935_v9 }
 0x18a   :  { %v1484_v7 = vrot.slane %v1476_v40, %v5935_v9  ;;  %v1524_v38 = vrot.slane %v1496_v2, %v5935_v9 }
 0x18b   :  { %v1491_v11 = vrot.slane %v1477_v25, %v5935_v9  ;;  %v1525_v1 = vcombine.low %v1503_v42, %v1510_v32  ;;  %1547 = vst [vmem:[%s4737_s4 + $0x28] sm:$0xff] %v1443_v4 }
 0x18c   :  { %v1526_v52 = vcombine.low %v1517_v61, %v1524_v38 }
 0x18d   :  { %v1492_v43 = vcombine.low %v1484_v7, %v1491_v11  ;;  %v1533_v46 = vrot.slane %v1525_v1, %v5935_v9 }
 0x18e   :  { %v1540_v41 = vrot.slane %v1526_v52, %v5935_v9 }
 0x18f   :  { %1548 = vst [vmem:[%s4737_s4 + $0x30] sm:$0xff] %v1492_v43 }
 0x190   :  { %v1541_v18 = vcombine.low %v1533_v46, %v1540_v41 }
 0x192   :  { %1549 = vst [vmem:[%s4737_s4 + $0x38] sm:$0xff] %v1541_v18 }

// kernel: lovasz_softmax.3
= control target key start
LH: loop header
LB: loop body
LE: loop exit
PB: predicated region body
PF: predicated region fallthrough
CT: control target
= control target key end

     0   :  { %s1690_s21 = smov 0   ;;  %s1692_s22 = smov 0   ;;  %s2591_s0 = inlined_call_operand.vmem [shape: f32[4,32,256], index: 0, kind: input, shape index: {}]   ;;  %s2592_s1 = inlined_call_operand.vmem [shape: s8[4,32,256], index: 1, kind: input, shape index: {}]   ;;  %s2593_s2 = inlined_call_operand.vmem [shape: bf16[256,256], index: 2, kind: input, shape index: {}]   ;;  %s2594_s3 = inlined_call_operand.vmem [shape: bf16[64,64], index: 3, kind: input, shape index: {}]   ;;  %s2595_s4 = inlined_call_operand.vmem [shape: f32[1,32,256], index: 4, kind: input, shape index: {}]   ;;  %s2596_s5 = inlined_call_operand.vmem [shape: f32[4,1,1], index: 5, kind: input, shape index: {}]   ;;  %s2597_s6 = inlined_call_operand.vmem [shape: f32[4,1,1], index: 6, kind: output, shape index: {}]  }
   0x1   :  { %s1694_s23 = smov 0  }
   0x2 LB: > { %s28_s24 = sadd.s32 1, %s1647_s22  ;;  %p1350_p0 = scmp.ge.s32.totalorder %s1651_s23, 1  ;;  %s1651_s23 = sphi %s1694_s23, %s16_s23   ;;  %s1647_s22 = sphi %s1692_s22, %s2721_s22   ;;  %s1643_s21 = sphi %s1690_s21, %s2720_s21  }
   0x3   : > { %p30_p1 = scmp.ge.s32.totalorder %s28_s24, 2  ;;  %p262_p2 = scmp.lt.s32.totalorder %s1651_s23, 3 }
   0x5   : > { %s2723_s24 = smov (%p30_p1, %s28_s24), 0  ;;  %p263_p3 = pnand %p1350_p0, %p262_p2 }
   0x7   : > { %266 = sbr.rel (%p263_p3) target bundleno = 732 (0x2dc), region = 44 }
   0xc   : > { %s1351_s25 = sshll.u32 %s1643_s21, 1  ;;  %vm350_vm0 = vcmask 0   ;;  %v2598_v44 = vmov 0.0   ;;  %v1513_v45 = vld [vmem:[%s2594_s3] sm:$0xff]   ;;  %vm519_vm1 = vcmask 523264  }
   0xd   : > { %p313_p4 = scmp.lt.s32.totalorder %s1351_s25, 3  ;;  %353 = vst.msk [vmem:[#allocation2] sm:$0x1] %vm350_vm0, %v2598_v44  ;;  %354 = vst.msk [vmem:[#allocation2 + $0x1] sm:$0x1] %vm350_vm0, %v2598_v44  ;;  %1445 = vmatprep.mubr.msk.bf16.mxu0 %vm519_vm1, %v1513_v45 }
   0xe   : > { %v1797_v46 = vld [vmem:[%s2593_s2 + $0x74] ss:$8 sps:$4 sm:$0xff]   ;;  %v1802_v47 = vld [vmem:[%s2593_s2 + $0x70] ss:$8 sps:$4 sm:$0xff]   ;;  %v1807_v48 = vld [vmem:[%s2593_s2 + $0x64] ss:$8 sps:$4 sm:$0xff]  }
   0xf   : > { %s2725_s25 = smov (!%p313_p4, %s1351_s25), 3  ;;  %1453 = vmatprep.subr.bf16.mxu1 %v1797_v46  ;;  %v1814_v49 = vld [vmem:[%s2593_s2 + $0x60] ss:$8 sps:$4 sm:$0xff]   ;;  %v1820_v50 = vld [vmem:[%s2593_s2 + $0x54] ss:$8 sps:$4 sm:$0xff]  }
  0x10   : > { %s1428_s26 = sshll.u32 %s2725_s25, 4  ;;  %1469 = vmatpush1.bf16.msra.mxu1 %v1802_v47  ;;  %v1826_v51 = vld [vmem:[%s2593_s2 + $0x50] ss:$8 sps:$4 sm:$0xff]   ;;  %v1832_v52 = vld [vmem:[%s2593_s2 + $0x44] ss:$8 sps:$4 sm:$0xff]   ;;  %s1994_s14 = scalar_lea.vmem %s2596_s5, %s2725_s25 }
  0x11   : > { %s333_s29 = scalar_lea.vmem %s2592_s1, %s1428_s26  ;;  %1454 = vmatprep.subr.bf16.mxu1 %v1807_v48  ;;  %v1838_v53 = vld [vmem:[%s2593_s2 + $0x40] ss:$8 sps:$4 sm:$0xff]   ;;  %v1844_v54 = vld [vmem:[%s2593_s2 + $0x34] ss:$8 sps:$4 sm:$0xff]   ;;  %v1850_v55 = vld [vmem:[%s2593_s2 + $0x30] ss:$8 sps:$4 sm:$0xff]  }
  0x12   : > { %v1714_v0 = vld [vmem:[%s333_s29 + $0x10] sm:$0xff]  ;;  %v1716_v1 = vld [vmem:[%s333_s29 + $0x18] sm:$0xff]  ;;  %v1718_v2 = vld [vmem:[%s333_s29] sm:$0xff]  ;;  %s1427_s27 = sshll.u32 %s2725_s25, 6 }
  0x13   : > { %v403_v3 = vunpack.c.2.s8 %v1714_v0  ;;  %v404_v4 = vunpack.c.2.s8 %v1716_v1  ;;  %v399_v5 = vunpack.c.0.s8 %v1714_v0  ;;  %v400_v6 = vunpack.c.0.s8 %v1716_v1  ;;  %v1724_v7 = vld [vmem:[%s333_s29 + $0x8] sm:$0xff]  ;;  %v1868_v58 = vld [vmem:[%s2593_s2 + $0x14] ss:$8 sps:$4 sm:$0xff]   ;;  %v1874_v59 = vld [vmem:[%s2593_s2 + $0x10] ss:$8 sps:$4 sm:$0xff]   ;;  %s2092_s20 = scalar_lea.vmem %s2591_s0, %s1427_s27  ;;  %s2568_s27 = scalar_lea.vmem %s2597_s6, %s2725_s25 }
  0x14   : > { %v405_v8 = vunpack.c.3.s8 %v1714_v0  ;;  %v406_v9 = vunpack.c.3.s8 %v1716_v1  ;;  %v401_v10 = vunpack.c.1.s8 %v1714_v0  ;;  %v402_v11 = vunpack.c.1.s8 %v1716_v1  ;;  %1470 = vmatpush1.bf16.msra.mxu1 %v1814_v49  ;;  %v1856_v56 = vld [vmem:[%s2593_s2 + $0x24] ss:$8 sps:$4 sm:$0xff]   ;;  %v1862_v57 = vld [vmem:[%s2593_s2 + $0x20] ss:$8 sps:$4 sm:$0xff]   ;;  %v1892_v62 = vld [vmem:[%s2593_s2 + $0xf4] ss:$8 sps:$4 sm:$0xff]  }
  0x15   : > { %v1730_v12 = vcvt.s32.f32 %v403_v3  ;;  %v1732_v13 = vcvt.s32.f32 %v404_v4  ;;  %v1734_v14 = vcvt.s32.f32 %v399_v5  ;;  %v1736_v15 = vcvt.s32.f32 %v400_v6  ;;  %1455 = vmatprep.subr.bf16.mxu1 %v1820_v50  ;;  %v1880_v60 = vld [vmem:[%s2593_s2 + $0x4] ss:$8 sps:$4 sm:$0xff]   ;;  %v1886_v61 = vld [vmem:[%s2593_s2] ss:$8 sps:$4 sm:$0xff]   ;;  %v1898_v63 = vld [vmem:[%s2593_s2 + $0xf0] ss:$8 sps:$4 sm:$0xff]  }
  0x16   : > { %v1738_v16 = vcvt.s32.f32 %v405_v8  ;;  %v1740_v17 = vcvt.s32.f32 %v406_v9  ;;  %v1742_v18 = vcvt.s32.f32 %v401_v10  ;;  %v1744_v19 = vcvt.s32.f32 %v402_v11  ;;  %v1904_v3 = vld [vmem:[%s2593_s2 + $0xe4] ss:$8 sps:$4 sm:$0xff]   ;;  %v1910_v4 = vld [vmem:[%s2593_s2 + $0xe0] ss:$8 sps:$4 sm:$0xff]   ;;  %v1916_v5 = vld [vmem:[%s2593_s2 + $0xd4] ss:$8 sps:$4 sm:$0xff]  }
  0x17   : > { %2637 = vst [vmem:[#allocation3_spill] sm:$0xff] %v1734_v14  ;;  %2638 = vst [vmem:[#allocation4_spill] sm:$0xff] %v1736_v15  ;;  %v481_v20 = vadd.f32 %v1732_v13, %v1730_v12  ;;  %v475_v21 = vadd.f32 %v1736_v15, %v1734_v14  ;;  %v397_v22 = vunpack.c.3.s8 %v1718_v2  ;;  %v398_v23 = vunpack.c.3.s8 %v1724_v7  ;;  %v1922_v6 = vld [vmem:[%s2593_s2 + $0xd0] ss:$8 sps:$4 sm:$0xff]   ;;  %v1928_v8 = vld [vmem:[%s2593_s2 + $0xc4] ss:$8 sps:$4 sm:$0xff]  }
  0x18   : > { %2639 = vst [vmem:[#allocation5_spill] sm:$0xff] %v1738_v16  ;;  %2640 = vst [vmem:[#allocation6_spill] sm:$0xff] %v1740_v17  ;;  %v484_v24 = vadd.f32 %v1740_v17, %v1738_v16  ;;  %v478_v25 = vadd.f32 %v1744_v19, %v1742_v18  ;;  %v395_v26 = vunpack.c.2.s8 %v1718_v2  ;;  %v396_v27 = vunpack.c.2.s8 %v1724_v7  ;;  %1471 = vmatpush1.bf16.msra.mxu1 %v1826_v51  ;;  %v1934_v9 = vld [vmem:[%s2593_s2 + $0xc0] ss:$8 sps:$4 sm:$0xff]   ;;  %v1940_v10 = vld [vmem:[%s2593_s2 + $0xb4] ss:$8 sps:$4 sm:$0xff]  }
  0x19   : > { %2641 = vst [vmem:[#allocation7_spill] sm:$0xff] %v1742_v18  ;;  %2642 = vst [vmem:[#allocation8_spill] sm:$0xff] %v1744_v19  ;;  %482 = vadd.xlane.f32.xlu0 %v481_v20  ;;  %476 = vadd.xlane.f32.xlu1 %v475_v21  ;;  %v1758_v28 = vcvt.s32.f32 %v397_v22  ;;  %v1760_v29 = vcvt.s32.f32 %v398_v23  ;;  %v393_v30 = vunpack.c.1.s8 %v1718_v2  ;;  %v394_v31 = vunpack.c.1.s8 %v1724_v7  ;;  %v1947_v20 = vld [vmem:[%s2593_s2 + $0xb0] ss:$8 sps:$4 sm:$0xff]   ;;  %v1953_v21 = vld [vmem:[%s2593_s2 + $0xa4] ss:$8 sps:$4 sm:$0xff]  }
  0x1a   : > { %v1764_v32 = vcvt.s32.f32 %v395_v26  ;;  %v1766_v33 = vcvt.s32.f32 %v396_v27  ;;  %v391_v34 = vunpack.c.0.s8 %v1718_v2  ;;  %v392_v35 = vunpack.c.0.s8 %v1724_v7  ;;  %1456 = vmatprep.subr.bf16.mxu1 %v1832_v52  ;;  %v1959_v22 = vld [vmem:[%s2593_s2 + $0xa0] ss:$8 sps:$4 sm:$0xff]   ;;  %v1965_v23 = vld [vmem:[%s2593_s2 + $0x94] ss:$8 sps:$4 sm:$0xff]  }
  0x1b   : > { %2643 = vst [vmem:[#allocation9_spill] sm:$0xff] %v1758_v28  ;;  %2644 = vst [vmem:[#allocation10_spill] sm:$0xff] %v1760_v29  ;;  %v472_v36 = vadd.f32 %v1760_v29, %v1758_v28  ;;  %v1772_v37 = vcvt.s32.f32 %v393_v30  ;;  %v1776_v39 = vcvt.s32.f32 %v394_v31  ;;  %v1362_v11 = vunpack.c.h.s8.bf16 %v1724_v7  ;;  %v1983_v31 = vld [vmem:[%s2593_s2 + $0x80] ss:$8 sps:$4 sm:$0xff]  }
  0x1c   : > { %v469_v38 = vadd.f32 %v1766_v33, %v1764_v32  ;;  %v1778_v40 = vcvt.s32.f32 %v391_v34  ;;  %v1780_v41 = vcvt.s32.f32 %v392_v35  ;;  %1472 = vmatpush1.bf16.msra.mxu1 %v1838_v53  ;;  %v874_v26 = vlaneseq  ;;  %v1986_v35 = vld [vmem:[#allocation2] sm:$0x1]  ;;  %v598_v45 = vld [vmem:[#allocation2 + $0x1] sm:$0x1] }
  0x1d   : > { %485 = vadd.xlane.f32.xlu0 %v484_v24  ;;  %479 = vadd.xlane.f32.xlu1 %v478_v25  ;;  %v466_v42 = vadd.f32 %v1776_v39, %v1772_v37  ;;  %v1971_v24 = vld [vmem:[%s2593_s2 + $0x90] ss:$8 sps:$4 sm:$0xff]   ;;  %v1977_v25 = vld [vmem:[%s2593_s2 + $0x84] ss:$8 sps:$4 sm:$0xff]   ;;  %v1654_v27 = vmov 0  }
  0x1e   : > { %v463_v43 = vadd.f32 %v1780_v41, %v1778_v40  ;;  %1457 = vmatprep.subr.bf16.mxu1 %v1844_v54  ;;  %841 = vmatprep.mubr.bf16.mxu1 %v1362_v11  ;;  %v875_v30 = vshrl.u32 %v874_v26, 7  ;;  %v1363_v26 = vunpack.c.l.s8.bf16 %v1714_v0 }
  0x1f   : > { %1511 = vset.pattern.permute.xlu1 %v1654_v27  ;;  %1512 = vset.pattern.permute.xlu0 %v1654_v27  ;;  %v1366_v27 = vunpack.c.h.s8.bf16 %v1716_v1 }
  0x20   : > { %1473 = vmatpush1.bf16.msra.mxu1 %v1850_v55  ;;  %v876_v34 = vsub.s32 0, %v875_v30  ;;  %v1365_v30 = vunpack.c.h.s8.bf16 %v1714_v0 }
  0x21   : > { %473 = vadd.xlane.f32.xlu1 %v472_v36  ;;  %470 = vadd.xlane.f32.xlu0 %v469_v38  ;;  %v1361_v36 = vunpack.c.h.s8.bf16 %v1718_v2 }
  0x22   : > { %1458 = vmatprep.subr.bf16.mxu1 %v1856_v56  ;;  %v877_v38 = vrot.slane %v1986_v35, %v876_v34  ;;  %v881_v11 = vrot.slane %v598_v45, %v876_v34 }
  0x24   : > { %1474 = vmatpush1.bf16.msra.mxu1 %v1862_v57 }
  0x25   : > { %467 = vadd.xlane.f32.xlu1 %v466_v42  ;;  %464 = vadd.xlane.f32.xlu0 %v463_v43  ;;  %v1364_v42 = vunpack.c.l.s8.bf16 %v1716_v1  ;;  %v1407_v43 = vld [vmem:[%s1994_s14] ss:$0 sm:$0xff] }
  0x26   : > { %1459 = vmatprep.subr.bf16.mxu1 %v1868_v58 }
  0x28   : > { %1475 = vmatpush1.bf16.msra.mxu1 %v1874_v59 }
  0x29   : > { %1460 = vmatprep.subr.bf16.mxu1 %v1880_v60 }
  0x2c   : > { %1476 = vmatpush1.bf16.msra.mxu1 %v1886_v61 }
  0x2d   : > { %1461 = vmatprep.subr.bf16.mxu1 %v1892_v62 }
  0x30   : > { %1477 = vmatpush2.bf16.msra.mxu1 %v1898_v63 }
  0x31   : > { %1462 = vmatprep.subr.bf16.mxu1 %v1904_v3 }
  0x34   : > { %1478 = vmatpush2.bf16.msra.mxu1 %v1910_v4 }
  0x35   : > { %1463 = vmatprep.subr.bf16.mxu1 %v1916_v5 }
  0x36   : > { %883 = vperm.xlu1 %1511, %v877_v38  }
  0x38   : > { %1479 = vmatpush2.bf16.msra.mxu1 %v1922_v6 }
  0x39   : > { %1464 = vmatprep.subr.bf16.mxu1 %v1928_v8 }
  0x3a   : > { %938 = vperm.xlu1 %1511, %v1407_v43  }
  0x3c   : > { %1480 = vmatpush2.bf16.msra.mxu1 %v1934_v9 }
  0x3d   : > { %1465 = vmatprep.subr.bf16.mxu1 %v1940_v10 }
  0x3e   : > { %887 = vperm.xlu1 %1511, %v881_v11  }
  0x40   : > { %1481 = vmatpush2.bf16.msra.mxu1 %v1947_v20 }
  0x41   : > { %1466 = vmatprep.subr.bf16.mxu1 %v1953_v21 }
  0x44   : > { %1482 = vmatpush2.bf16.msra.mxu1 %v1959_v22 }
  0x45   : > { %1467 = vmatprep.subr.bf16.mxu1 %v1965_v23 }
  0x48   : > { %1483 = vmatpush2.bf16.msra.mxu1 %v1971_v24 }
  0x49   : > { %1468 = vmatprep.subr.bf16.mxu1 %v1977_v25 }
  0x4c   : > { %1484 = vmatpush2.bf16.msra.mxu1 %v1983_v31 }
  0x4f   : > { %842 = vmatmul.mubr.bf16.vlgmr.msra.gmra.mxu1 %v1361_v36 }
  0x50   : > { %851 = vmatprep.mubr.bf16.mxu1 %v1364_v42 }
  0x57   : > { %852 = vmatmul.mubr.bf16.gmra.mxu1 %v1363_v26 }
  0x58   : > { %861 = vmatprep.mubr.bf16.mxu1 %v1366_v27 }
  0x5f   : > { %862 = vmatmul.mubr.bf16.gmra.mxu1 %v1365_v30 }
  0xa2   : > { %v483_v44 = vpop.xlane.xlu0 %482  ;;  %v477_v29 = vpop.xlane.xlu1 %476 }
  0xa6   : > { %v486_v28 = vpop.xlane.xlu0 %485  ;;  %v480_v38 = vpop.xlane.xlu1 %479 }
  0xa7   : > { %v1235_v19 = vadd.f32 %v480_v38, %v477_v29  ;;  %v498_v36 = vpack.c.bf16 %v486_v28, %v483_v44  ;;  %v497_v42 = vpack.c.bf16 %v480_v38, %v477_v29 }
  0xa9   : > { %v1236_v18 = vadd.f32 %v1235_v19, %v483_v44  ;;  %1437 = vmatprep.subr.bf16.mxu0 %v498_v36 }
  0xaa   : > { %1438 = vmatpush3.bf16.msra.mxu0 %v498_v36  ;;  %v474_v34 = vpop.xlane.xlu1 %473  ;;  %v471_v43 = vpop.xlane.xlu0 %470 }
  0xab   : > { %v1237_v15 = vadd.f32 %v1236_v18, %v486_v28  ;;  %v496_v1 = vpack.c.bf16 %v474_v34, %v471_v43  ;;  %1439 = vmatprep.subr.bf16.mxu0 %v497_v42  ;;  %v1514_v18 = vld [vmem:[%s2594_s3 + $0x8] sm:$0xff]  }
  0xad   : > { %v1238_v11 = vrot.slane %v1237_v15, 4 }
  0xae   : > { %1440 = vmatpush3.bf16.msra.mxu0 %v497_v42  ;;  %v468_v26 = vpop.xlane.xlu1 %467  ;;  %v465_v0 = vpop.xlane.xlu0 %464 }
  0xaf   : > { %v1239_v27 = vadd.f32 %v1238_v11, %v1237_v15  ;;  %v495_v30 = vpack.c.bf16 %v468_v26, %v465_v0  ;;  %v1226_v14 = vadd.f32 %v468_v26, %v465_v0  ;;  %1441 = vmatprep.subr.bf16.mxu0 %v496_v1  ;;  %v1515_v15 = vld [vmem:[%s2594_s3 + $0x10] sm:$0xff]   ;;  %v2115_v0 = vld [vmem:[%s2092_s20 + $0x20] sm:$0xff] }
  0xb1   : > { %v1240_v17 = vrot.slane %v1239_v27, 2  ;;  %v1227_v16 = vadd.f32 %v1226_v14, %v471_v43 }
  0xb2   : > { %1442 = vmatpush3.bf16.msra.mxu0 %v496_v1 }
  0xb3   : > { %v1241_v29 = vadd.f32 %v1240_v17, %v1239_v27  ;;  %v1228_v19 = vadd.f32 %v1227_v16, %v474_v34  ;;  %1443 = vmatprep.subr.bf16.mxu0 %v495_v30  ;;  %v1516_v34 = vld [vmem:[%s2594_s3 + $0x18] sm:$0xff]   ;;  %v2118_v27 = vld [vmem:[%s2092_s20 + $0x28] sm:$0xff] }
  0xb5   : > { %v1242_v44 = vrot.slane %v1241_v29, 1  ;;  %v1229_v38 = vrot.slane %v1228_v19, 4 }
  0xb6   : > { %1444 = vmatpush3.bf16.msra.mxu0 %v495_v30  ;;  %v2121_v30 = vld [vmem:[%s2092_s20] sm:$0xff] }
  0xb7   : > { %v1230_v28 = vadd.f32 %v1229_v38, %v1228_v19  ;;  %799 = vmatprep.subr.bf16.mxu0 %v1797_v46  ;;  %v1243_v36 = vadd.f32 %v1242_v44, %v1241_v29  ;;  %v1360_v46 = vunpack.c.l.s8.bf16 %v1724_v7  ;;  %v1359_v7 = vunpack.c.l.s8.bf16 %v1718_v2  ;;  %v2130_v38 = vld [vmem:[%s2092_s20 + $0x8] sm:$0xff] }
  0xb9   : > { %v1231_v14 = vrot.slane %v1230_v28, 2  ;;  %1446 = vmatmul.mubr.msk.bf16.vlgmr.msra.gmra.mxu0 %vm519_vm1, %v1514_v18  ;;  %v1245_v16 = vadd.f32 %v1243_v36, %v598_v45  ;;  %v2133_v18 = vld [vmem:[%s2092_s20 + $0x10] sm:$0xff] }
  0xba   : > { %1449 = vmatprep.mubr.msk.bf16.mxu0 %vm519_vm1, %v1515_v15  ;;  %800 = vmatpush1.bf16.msra.mxu0 %v1802_v47  ;;  %2645 = vst [vmem:[#allocation11_spill] sm:$0xff] %v2133_v18  ;;  %v2136_v15 = vld [vmem:[%s2092_s20 + $0x18] sm:$0xff] }
  0xbb   : > { %v1232_v17 = vadd.f32 %v1231_v14, %v1230_v28  ;;  %801 = vmatprep.subr.bf16.mxu0 %v1807_v48  ;;  %1247 = vst.msk [vmem:[#allocation2 + $0x1] sm:$0x1] %vm350_vm0, %v1245_v16  ;;  %2646 = vst [vmem:[#allocation12_spill] sm:$0xff] %v2136_v15 }
  0xbd   : > { %v1233_v42 = vrot.slane %v1232_v17, 1 }
  0xbe   : > { %802 = vmatpush1.bf16.msra.mxu0 %v1814_v49 }
  0xbf   : > { %803 = vmatprep.subr.bf16.mxu0 %v1820_v50  ;;  %v1234_v45 = vadd.f32 %v1233_v42, %v1232_v17  ;;  %v2153_v17 = vld [vmem:[%s2092_s20 + $0x60] sm:$0xff]  ;;  %v2156_v42 = vld [vmem:[%s2092_s20 + $0x68] sm:$0xff] }
  0xc0   : > { %2647 = vst [vmem:[#allocation13_spill] sm:$0xff] %v2153_v17  ;;  %2648 = vst [vmem:[#allocation14_spill] sm:$0xff] %v2156_v42 }
  0xc1   : > { %1450 = vmatmul.mubr.msk.bf16.gmra.mxu0 %vm519_vm1, %v1516_v34  ;;  %v1244_v47 = vadd.f32 %v1234_v45, %v1986_v35  ;;  %v2159_v34 = vld [vmem:[%s2092_s20 + $0x40] sm:$0xff] }
  0xc2   : > { %804 = vmatpush1.bf16.msra.mxu0 %v1826_v51  ;;  %831 = vmatprep.mubr.bf16.mxu0 %v1360_v46  ;;  %v1408_v51 = vld [vmem:[%s1994_s14 + $0x1] ss:$0 sm:$0xff]  ;;  %2649 = vst [vmem:[#allocation15_spill] sm:$0xff] %v2159_v34 }
  0xc3   : > { %805 = vmatprep.subr.bf16.mxu0 %v1832_v52  ;;  %1246 = vst.msk [vmem:[#allocation2] sm:$0x1] %vm350_vm0, %v1244_v47 }
  0xc6   : > { %806 = vmatpush1.bf16.msra.mxu0 %v1838_v53 }
  0xc7   : > { %807 = vmatprep.subr.bf16.mxu0 %v1844_v54 }
  0xca   : > { %808 = vmatpush1.bf16.msra.mxu0 %v1850_v55 }
  0xcb   : > { %809 = vmatprep.subr.bf16.mxu0 %v1856_v56 }
  0xce   : > { %810 = vmatpush1.bf16.msra.mxu0 %v1862_v57 }
  0xcf   : > { %811 = vmatprep.subr.bf16.mxu0 %v1868_v58 }
  0xd2   : > { %812 = vmatpush1.bf16.msra.mxu0 %v1874_v59  ;;  %v2054_v59 = vpop.permute.xlu1 %883 }
  0xd3   : > { %813 = vmatprep.subr.bf16.mxu0 %v1880_v60 }
  0xd6   : > { %814 = vmatpush1.bf16.msra.mxu0 %v1886_v61 }
  0xd7   : > { %815 = vmatprep.subr.bf16.mxu0 %v1892_v62  ;;  %v2060_v62 = vpop.permute.xlu1 %938 }
  0xda   : > { %816 = vmatpush2.bf16.msra.mxu0 %v1898_v63  ;;  %v914_v63 = vld [vmem:[%s2595_s4 + $0x20] sm:$0xff] }
  0xdb   : > { %817 = vmatprep.subr.bf16.mxu0 %v1904_v3  ;;  %v915_v3 = vld [vmem:[%s2595_s4 + $0x28] sm:$0xff]  ;;  %v2108_v43 = vpop.permute.xlu1 %887 }
  0xde   : > { %818 = vmatpush2.bf16.msra.mxu0 %v1910_v4  ;;  %v910_v4 = vld [vmem:[%s2595_s4] sm:$0xff] }
  0xdf   : > { %819 = vmatprep.subr.bf16.mxu0 %v1916_v5  ;;  %v911_v5 = vld [vmem:[%s2595_s4 + $0x8] sm:$0xff] }
  0xe2   : > { %820 = vmatpush2.bf16.msra.mxu0 %v1922_v6  ;;  %v912_v6 = vld [vmem:[%s2595_s4 + $0x10] sm:$0xff] }
  0xe3   : > { %821 = vmatprep.subr.bf16.mxu0 %v1928_v8  ;;  %v913_v8 = vld [vmem:[%s2595_s4 + $0x18] sm:$0xff] }
  0xe6   : > { %822 = vmatpush2.bf16.msra.mxu0 %v1934_v9  ;;  %v916_v9 = vld [vmem:[%s2595_s4 + $0x30] sm:$0xff] }
  0xe7   : > { %823 = vmatprep.subr.bf16.mxu0 %v1940_v10  ;;  %v2106_v35 = vadd.f32 1.0, %v916_v9 }
  0xe9   : > { %v2150_v16 = vadd.f32 %v2106_v35, %v2060_v62 }
  0xea   : > { %824 = vmatpush2.bf16.msra.mxu0 %v1947_v20  ;;  %v917_v20 = vld [vmem:[%s2595_s4 + $0x38] sm:$0xff] }
  0xeb   : > { %825 = vmatprep.subr.bf16.mxu0 %v1953_v21  ;;  %v2094_v21 = vadd.f32 1.0, %v914_v63  ;;  %v2110_v11 = vadd.f32 1.0, %v917_v20  ;;  %v2179_v63 = vld [vmem:[%s2092_s20 + $0x58] sm:$0xff] }
  0xec   : > { %2652 = vst [vmem:[#allocation18_spill] sm:$0xff] %v2179_v63 }
  0xed   : > { %v973_v29 = vadd.f32 %v2094_v21, %v2060_v62  ;;  %v2163_v47 = vadd.f32 %v2110_v11, %v2060_v62 }
  0xee   : > { %826 = vmatpush2.bf16.msra.mxu0 %v1959_v22  ;;  %v2096_v22 = vadd.f32 1.0, %v915_v3  ;;  %v2182_v3 = vld [vmem:[%s2092_s20 + $0x30] sm:$0xff] }
  0xef   : > { %827 = vmatprep.subr.bf16.mxu0 %v1965_v23  ;;  %v2098_v23 = vadd.f32 1.0, %v910_v4  ;;  %2653 = vst [vmem:[#allocation19_spill] sm:$0xff] %v2182_v3 }
  0xf0   : > { %v974_v19 = vadd.f32 %v2096_v22, %v2060_v62 }
  0xf1   : > { %v969_v44 = vadd.f32 %v2098_v23, %v2060_v62 }
  0xf2   : > { %828 = vmatpush2.bf16.msra.mxu0 %v1971_v24  ;;  %v2100_v24 = vadd.f32 1.0, %v911_v5 }
  0xf3   : > { %829 = vmatprep.subr.bf16.mxu0 %v1977_v25  ;;  %v2102_v25 = vadd.f32 1.0, %v912_v6  ;;  %v2201_v6 = vld [vmem:[%s2092_s20 + $0x78] sm:$0xff] }
  0xf4   : > { %v970_v28 = vadd.f32 %v2100_v24, %v2060_v62  ;;  %2656 = vst [vmem:[#allocation22_spill] sm:$0xff] %v2201_v6 }
  0xf5   : > { %v2142_v36 = vadd.f32 %v2102_v25, %v2060_v62 }
  0xf6   : > { %830 = vmatpush2.bf16.msra.mxu0 %v1983_v31  ;;  %v2104_v31 = vadd.f32 1.0, %v913_v8  ;;  %v2189_v8 = vld [vmem:[%s2092_s20 + $0x38] sm:$0xff] }
  0xf7   : > { %2654 = vst [vmem:[#allocation20_spill] sm:$0xff] %v2189_v8 }
  0xf8   : > { %v2146_v14 = vadd.f32 %v2104_v31, %v2060_v62 }
  0xf9   : > { %832 = vmatmul.mubr.bf16.vlgmr.msra.gmra.mxu0 %v1359_v7 }
 0x10f   : > { %v843_v56 = vpop.f32.mrf.mxu1 }
 0x111   : > { %v845_v57 = vpop.f32.mrf.mxu1 }
 0x113   : > { %v2052_v58 = vpop.f32.mrf.mxu1 }
 0x115   : > { %v2056_v60 = vpop.f32.mrf.mxu1 }
 0x117   : > { %v2058_v61 = vpop.f32.mrf.mxu1 }
 0x119   : > { %v2084_v10 = vpop.f32.mrf.mxu1 }
 0x11b   : > { %v2112_v26 = vpop.f32.mrf.mxu1 }
 0x179   : > { %v1447_v48 = vpop.f32.mrf.mxu0 }
 0x17a   : > { %611 = vperm.xlu1 %1511, %v1447_v48  }
 0x17b   : > { %v566_v49 = vpop.f32.mrf.mxu0 }
 0x17c   : > { %601 = vperm.xlu0 %1512, %v566_v49  }
 0x17d   : > { %v1448_v50 = vpop.f32.mrf.mxu0 }
 0x17f   : > { %v569_v52 = vpop.f32.mrf.mxu0 }
 0x180   : > { %606 = vperm.xlu1 %1511, %v569_v52   ;;  %942 = vperm.xlu0 %1512, %v1408_v51  }
 0x181   : > { %v1451_v53 = vpop.f32.mrf.mxu0 }
 0x183   : > { %v582_v54 = vpop.f32.mrf.mxu0 }
 0x184   : > { %631 = vperm.xlu1 %1511, %v1451_v53   ;;  %v2171_v53 = vpop.f32.mrf.mxu1 }
 0x185   : > { %v1452_v55 = vpop.f32.mrf.mxu0 }
 0x186   : > { %636 = vperm.xlu0 %1512, %v1452_v55  }
 0x187   : > { %v585_v2 = vpop.f32.mrf.mxu0 }
 0x188   : > { %621 = vperm.xlu1 %1511, %v582_v54   ;;  %v2194_v54 = vld [vmem:[%s2092_s20 + $0x70] sm:$0xff] }
 0x189   : > { %2655 = vst [vmem:[#allocation21_spill] sm:$0xff] %v2194_v54 }
 0x18c   : > { %626 = vperm.xlu1 %1511, %v585_v2   ;;  %v2176_v2 = vld [vmem:[%s2092_s20 + $0x50] sm:$0xff] }
 0x18d   : > { %2651 = vst [vmem:[#allocation17_spill] sm:$0xff] %v2176_v2 }
 0x190   : > { %616 = vperm.xlu1 %1511, %v1448_v50   ;;  %v2169_v50 = vld [vmem:[%s2092_s20 + $0x48] sm:$0xff] }
 0x191   : > { %2650 = vst [vmem:[#allocation16_spill] sm:$0xff] %v2169_v50 }
 0x1b9   : > { %v833_v1 = vpop.f32.mrf.mxu0 }
 0x1bb   : > { %v835_v45 = vpop.f32.mrf.mxu0 }
 0x1bd   : > { %v837_v49 = vpop.f32.mrf.mxu0 }
 0x1f5   : > { %v612_v46 = vpop.permute.xlu1 %611 }
 0x1f6   : > { %v844_v51 = vadd.f32 %v843_v56, %v612_v46  ;;  %v846_v52 = vadd.f32 %v845_v57, %v612_v46 }
 0x1f7   : > { %v602_v4 = vpop.permute.xlu0 %601 }
 0x1f8   : > { %v894_v9 = vadd.f32 %v2054_v59, %v844_v51  ;;  %v895_v20 = vadd.f32 %v2054_v59, %v846_v52  ;;  %v834_v46 = vadd.f32 %v833_v1, %v602_v4  ;;  %v836_v55 = vadd.f32 %v835_v45, %v602_v4  ;;  %v863_v1 = vpop.f32.mrf.mxu1  ;;  %v839_v45 = vpop.f32.mrf.mxu0 }
 0x1fa   : > { %v2204_v7 = vsub.f32 %v2060_v62, %v894_v9  ;;  %v989_v51 = vsub.f32 %v973_v29, %v894_v9  ;;  %v990_v52 = vsub.f32 %v974_v19, %v895_v20  ;;  %v2208_v4 = vsub.f32 %v2060_v62, %v895_v20 }
 0x1fb   : > { %v890_v48 = vadd.f32 %v2054_v59, %v834_v46  ;;  %v891_v5 = vadd.f32 %v2054_v59, %v836_v55  ;;  %v607_v56 = vpop.permute.xlu1 %606 }
 0x1fc   : > { %v2215_v3 = vadd.f32 %v2204_v7, %v1764_v32  ;;  %v1021_v29 = vadd.f32 %v989_v51, %v1764_v32  ;;  %v1022_v19 = vadd.f32 %v990_v52, %v1766_v33  ;;  %1565 = vrcp.f32 %v989_v51  ;;  %v865_v32 = vpop.f32.mrf.mxu1 }
 0x1fd   : > { %v2221_v20 = vsub.f32 %v2060_v62, %v890_v48  ;;  %v985_v46 = vsub.f32 %v969_v44, %v890_v48  ;;  %v2224_v55 = vsub.f32 %v2060_v62, %v891_v5  ;;  %1567 = vrcp.f32 %v990_v52  ;;  %v2239_v48 = vpop.permute.xlu0 %942 }
 0x1fe   : > { %v2226_v57 = vadd.f32 -1.0, %v1021_v29  ;;  %v2228_v54 = vadd.f32 -1.0, %v1022_v19  ;;  %v986_v8 = vsub.f32 %v970_v28, %v891_v5  ;;  %v2232_v63 = vadd.f32 %v2208_v4, %v1766_v33 }
 0x1ff   : > { %v2236_v51 = vadd.f32 %v2221_v20, %v1778_v40  ;;  %v1017_v44 = vadd.f32 %v985_v46, %v1778_v40  ;;  %1569 = vrcp.f32 %v985_v46  ;;  %v838_v52 = vadd.f32 %v837_v49, %v607_v56  ;;  %v632_v5 = vpop.permute.xlu1 %631 }
 0x200   : > { %1571 = vrcp.f32 %v2226_v57  ;;  %v1018_v29 = vadd.f32 %v986_v8, %v1780_v41  ;;  %v840_v28 = vadd.f32 %v839_v45, %v607_v56  ;;  %v2248_v19 = vadd.f32 %v2224_v55, %v1780_v41  ;;  %v867_v56 = vpop.f32.mrf.mxu1 }
 0x201   : > { %1573 = vrcp.f32 %v2228_v54  ;;  %v2244_v33 = vadd.f32 -1.0, %v1017_v44  ;;  %v981_v40 = vadd.f32 %v2094_v21, %v2239_v48  ;;  %v892_v9 = vadd.f32 %v2054_v59, %v838_v52 }
 0x202   : > { %v2252_v46 = vadd.f32 -1.0, %v1018_v29  ;;  %1575 = vrcp.f32 %v986_v8  ;;  %v893_v49 = vadd.f32 %v2054_v59, %v840_v28  ;;  %v982_v45 = vadd.f32 %v2096_v22, %v2239_v48 }
 0x203   : > { %1577 = vrcp.f32 %v2244_v33  ;;  %v864_v44 = vadd.f32 %v863_v1, %v632_v5  ;;  %v866_v6 = vadd.f32 %v865_v32, %v632_v5  ;;  %v2260_v41 = vsub.f32 %v2060_v62, %v892_v9  ;;  %v637_v1 = vpop.permute.xlu0 %636 }
 0x204   : > { %v987_v21 = vsub.f32 %v2142_v36, %v892_v9  ;;  %v2264_v29 = vsub.f32 %v2060_v62, %v893_v49  ;;  %v983_v8 = vadd.f32 %v2106_v35, %v2239_v48  ;;  %1579 = vrcp.f32 %v2252_v46  ;;  %v869_v9 = vpop.f32.mrf.mxu1 }
 0x205   : > { %v988_v52 = vsub.f32 %v2146_v14, %v893_v49  ;;  %v902_v28 = vadd.f32 %v2108_v43, %v864_v44  ;;  %v903_v22 = vadd.f32 %v2108_v43, %v866_v6  ;;  %v2274_v32 = vadd.f32 %v2260_v41, %v1772_v37  ;;  %v622_v44 = vpop.permute.xlu1 %621 }
 0x206   : > { %v1019_v36 = vadd.f32 %v987_v21, %v1772_v37  ;;  %1581 = vrcp.f32 %v987_v21  ;;  %v984_v35 = vadd.f32 %v2110_v11, %v2239_v48  ;;  %v2281_v5 = vadd.f32 %v2264_v29, %v1776_v39 }
 0x207   : > { %v1020_v14 = vadd.f32 %v988_v52, %v1776_v39  ;;  %v2285_v6 = vsub.f32 %v2239_v48, %v902_v28  ;;  %v2288_v49 = vsub.f32 %v2239_v48, %v903_v22  ;;  %v997_v37 = vsub.f32 %v981_v40, %v902_v28 }
 0x208   : > { %v2290_v2 = vadd.f32 -1.0, %v1019_v36  ;;  %v998_v21 = vsub.f32 %v982_v45, %v903_v22  ;;  %v868_v50 = vadd.f32 %v867_v56, %v637_v1  ;;  %1583 = vrcp.f32 %v988_v52 }
 0x209   : > { %2657 = vst [vmem:[#allocation23_spill] sm:$0xff] %v2285_v6  ;;  %2658 = vst [vmem:[#allocation24_spill] sm:$0xff] %v2288_v49  ;;  %v2292_v34 = vadd.f32 -1.0, %v1020_v14  ;;  %v2296_v11 = vadd.f32 %v2285_v6, %v1730_v12  ;;  %v870_v39 = vadd.f32 %v869_v9, %v637_v1  ;;  %v2298_v42 = vpop.eup %1565  ;;  %v1029_v17 = vadd.f32 %v997_v37, %v1730_v12  ;;  %v627_v15 = vpop.permute.xlu1 %626 }
 0x20a   : > { %1585 = vrcp.f32 %v2290_v2  ;;  %v1030_v36 = vadd.f32 %v998_v21, %v1732_v13  ;;  %v904_v40 = vadd.f32 %v2108_v43, %v868_v50  ;;  %v2304_v45 = vpop.eup %1567  ;;  %v2309_v56 = vadd.f32 %v2288_v49, %v1732_v13 }
 0x20b   : > { %1587 = vrcp.f32 %v2292_v34  ;;  %v905_v52 = vadd.f32 %v2108_v43, %v870_v39  ;;  %v977_v28 = vadd.f32 %v2098_v23, %v2239_v48  ;;  %v2316_v12 = vadd.f32 -1.0, %v1029_v17 }
 0x20c   : > { %v2314_v22 = vpop.eup %1569  ;;  %v2318_v1 = vadd.f32 -1.0, %v1030_v36  ;;  %1589 = vrcp.f32 %v997_v37  ;;  %v2321_v50 = vsub.f32 %v2239_v48, %v904_v40  ;;  %v999_v14 = vsub.f32 %v983_v8, %v904_v40 }
 0x20d   : > { %v2323_v9 = vpop.eup %1571  ;;  %1591 = vrcp.f32 %v998_v21  ;;  %v2326_v13 = vsub.f32 %v2239_v48, %v905_v52  ;;  %v1000_v39 = vsub.f32 %v984_v35, %v905_v52  ;;  %v978_v17 = vadd.f32 %v2100_v24, %v2239_v48  ;;  %v2661_v21 = vld [vmem:[#allocation5_spill] sm:$0xff]  ;;  %v2663_v35 = vld [vmem:[#allocation6_spill] sm:$0xff] }
 0x20e   : > { %2659 = vst [vmem:[#allocation25_spill] sm:$0xff] %v2321_v50  ;;  %v2328_v23 = vpop.eup %1573  ;;  %1593 = vrcp.f32 %v2316_v12  ;;  %v854_v37 = vadd.f32 %v2058_v61, %v622_v44  ;;  %v856_v36 = vadd.f32 %v2084_v10, %v622_v44  ;;  %v2338_v49 = vadd.f32 %v2321_v50, %v2661_v21 }
 0x20f   : > { %2660 = vst [vmem:[#allocation26_spill] sm:$0xff] %v2326_v13  ;;  %v1576_v18 = vpop.eup %1575  ;;  %1595 = vrcp.f32 %v2318_v1  ;;  %v1031_v8 = vadd.f32 %v999_v14, %v2661_v21  ;;  %v1032_v40 = vadd.f32 %v1000_v39, %v2663_v35  ;;  %v2346_v24 = vadd.f32 %v2326_v13, %v2663_v35 }
 0x210   : > { %2662 = vst [vmem:[#allocation5_spill] sm:$0xff] %v2338_v49  ;;  %v2342_v52 = vpop.eup %1577  ;;  %1597 = vrcp.f32 %v999_v14  ;;  %v898_v61 = vadd.f32 %v2108_v43, %v854_v37  ;;  %v899_v10 = vadd.f32 %v2108_v43, %v856_v36  ;;  %v2351_v44 = vmul.f32 %v1576_v18, %v2224_v55  ;;  %v617_v36 = vpop.permute.xlu1 %616 }
 0x211   : > { %2664 = vst [vmem:[#allocation6_spill] sm:$0xff] %v2346_v24  ;;  %v2353_v50 = vadd.f32 -1.0, %v1031_v8  ;;  %v2355_v49 = vadd.f32 -1.0, %v1032_v40  ;;  %1599 = vrcp.f32 %v1000_v39  ;;  %v2357_v21 = vpop.eup %1579  ;;  %v979_v18 = vadd.f32 %v2102_v25, %v2239_v48  ;;  %v2669_v8 = vld [vmem:[#allocation3_spill] sm:$0xff] }
 0x212   : > { %v2360_v6 = vsub.f32 %v2239_v48, %v898_v61  ;;  %v2363_v35 = vsub.f32 %v2239_v48, %v899_v10  ;;  %v993_v14 = vsub.f32 %v977_v28, %v898_v61  ;;  %v994_v37 = vsub.f32 %v978_v17, %v899_v10  ;;  %v2670_v61 = vld [vmem:[#allocation4_spill] sm:$0xff] }
 0x213   : > { %2665 = vst [vmem:[#allocation27_spill] sm:$0xff] %v2353_v50  ;;  %2666 = vst [vmem:[#allocation28_spill] sm:$0xff] %v2355_v49  ;;  %v2365_v13 = vpop.eup %1581  ;;  %1601 = vrcp.f32 %v2353_v50  ;;  %v858_v55 = vadd.f32 %v2112_v26, %v627_v15  ;;  %v860_v39 = vadd.f32 %v2171_v53, %v627_v15  ;;  %v980_v17 = vadd.f32 %v2104_v31, %v2239_v48 }
 0x214   : > { %2667 = vst [vmem:[#allocation29_spill] sm:$0xff] %v2360_v6  ;;  %2668 = vst [vmem:[#allocation30_spill] sm:$0xff] %v2363_v35  ;;  %1603 = vrcp.f32 %v2355_v49  ;;  %v2375_v40 = vadd.f32 %v2360_v6, %v2669_v8  ;;  %v1025_v28 = vadd.f32 %v993_v14, %v2669_v8  ;;  %v2382_v10 = vadd.f32 %v2363_v35, %v2670_v61 }
 0x215   : > { %v1026_v25 = vadd.f32 %v994_v37, %v2670_v61  ;;  %1605 = vrcp.f32 %v993_v14  ;;  %v900_v26 = vadd.f32 %v2108_v43, %v858_v55  ;;  %v1584_v15 = vpop.eup %1583  ;;  %v901_v24 = vadd.f32 %v2108_v43, %v860_v39 }
 0x216   : > { %v2386_v53 = vadd.f32 -1.0, %v1025_v28  ;;  %1607 = vrcp.f32 %v994_v37  ;;  %v848_v8 = vadd.f32 %v2052_v58, %v617_v36  ;;  %v850_v14 = vadd.f32 %v2056_v60, %v617_v36 }
 0x217   : > { %v2390_v49 = vpop.eup %1585  ;;  %v2392_v31 = vadd.f32 -1.0, %v1026_v25  ;;  %v2395_v50 = vsub.f32 %v2239_v48, %v900_v26  ;;  %v995_v35 = vsub.f32 %v979_v18, %v900_v26  ;;  %v2402_v37 = vsub.f32 %v2239_v48, %v901_v24  ;;  %v2672_v18 = vld [vmem:[#allocation7_spill] sm:$0xff] }
 0x218   : > { %v2398_v61 = vpop.eup %1587  ;;  %1609 = vrcp.f32 %v2386_v53  ;;  %v996_v43 = vsub.f32 %v980_v17, %v901_v24  ;;  %v896_v58 = vadd.f32 %v2054_v59, %v848_v8  ;;  %v2408_v39 = vmul.f32 %v1584_v15, %v2264_v29  ;;  %v2674_v24 = vld [vmem:[#allocation8_spill] sm:$0xff] }
 0x219   : > { %2671 = vst [vmem:[#allocation3_spill] sm:$0xff] %v2395_v50  ;;  %v2405_v55 = vpop.eup %1589  ;;  %1611 = vrcp.f32 %v2392_v31  ;;  %v1027_v28 = vadd.f32 %v995_v35, %v2672_v18  ;;  %v897_v60 = vadd.f32 %v2054_v59, %v850_v14  ;;  %v2417_v48 = vadd.f32 %v2395_v50, %v2672_v18  ;;  %v2675_v50 = vld [vmem:[#allocation9_spill] sm:$0xff] }
 0x21a   : > { %v2413_v36 = vpop.eup %1591  ;;  %v1028_v17 = vadd.f32 %v996_v43, %v2674_v24  ;;  %1613 = vrcp.f32 %v995_v35  ;;  %v2421_v25 = vsub.f32 %v2060_v62, %v896_v58  ;;  %v2427_v26 = vadd.f32 %v2402_v37, %v2674_v24 }
 0x21b   : > { %2673 = vst [vmem:[#allocation4_spill] sm:$0xff] %v2417_v48  ;;  %v2423_v29 = vpop.eup %1593  ;;  %v2429_v15 = vadd.f32 -1.0, %v1027_v28  ;;  %1615 = vrcp.f32 %v996_v43  ;;  %v991_v59 = vsub.f32 %v2150_v16, %v896_v58  ;;  %v2435_v18 = vsub.f32 %v2060_v62, %v897_v60  ;;  %v2677_v62 = vld [vmem:[#allocation10_spill] sm:$0xff] }
 0x21c   : > { %v1596_v8 = vpop.eup %1595  ;;  %v2432_v14 = vadd.f32 -1.0, %v1028_v17  ;;  %v992_v35 = vsub.f32 %v2163_v47, %v897_v60  ;;  %v2440_v48 = vadd.f32 %v2421_v25, %v2675_v50  ;;  %vm1053_vm2 = vcmp.gt.f32.partialorder %v2226_v57, 0.5 }
 0x21d   : > { %v2442_v6 = vpop.eup %1597  ;;  %1617 = vrcp.f32 %v2429_v15  ;;  %v1023_v43 = vadd.f32 %v991_v59, %v2675_v50  ;;  %vm1054_vm3 = vcmp.gt.f32.partialorder %v2228_v54, 0.5  ;;  %v1074_v58 = vmul.f32 %v2323_v9, %v2215_v3 }
 0x21e   : > { %v2448_v16 = vpop.eup %1599  ;;  %1619 = vrcp.f32 %v2432_v14  ;;  %v1024_v47 = vadd.f32 %v992_v35, %v2677_v62  ;;  %v1076_v28 = vmul.f32 %v2328_v23, %v2232_v63  ;;  %v1122_v57 = vmul.f32 %v2298_v42, %v2204_v7 }
 0x21f   : > { %2676 = vst [vmem:[#allocation7_spill] sm:$0xff] %v2448_v16  ;;  %v2456_v60 = vadd.f32 -1.0, %v1023_v43  ;;  %1621 = vrcp.f32 %v991_v59  ;;  %v1124_v54 = vmul.f32 %v2304_v45, %v2208_v4  ;;  %v1101_v17 = vsel %vm1053_vm2, %v1074_v58, 1.0 }
 0x220   : > { %v2462_v50 = vpop.eup %1601  ;;  %v2464_v24 = vadd.f32 -1.0, %v1024_v47  ;;  %1623 = vrcp.f32 %v992_v35  ;;  %v1102_v16 = vsel %vm1054_vm3, %v1076_v28, 1.0  ;;  %v1149_v63 = vsub.f32 %v1101_v17, %v1122_v57  ;;  %v2682_v57 = vld [vmem:[#allocation23_spill] sm:$0xff] }
 0x221   : > { %v2466_v3 = vpop.eup %1603  ;;  %1625 = vrcp.f32 %v2456_v60  ;;  %v1150_v9 = vsub.f32 %v1102_v16, %v1124_v54  ;;  %vm1049_vm4 = vcmp.gt.f32.partialorder %v2244_v33, 0.5  ;;  %vm1050_vm5 = vcmp.gt.f32.partialorder %v2252_v46, 0.5 }
 0x222   : > { %v1606_v23 = vpop.eup %1605  ;;  %1627 = vrcp.f32 %v2464_v24  ;;  %v1066_v42 = vmul.f32 %v2342_v52, %v2236_v51  ;;  %v1068_v7 = vmul.f32 %v2357_v21, %v2248_v19  ;;  %v2678_v45 = vsub.f32 0.0, %v2115_v0 }
 0x223   : > { %v1608_v4 = vpop.eup %1607  ;;  %v2679_v35 = vsub.f32 0.0, %v2118_v27  ;;  %v1114_v33 = vmul.f32 %v2314_v22, %v2221_v20  ;;  %vm1051_vm6 = vcmp.gt.f32.partialorder %v2290_v2, 0.5  ;;  %vm1052_vm7 = vcmp.gt.f32.partialorder %v2292_v34, 0.5 }
 0x224   : > { %v1165_v59 = vmul.f32 %v1149_v63, %v2678_v45  ;;  %v1097_v16 = vsel %vm1049_vm4, %v1066_v42, 1.0  ;;  %v1098_v46 = vsel %vm1050_vm5, %v1068_v7, 1.0  ;;  %v1070_v51 = vmul.f32 %v2390_v49, %v2274_v32  ;;  %v2683_v63 = vld [vmem:[#allocation24_spill] sm:$0xff] }
 0x225   : > { %v1166_v43 = vmul.f32 %v1150_v9, %v2679_v35  ;;  %v1610_v19 = vpop.eup %1609  ;;  %v1145_v21 = vsub.f32 %v1097_v16, %v1114_v33  ;;  %v1146_v0 = vsub.f32 %v1098_v46, %v2351_v44  ;;  %v1072_v27 = vmul.f32 %v2398_v61, %v2281_v5  ;;  %v2684_v9 = vld [vmem:[#allocation11_spill] sm:$0xff]  ;;  %v2688_v33 = vld [vmem:[#allocation13_spill] sm:$0xff] }
 0x226   : > { %v1612_v47 = vpop.eup %1611  ;;  %v1099_v58 = vsel %vm1051_vm6, %v1070_v51, 1.0  ;;  %v1118_v2 = vmul.f32 %v2365_v13, %v2260_v41  ;;  %vm1061_vm8 = vcmp.gt.f32.partialorder %v2316_v12, 0.5  ;;  %vm1062_vm9 = vcmp.gt.f32.partialorder %v2318_v1, 0.5  ;;  %v2690_v51 = vld [vmem:[#allocation29_spill] sm:$0xff] }
 0x227   : > { %v1183_v52 = vadd.f32 %v1166_v43, %v1165_v59  ;;  %v1614_v20 = vpop.eup %1613  ;;  %v2680_v32 = vsub.f32 0.0, %v2121_v30  ;;  %v2681_v22 = vsub.f32 0.0, %v2130_v38  ;;  %v1100_v5 = vsel %vm1052_vm7, %v1072_v27, 1.0 }
 0x228   : > { %v1090_v61 = vmul.f32 %v2423_v29, %v2296_v11  ;;  %v1616_v28 = vpop.eup %1615  ;;  %v1147_v41 = vsub.f32 %v1099_v58, %v1118_v2  ;;  %v1148_v12 = vsub.f32 %v1100_v5, %v2408_v39  ;;  %v1092_v13 = vmul.f32 %v1596_v8, %v2309_v56  ;;  %v2686_v29 = vld [vmem:[#allocation12_spill] sm:$0xff]  ;;  %v2692_v58 = vld [vmem:[#allocation14_spill] sm:$0xff] }
 0x229   : > { %1184 = vadd.xlane.f32.xlu0 %v1183_v52  ;;  %v1161_v49 = vmul.f32 %v1145_v21, %v2680_v32  ;;  %v1162_v44 = vmul.f32 %v1146_v0, %v2681_v22  ;;  %v1138_v54 = vmul.f32 %v2405_v55, %v2682_v57  ;;  %v1140_v38 = vmul.f32 %v2413_v36, %v2683_v63  ;;  %v2691_v21 = vld [vmem:[#allocation30_spill] sm:$0xff] }
 0x22a   : > { %v1109_v17 = vsel %vm1061_vm8, %v1090_v61, 1.0  ;;  %vm1057_vm10 = vcmp.gt.f32.partialorder %v2386_v53, 0.5  ;;  %v1618_v34 = vpop.eup %1617  ;;  %v2685_v42 = vsub.f32 0.0, %v2684_v9  ;;  %v2687_v7 = vsub.f32 0.0, %v2686_v29  ;;  %v2696_v61 = vld [vmem:[#allocation15_spill] sm:$0xff] }
 0x22b   : > { %v1177_v30 = vadd.f32 %v1162_v44, %v1161_v49  ;;  %v1110_v56 = vsel %vm1062_vm9, %v1092_v13, 1.0  ;;  %v1157_v39 = vsub.f32 %v1109_v17, %v1138_v54  ;;  %v1620_v8 = vpop.eup %1619  ;;  %vm1058_vm11 = vcmp.gt.f32.partialorder %v2392_v31, 0.5  ;;  %v2695_v44 = vld [vmem:[#allocation3_spill] sm:$0xff] }
 0x22c   : > { %v1163_v11 = vmul.f32 %v1147_v41, %v2685_v42  ;;  %v1164_v45 = vmul.f32 %v1148_v12, %v2687_v7  ;;  %v1158_v55 = vsub.f32 %v1110_v56, %v1140_v38  ;;  %v1082_v36 = vmul.f32 %v1610_v19, %v2375_v40  ;;  %v1622_v35 = vpop.eup %1621  ;;  %v2698_v12 = vld [vmem:[#allocation16_spill] sm:$0xff] }
 0x22d   : > { %1178 = vadd.xlane.f32.xlu1 %v1177_v30  ;;  %v1084_v59 = vmul.f32 %v1612_v47, %v2382_v10  ;;  %v2689_v16 = vsub.f32 0.0, %v2688_v33  ;;  %v1130_v52 = vmul.f32 %v1606_v23, %v2690_v51  ;;  %v1132_v1 = vmul.f32 %v1608_v4, %v2691_v21  ;;  %v1624_v0 = vpop.eup %1623  ;;  %v2694_v23 = vld [vmem:[#allocation4_spill] sm:$0xff] }
 0x22e   : > { %v1180_v43 = vadd.f32 %v1164_v45, %v1163_v11  ;;  %v1008_v27 = vadd.f32 %v2435_v18, %v2677_v62  ;;  %v2693_v2 = vsub.f32 0.0, %v2692_v58  ;;  %v1105_v40 = vsel %vm1057_vm10, %v1082_v36, 1.0  ;;  %v1626_v19 = vpop.eup %1625 }
 0x22f   : > { %v1173_v46 = vmul.f32 %v1157_v39, %v2689_v16  ;;  %v1106_v10 = vsel %vm1058_vm11, %v1084_v59, 1.0  ;;  %v1153_v47 = vsub.f32 %v1105_v40, %v1130_v52  ;;  %vm1059_vm12 = vcmp.gt.f32.partialorder %v2429_v15, 0.5  ;;  %v1628_v4 = vpop.eup %1627  ;;  %v2705_v39 = vld [vmem:[#allocation28_spill] sm:$0xff]  ;;  %v2708_v59 = vld [vmem:[#allocation19_spill] sm:$0xff]  ;;  %v2711_v16 = vld [vmem:[#allocation26_spill] sm:$0xff] }
 0x230   : > { %v1174_v31 = vmul.f32 %v1158_v55, %v2693_v2  ;;  %1181 = vadd.xlane.f32.xlu0 %v1180_v43  ;;  %v1154_v32 = vsub.f32 %v1106_v10, %v1132_v1  ;;  %v1086_v49 = vmul.f32 %v1618_v34, %v2694_v23  ;;  %vm1060_vm13 = vcmp.gt.f32.partialorder %v2432_v14, 0.5  ;;  %v2700_v34 = vld [vmem:[#allocation17_spill] sm:$0xff]  ;;  %v2707_v55 = vld [vmem:[#allocation6_spill] sm:$0xff]  ;;  %v2713_v52 = vld [vmem:[#allocation20_spill] sm:$0xff] }
 0x231   : > { %v1088_v62 = vmul.f32 %v1620_v8, %v2427_v26  ;;  %v1134_v5 = vmul.f32 %v1614_v20, %v2695_v44  ;;  %v2697_v53 = vsub.f32 0.0, %v2696_v61  ;;  %v2699_v13 = vsub.f32 0.0, %v2698_v12  ;;  %v2710_v43 = vld [vmem:[#allocation25_spill] sm:$0xff]  ;;  %v2717_v10 = vld [vmem:[#allocation22_spill] sm:$0xff] }
 0x232   : > { %v1195_v22 = vadd.f32 %v1174_v31, %v1173_v46  ;;  %v1107_v54 = vsel %vm1059_vm12, %v1086_v49, 1.0  ;;  %v1136_v30 = vmul.f32 %v1616_v28, %v2402_v37  ;;  %vm1055_vm14 = vcmp.gt.f32.partialorder %v2456_v60, 0.5  ;;  %v2702_v28 = vld [vmem:[#allocation18_spill] sm:$0xff]  ;;  %v2712_v46 = vld [vmem:[#allocation7_spill] sm:$0xff]  ;;  %v2715_v2 = vld [vmem:[#allocation21_spill] sm:$0xff] }
 0x233   : > { %v1169_v41 = vmul.f32 %v1153_v47, %v2697_v53  ;;  %v1170_v57 = vmul.f32 %v1154_v32, %v2699_v13  ;;  %v1108_v15 = vsel %vm1060_vm13, %v1088_v62, 1.0  ;;  %v1155_v17 = vsub.f32 %v1107_v54, %v1134_v5 }
 0x234   : > { %1196 = vadd.xlane.f32.xlu1 %v1195_v22  ;;  %v1078_v14 = vmul.f32 %v1626_v19, %v2440_v48  ;;  %v1156_v26 = vsub.f32 %v1108_v15, %v1136_v30  ;;  %v1080_v38 = vmul.f32 %v1628_v4, %v1008_v27  ;;  %v1126_v20 = vmul.f32 %v1622_v35, %v2421_v25  ;;  %v2704_v48 = vld [vmem:[#allocation27_spill] sm:$0xff]  ;;  %v2706_v25 = vld [vmem:[#allocation5_spill] sm:$0xff] }
 0x235   : > { %v1189_v63 = vadd.f32 %v1170_v57, %v1169_v41  ;;  %v2701_v9 = vsub.f32 0.0, %v2700_v34  ;;  %vm1056_vm15 = vcmp.gt.f32.partialorder %v2464_v24, 0.5  ;;  %v1128_v37 = vmul.f32 %v1624_v0, %v2435_v18 }
 0x236   : > { %v1103_v11 = vsel %vm1055_vm14, %v1078_v14, 1.0  ;;  %v2703_v29 = vsub.f32 0.0, %v2702_v28  ;;  %v1104_v60 = vsel %vm1056_vm15, %v1080_v38, 1.0  ;;  %vm1063_vm1 = vcmp.gt.f32.partialorder %v2704_v48, 0.5 }
 0x237   : > { %v1171_v42 = vmul.f32 %v1155_v17, %v2701_v9  ;;  %1190 = vadd.xlane.f32.xlu0 %v1189_v63  ;;  %v1151_v45 = vsub.f32 %v1103_v11, %v1126_v20  ;;  %v1152_v56 = vsub.f32 %v1104_v60, %v1128_v37  ;;  %vm1064_vm2 = vcmp.gt.f32.partialorder %v2705_v39, 0.5 }
 0x238   : > { %v1172_v7 = vmul.f32 %v1156_v26, %v2703_v29  ;;  %v1094_v8 = vmul.f32 %v2462_v50, %v2706_v25  ;;  %v1096_v24 = vmul.f32 %v2466_v3, %v2707_v55  ;;  %v2709_v18 = vsub.f32 0.0, %v2708_v59 }
 0x239   : > { %v1142_v33 = vmul.f32 %v2442_v6, %v2710_v43  ;;  %v1144_v51 = vmul.f32 %v2712_v46, %v2711_v16  ;;  %v2714_v21 = vsub.f32 0.0, %v2713_v52  ;;  %v2716_v31 = vsub.f32 0.0, %v2715_v2 }
 0x23a   : > { %v1192_v36 = vadd.f32 %v1172_v7, %v1171_v42  ;;  %v1167_v35 = vmul.f32 %v1151_v45, %v2709_v18  ;;  %v1111_v0 = vsel %vm1063_vm1, %v1094_v8, 1.0  ;;  %v1112_v27 = vsel %vm1064_vm2, %v1096_v24, 1.0 }
 0x23b   : > { %v1168_v1 = vmul.f32 %v1152_v56, %v2714_v21  ;;  %v1159_v50 = vsub.f32 %v1111_v0, %v1142_v33  ;;  %v1160_v58 = vsub.f32 %v1112_v27, %v1144_v51  ;;  %v2718_v19 = vsub.f32 0.0, %v2717_v10 }
 0x23c   : > { %1193 = vadd.xlane.f32.xlu1 %v1192_v36  ;;  %v2719_v32 = vmov 0.0  }
 0x23d   : > { %v1186_v3 = vadd.f32 %v1168_v1, %v1167_v35  ;;  %v1175_v40 = vmul.f32 %v1159_v50, %v2716_v31  ;;  %v1176_v47 = vmul.f32 %v1160_v58, %v2718_v19  ;;  %351 = vst.msk [vmem:[%s2568_s27] sm:$0x1] %vm350_vm0, %v2719_v32  ;;  %352 = vst.msk [vmem:[%s2568_s27 + $0x1] sm:$0x1] %vm350_vm0, %v2719_v32 }
 0x23f   : > { %1187 = vadd.xlane.f32.xlu0 %v1186_v3  ;;  %v1198_v6 = vadd.f32 %v1176_v47, %v1175_v40 }
 0x241   : > { %1199 = vadd.xlane.f32.xlu1 %v1198_v6 }
 0x244   : > { %v1201_v34 = vld [vmem:[%s2568_s27] sm:$0x1]  ;;  %v1202_v28 = vld [vmem:[%s2568_s27 + $0x1] sm:$0x1] }
 0x2b2   : > { %v1185_v23 = vpop.xlane.xlu0 %1184 }
 0x2b6   : > { %v1179_v49 = vpop.xlane.xlu1 %1178 }
 0x2b9   : > { %v1182_v4 = vpop.xlane.xlu0 %1181 }
 0x2ba   : > { %v1203_v62 = vadd.f32 %v1182_v4, %v1179_v49 }
 0x2bc   : > { %v1204_v53 = vadd.f32 %v1203_v62, %v1185_v23 }
 0x2bd   : > { %v1197_v22 = vpop.xlane.xlu1 %1196 }
 0x2c0   : > { %v1191_v44 = vpop.xlane.xlu0 %1190 }
 0x2c5   : > { %v1194_v5 = vpop.xlane.xlu1 %1193 }
 0x2c6   : > { %v1212_v61 = vadd.f32 %v1194_v5, %v1191_v44 }
 0x2c8   : > { %v1188_v41 = vpop.xlane.xlu0 %1187  ;;  %v1213_v12 = vadd.f32 %v1212_v61, %v1197_v22 }
 0x2c9   : > { %v1205_v13 = vadd.f32 %v1204_v53, %v1188_v41 }
 0x2ca   : > { %v1200_v54 = vpop.xlane.xlu1 %1199 }
 0x2cb   : > { %v1206_v57 = vrot.slane %v1205_v13, 4  ;;  %v1214_v30 = vadd.f32 %v1213_v12, %v1200_v54 }
 0x2cd   : > { %v1207_v15 = vadd.f32 %v1206_v57, %v1205_v13  ;;  %v1215_v17 = vrot.slane %v1214_v30, 4 }
 0x2cf   : > { %v1208_v14 = vrot.slane %v1207_v15, 2  ;;  %v1216_v63 = vadd.f32 %v1215_v17, %v1214_v30 }
 0x2d1   : > { %v1209_v26 = vadd.f32 %v1208_v14, %v1207_v15  ;;  %v1217_v38 = vrot.slane %v1216_v63, 2 }
 0x2d3   : > { %v1210_v20 = vrot.slane %v1209_v26, 1  ;;  %v1218_v9 = vadd.f32 %v1217_v38, %v1216_v63 }
 0x2d5   : > { %v1211_v42 = vadd.f32 %v1210_v20, %v1209_v26  ;;  %v1219_v11 = vrot.slane %v1218_v9, 1 }
 0x2d7   : > { %v1221_v37 = vadd.f32 %v1211_v42, %v1201_v34  ;;  %v1220_v29 = vadd.f32 %v1219_v11, %v1218_v9 }
 0x2d9   : > { %1224 = vst.msk [vmem:[%s2568_s27] sm:$0x1] %vm350_vm0, %v1221_v37  ;;  %v1222_v7 = vadd.f32 %v1220_v29, %v1202_v28 }
 0x2db   : > { %1225 = vst.msk [vmem:[%s2568_s27 + $0x1] sm:$0x1] %vm350_vm0, %v1222_v7 }
 0x2dc PF: > { %s16_s23 = sadd.s32 1, %s1651_s23   ;;  %s2720_s21 = smov %s1647_s22 }
 0x2dd   : > { %p13_p5 = scmp.ge.s32.totalorder %s16_s23, 4   ;;  %s2721_s22 = smov %s2723_s24 }
 0x2df   :  { %15 = sbr.rel (!%p13_p5) target bundleno = 2 (0x2), region = 84 }

</bundles_post_ra>
